<compile_context>
chip_gen: v7x
topology: tpu7x:2x2x1
jax: 0.10.0
libtpu: 0.0.40
codegen_flags: <defaults>
</compile_context>

<pallas_src>
import numpy as np
import jax
import jax.numpy as jnp
from jax.experimental import pallas as pl
from jax.experimental.pallas import tpu as pltpu


# ---------------------------------------------------------------------------
# Kernel
# ---------------------------------------------------------------------------
def _make_kernel(Bb, n_pos1, n_pos2, actions):
    """Bb samples per grid step; n_pos1 = L-4 conv1 positions, n_pos2 = L-8."""
    f32, bf16 = jnp.float32, jnp.bfloat16
    R2 = n_pos2 * Bb

    def kernel(x_ref, w1_ref, w2_ref, wh1_ref, wh2_ref, bias_ref, out_ref):
        relu = lambda v: jnp.maximum(v, 0.0)

        b1 = bias_ref[:, 0:128]
        b2 = bias_ref[:, 128:256]
        bh1 = bias_ref[:, 256:1280]
        bh2 = bias_ref[:, 1280:1408]

        # conv1: single im2col matmul; rows are position-major (l*Bb + b).
        y1 = relu(jnp.dot(x_ref[...], w1_ref[...],
                          preferred_element_type=f32) + b1)
        y1 = y1.astype(bf16)                                 # (n_pos1*Bb, 128)

        # conv2: 5 accumulating K=128 dots over sublane-aligned shifted slices.
        acc = jnp.dot(y1[0:R2], w2_ref[0], preferred_element_type=f32)
        for k in range(1, 5):
            acc = acc + jnp.dot(y1[k * Bb:k * Bb + R2], w2_ref[k],
                                preferred_element_type=f32)
        y2 = relu(acc + b2).astype(bf16)                     # (n_pos2*Bb, 128)

        # Fused dueling head, layer 1: accumulate over the n_pos2 valid conv
        # positions (replaces torch Flatten + the two 512-wide Linears).  Rows
        # l*Bb:(l+1)*Bb are contiguous, so no cross-lane reshape is needed.
        h = jnp.dot(y2[0:Bb], wh1_ref[0], preferred_element_type=f32)
        for l in range(1, n_pos2):
            h = h + jnp.dot(y2[l * Bb:(l + 1) * Bb], wh1_ref[l],
                            preferred_element_type=f32)
        h1 = relu(h + bh1).astype(bf16)                      # (Bb, 1024)

        # Layer 2: block-diagonal [val | adv], zero-padded to 128 lanes so the
        # matmul epilogue and the store stay lane-dense.  Col 0 = val,
        # cols 1..A = adv, rest zero.
        o2 = jnp.dot(h1, wh2_ref[...], preferred_element_type=f32) + bh2  # (Bb,128)
        val = o2[:, 0:1]
        adv_mean = jnp.mean(o2[:, 1:1 + actions], axis=1, keepdims=True)
        # q_a lands in column 1+a; the wrapper slices [:, 1:1+A].
        out_ref[...] = (o2 + (val - adv_mean)).astype(out_ref.dtype)

    return kernel


# ---------------------------------------------------------------------------
# Wrapper
# ---------------------------------------------------------------------------
def _invariant_spec(shape):
    """Full-extent, grid-invariant operand; single-buffered when supported."""
    index_map = lambda i, _n=len(shape): (0,) * _n
    try:
        return pl.BlockSpec(shape, index_map, pipeline_mode=pl.Buffered(1))
    except (TypeError, ValueError):
        return pl.BlockSpec(shape, index_map)


def dqn_conv1d_forward(x_ncl, params, *, block_b=256):
    """x_ncl: (B, C_in, L) float32 in PyTorch NCL layout. Returns (B, actions)."""
    B, c_in, L = x_ncl.shape
    A = params["adv2_w"].shape[0]
    L2 = L - 8                               # length after the two Conv1d(k=5)
    assert L2 >= 1, "input length too short for two Conv1d(k=5)"
    assert params["val1_w"].shape[1] == 128 * L2, "FC input size mismatch"
    P1 = L - 4                               # conv1 output positions we need

    # Samples per grid step: as large as allowed (the dominant head matmul gets
    # M = Bb) but capped at ceil(B/2) so the grid keeps >=2 steps for v7x's two
    # TensorCores; rounded to a multiple of 8 for sublane alignment.
    half = -(-B // 2)
    Bb = max(8, min(block_b, ((half + 7) // 8) * 8))
    B_pad = ((B + Bb - 1) // Bb) * Bb
    nblk = B_pad // Bb

    bf16, f32 = jnp.bfloat16, jnp.float32

    # --- input: NCL -> im2col taps, position-major within each batch block ---
    xp = jnp.pad(x_ncl.astype(bf16), ((0, B_pad - B), (0, 0), (0, 0)))
    xlc = jnp.transpose(xp, (0, 2, 1))                        # (B_pad, L, c_in)
    taps = jnp.concatenate([xlc[:, k:k + P1, :] for k in range(5)], axis=2)
    xim = (taps.reshape(nblk, Bb, P1, 5 * c_in)
               .transpose(0, 2, 1, 3)
               .reshape(nblk * P1 * Bb, 5 * c_in))            # row = l*Bb + b

    # --- weights (bf16 for the MXU), biases coalesced into one f32 operand ---
    w1p = (jnp.transpose(params["conv1_w"], (2, 1, 0))
           .reshape(5 * c_in, 128).astype(bf16))              # (5*c_in, 128)
    w2p = jnp.transpose(params["conv2_w"], (2, 1, 0)).astype(bf16)   # (5,128,128)

    # Fused head layer 1, per conv position: wh1[l, c, :] maps torch Flatten
    # index c*L2 + l (channel-major) to the 1024 = [val(512) | adv(512)] hidden.
    wcat = jnp.concatenate([params["val1_w"], params["adv1_w"]], axis=0)  # (1024, 128*L2)
    wh1p = (wcat.T.reshape(128, L2, 1024).transpose(1, 0, 2)).astype(bf16)  # (L2,128,1024)

    # Fused head layer 2, block diagonal, padded to 128 output lanes.
    wh2 = jnp.zeros((1024, 128), f32)
    wh2 = wh2.at[0:512, 0].set(params["val2_w"][0])
    wh2 = wh2.at[512:1024, 1:1 + A].set(params["adv2_w"].T)
    wh2p = wh2.astype(bf16)

    bh2 = (jnp.zeros((128,), f32)
           .at[0].set(params["val2_b"][0])
           .at[1:1 + A].set(params["adv2_b"]))
    bias = jnp.concatenate([params["conv1_b"], params["conv2_b"],
                            params["val1_b"], params["adv1_b"], bh2]
                           ).reshape(1, 1408).astype(f32)

    kernel = _make_kernel(Bb, P1, L2, A)

    out = pl.pallas_call(
        kernel,
        out_shape=jax.ShapeDtypeStruct((B_pad, 128), f32),
        grid_spec=pltpu.PrefetchScalarGridSpec(
            num_scalar_prefetch=0,
            grid=(nblk,),
            in_specs=[pl.BlockSpec((P1 * Bb, 5 * c_in), lambda i: (i, 0)),
                      _invariant_spec(w1p.shape),
                      _invariant_spec(w2p.shape),
                      _invariant_spec(wh1p.shape),
                      _invariant_spec(wh2p.shape),
                      _invariant_spec(bias.shape)],
            out_specs=pl.BlockSpec((Bb, 128), lambda i: (i, 0)),
        ),
        compiler_params=pltpu.CompilerParams(
            dimension_semantics=("parallel",)),
    )(xim, w1p, w2p, wh1p, wh2p, bias)

    return out[:B, 1:1 + A]


# ---------------------------------------------------------------------------
# Torch-style parameter init + pure-JAX reference (mirrors bf16 matmul inputs
# with f32 accumulation, like the kernel, so the comparison is apples-to-apples).
# ---------------------------------------------------------------------------
def init_params(key, c_in, l_in, actions):
    l2 = l_in - 8
    size = 128 * l2
    shapes = {
        "conv1_w": (128, c_in, 5), "conv1_b": (128,),
        "conv2_w": (128, 128, 5),  "conv2_b": (128,),
        "val1_w": (512, size), "val1_b": (512,),
        "val2_w": (1, 512),    "val2_b": (1,),
        "adv1_w": (512, size), "adv1_b": (512,),
        "adv2_w": (actions, 512), "adv2_b": (actions,),
    }
    params = {}
    for i, name in enumerate(sorted(shapes)):
        k = jax.random.fold_in(key, i)
        params[name] = 0.05 * jax.random.normal(k, shapes[name], dtype=jnp.float32)
    return params


def ref_forward(x_ncl, params):
    f32, bf = jnp.float32, jnp.bfloat16
    relu = lambda v: jnp.maximum(v, 0.0)

    def conv1d(h, w, b):                      # h (B,Ci,L), w (Co,Ci,K), b (Co,)
        K = w.shape[2]
        Lo = h.shape[2] - K + 1
        y = sum(jnp.einsum("bcl,oc->bol",
                           h[:, :, k:k + Lo].astype(bf), w[:, :, k].astype(bf),
                           preferred_element_type=f32) for k in range(K))
        return y + b[None, :, None]

    h = relu(conv1d(x_ncl.astype(f32), params["conv1_w"], params["conv1_b"]))
    h = relu(conv1d(h, params["conv2_w"], params["conv2_b"]))
    flat = h.reshape(h.shape[0], -1)          # torch Flatten order (channel-major)

    def lin(v, w, b):
        return jnp.dot(v.astype(bf), w.T.astype(bf), preferred_element_type=f32) + b

    hv = relu(lin(flat, params["val1_w"], params["val1_b"]))
    val = lin(hv, params["val2_w"], params["val2_b"])
    ha = relu(lin(flat, params["adv1_w"], params["adv1_b"]))
    adv = lin(ha, params["adv2_w"], params["adv2_b"])
    return val + (adv - jnp.mean(adv, axis=1, keepdims=True))


if __name__ == "__main__":
    B, C_IN, L, ACTIONS = 16, 4, 16, 3        # small shapes consistent with the module
    key = jax.random.PRNGKey(0)
    kx, kp = jax.random.split(key)
    x = jax.random.normal(kx, (B, C_IN, L), dtype=jnp.float32)
    params = init_params(kp, C_IN, L, ACTIONS)

    forward = jax.jit(dqn_conv1d_forward, static_argnames=("block_b",))
    out = jax.block_until_ready(forward(x, params))
    ref = jax.block_until_ready(ref_forward(x, params))

    assert out.shape == (B, ACTIONS)
    if not np.allclose(np.asarray(out), np.asarray(ref), atol=2e-2, rtol=2e-2):
        raise AssertionError("Pallas output mismatch vs pure-JAX reference")
    print("KERNEL_OK")
</pallas_src>

<mosaic_0001>
module attributes {stable_mosaic.version = 11 : i64} {
  func.func @kernel(%arg0: i32, %arg1: memref<96x20xbf16, #tpu.memory_space<vmem>>, %arg2: memref<20x128xbf16, #tpu.memory_space<vmem>>, %arg3: memref<5x128x128xbf16, #tpu.memory_space<vmem>>, %arg4: memref<8x128x1024xbf16, #tpu.memory_space<vmem>>, %arg5: memref<1024x128xbf16, #tpu.memory_space<vmem>>, %arg6: memref<1x1408xf32, #tpu.memory_space<vmem>>, %arg7: memref<8x128xf32, #tpu.memory_space<vmem>>) attributes {dimension_semantics = [#tpu.dimension_semantics<parallel>], iteration_bounds = array<i64: 2>, scalar_prefetch = 0 : i64, scratch_operands = 0 : i64, tpu.core_type = #tpu.core_type<tc>, window_params = [{transform_indices = @transform_0, window_bounds = array<i64: 96, 20>}, {pipeline_mode = #tpu.pipeline_mode<synchronous>, transform_indices = @transform_1, window_bounds = array<i64: 20, 128>}, {pipeline_mode = #tpu.pipeline_mode<synchronous>, transform_indices = @transform_2, window_bounds = array<i64: 5, 128, 128>}, {pipeline_mode = #tpu.pipeline_mode<synchronous>, transform_indices = @transform_3, window_bounds = array<i64: 8, 128, 1024>}, {pipeline_mode = #tpu.pipeline_mode<synchronous>, transform_indices = @transform_4, window_bounds = array<i64: 1024, 128>}, {pipeline_mode = #tpu.pipeline_mode<synchronous>, transform_indices = @transform_5, window_bounds = array<i64: 1, 1408>}, {transform_indices = @transform_6, window_bounds = array<i64: 8, 128>}]} {
    %c0 = arith.constant 0 : index
    %c0_0 = arith.constant 0 : index
    %0 = vector.load %arg6[%c0, %c0_0] : memref<1x1408xf32, #tpu.memory_space<vmem>>, vector<1x128xf32>
    %c0_1 = arith.constant 0 : index
    %c128 = arith.constant 128 : index
    %1 = vector.load %arg6[%c0_1, %c128] : memref<1x1408xf32, #tpu.memory_space<vmem>>, vector<1x128xf32>
    %c0_2 = arith.constant 0 : index
    %c256 = arith.constant 256 : index
    %2 = vector.load %arg6[%c0_2, %c256] : memref<1x1408xf32, #tpu.memory_space<vmem>>, vector<1x1024xf32>
    %c0_3 = arith.constant 0 : index
    %c1280 = arith.constant 1280 : index
    %3 = vector.load %arg6[%c0_3, %c1280] : memref<1x1408xf32, #tpu.memory_space<vmem>>, vector<1x128xf32>
    %c0_4 = arith.constant 0 : index
    %c0_5 = arith.constant 0 : index
    %4 = vector.load %arg1[%c0_4, %c0_5] : memref<96x20xbf16, #tpu.memory_space<vmem>>, vector<96x20xbf16>
    %c0_6 = arith.constant 0 : index
    %c0_7 = arith.constant 0 : index
    %5 = vector.load %arg2[%c0_6, %c0_7] : memref<20x128xbf16, #tpu.memory_space<vmem>>, vector<20x128xbf16>
    %cst = arith.constant dense<0.000000e+00> : vector<96x128xf32>
    %6 = tpu.matmul %4, %5, %cst {dimension_numbers = #tpu.dot_dimension_numbers<[1], [0], [0], [1], [0, 0, 1, 1], [], []>} : vector<96x20xbf16>, vector<20x128xbf16>, vector<96x128xf32> -> vector<96x128xf32>
    %7 = vector.broadcast %0 : vector<1x128xf32> to vector<96x128xf32>
    %8 = arith.addf %6, %7 : vector<96x128xf32>
    %cst_8 = arith.constant 0.000000e+00 : f32
    %9 = vector.broadcast %cst_8 : f32 to vector<96x128xf32>
    %10 = arith.maximumf %8, %9 : vector<96x128xf32>
    %11 = arith.truncf %10 : vector<96x128xf32> to vector<96x128xbf16>
    %12 = vector.extract_strided_slice %11 {offsets = [0, 0], sizes = [64, 128], strides = [1, 1]} : vector<96x128xbf16> to vector<64x128xbf16>
    %c0_9 = arith.constant 0 : index
    %c0_10 = arith.constant 0 : index
    %c0_11 = arith.constant 0 : index
    %13 = vector.load %arg3[%c0_9, %c0_10, %c0_11] : memref<5x128x128xbf16, #tpu.memory_space<vmem>>, vector<1x128x128xbf16>
    %14 = vector.shape_cast %13 : vector<1x128x128xbf16> to vector<128x128xbf16>
    %cst_12 = arith.constant dense<0.000000e+00> : vector<64x128xf32>
    %15 = tpu.matmul %12, %14, %cst_12 {dimension_numbers = #tpu.dot_dimension_numbers<[1], [0], [0], [1], [0, 0, 1, 1], [], []>} : vector<64x128xbf16>, vector<128x128xbf16>, vector<64x128xf32> -> vector<64x128xf32>
    %16 = vector.extract_strided_slice %11 {offsets = [8, 0], sizes = [64, 128], strides = [1, 1]} : vector<96x128xbf16> to vector<64x128xbf16>
    %c1 = arith.constant 1 : index
    %c0_13 = arith.constant 0 : index
    %c0_14 = arith.constant 0 : index
    %17 = vector.load %arg3[%c1, %c0_13, %c0_14] : memref<5x128x128xbf16, #tpu.memory_space<vmem>>, vector<1x128x128xbf16>
    %18 = vector.shape_cast %17 : vector<1x128x128xbf16> to vector<128x128xbf16>
    %cst_15 = arith.constant dense<0.000000e+00> : vector<64x128xf32>
    %19 = tpu.matmul %16, %18, %cst_15 {dimension_numbers = #tpu.dot_dimension_numbers<[1], [0], [0], [1], [0, 0, 1, 1], [], []>} : vector<64x128xbf16>, vector<128x128xbf16>, vector<64x128xf32> -> vector<64x128xf32>
    %20 = arith.addf %15, %19 : vector<64x128xf32>
    %21 = vector.extract_strided_slice %11 {offsets = [16, 0], sizes = [64, 128], strides = [1, 1]} : vector<96x128xbf16> to vector<64x128xbf16>
    %c2 = arith.constant 2 : index
    %c0_16 = arith.constant 0 : index
    %c0_17 = arith.constant 0 : index
    %22 = vector.load %arg3[%c2, %c0_16, %c0_17] : memref<5x128x128xbf16, #tpu.memory_space<vmem>>, vector<1x128x128xbf16>
    %23 = vector.shape_cast %22 : vector<1x128x128xbf16> to vector<128x128xbf16>
    %cst_18 = arith.constant dense<0.000000e+00> : vector<64x128xf32>
    %24 = tpu.matmul %21, %23, %cst_18 {dimension_numbers = #tpu.dot_dimension_numbers<[1], [0], [0], [1], [0, 0, 1, 1], [], []>} : vector<64x128xbf16>, vector<128x128xbf16>, vector<64x128xf32> -> vector<64x128xf32>
    %25 = arith.addf %20, %24 : vector<64x128xf32>
    %26 = vector.extract_strided_slice %11 {offsets = [24, 0], sizes = [64, 128], strides = [1, 1]} : vector<96x128xbf16> to vector<64x128xbf16>
    %c3 = arith.constant 3 : index
    %c0_19 = arith.constant 0 : index
    %c0_20 = arith.constant 0 : index
    %27 = vector.load %arg3[%c3, %c0_19, %c0_20] : memref<5x128x128xbf16, #tpu.memory_space<vmem>>, vector<1x128x128xbf16>
    %28 = vector.shape_cast %27 : vector<1x128x128xbf16> to vector<128x128xbf16>
    %cst_21 = arith.constant dense<0.000000e+00> : vector<64x128xf32>
    %29 = tpu.matmul %26, %28, %cst_21 {dimension_numbers = #tpu.dot_dimension_numbers<[1], [0], [0], [1], [0, 0, 1, 1], [], []>} : vector<64x128xbf16>, vector<128x128xbf16>, vector<64x128xf32> -> vector<64x128xf32>
    %30 = arith.addf %25, %29 : vector<64x128xf32>
    %31 = vector.extract_strided_slice %11 {offsets = [32, 0], sizes = [64, 128], strides = [1, 1]} : vector<96x128xbf16> to vector<64x128xbf16>
    %c4 = arith.constant 4 : index
    %c0_22 = arith.constant 0 : index
    %c0_23 = arith.constant 0 : index
    %32 = vector.load %arg3[%c4, %c0_22, %c0_23] : memref<5x128x128xbf16, #tpu.memory_space<vmem>>, vector<1x128x128xbf16>
    %33 = vector.shape_cast %32 : vector<1x128x128xbf16> to vector<128x128xbf16>
    %cst_24 = arith.constant dense<0.000000e+00> : vector<64x128xf32>
    %34 = tpu.matmul %31, %33, %cst_24 {dimension_numbers = #tpu.dot_dimension_numbers<[1], [0], [0], [1], [0, 0, 1, 1], [], []>} : vector<64x128xbf16>, vector<128x128xbf16>, vector<64x128xf32> -> vector<64x128xf32>
    %35 = arith.addf %30, %34 : vector<64x128xf32>
    %36 = vector.broadcast %1 : vector<1x128xf32> to vector<64x128xf32>
    %37 = arith.addf %35, %36 : vector<64x128xf32>
    %cst_25 = arith.constant 0.000000e+00 : f32
    %38 = vector.broadcast %cst_25 : f32 to vector<64x128xf32>
    %39 = arith.maximumf %37, %38 : vector<64x128xf32>
    %40 = arith.truncf %39 : vector<64x128xf32> to vector<64x128xbf16>
    %41 = vector.extract_strided_slice %40 {offsets = [0, 0], sizes = [8, 128], strides = [1, 1]} : vector<64x128xbf16> to vector<8x128xbf16>
    %c0_26 = arith.constant 0 : index
    %c0_27 = arith.constant 0 : index
    %c0_28 = arith.constant 0 : index
    %42 = vector.load %arg4[%c0_26, %c0_27, %c0_28] : memref<8x128x1024xbf16, #tpu.memory_space<vmem>>, vector<1x128x1024xbf16>
    %43 = vector.shape_cast %42 : vector<1x128x1024xbf16> to vector<128x1024xbf16>
    %cst_29 = arith.constant dense<0.000000e+00> : vector<8x1024xf32>
    %44 = tpu.matmul %41, %43, %cst_29 {dimension_numbers = #tpu.dot_dimension_numbers<[1], [0], [0], [1], [0, 0, 1, 1], [], []>} : vector<8x128xbf16>, vector<128x1024xbf16>, vector<8x1024xf32> -> vector<8x1024xf32>
    %45 = vector.extract_strided_slice %40 {offsets = [8, 0], sizes = [8, 128], strides = [1, 1]} : vector<64x128xbf16> to vector<8x128xbf16>
    %c1_30 = arith.constant 1 : index
    %c0_31 = arith.constant 0 : index
    %c0_32 = arith.constant 0 : index
    %46 = vector.load %arg4[%c1_30, %c0_31, %c0_32] : memref<8x128x1024xbf16, #tpu.memory_space<vmem>>, vector<1x128x1024xbf16>
    %47 = vector.shape_cast %46 : vector<1x128x1024xbf16> to vector<128x1024xbf16>
    %cst_33 = arith.constant dense<0.000000e+00> : vector<8x1024xf32>
    %48 = tpu.matmul %45, %47, %cst_33 {dimension_numbers = #tpu.dot_dimension_numbers<[1], [0], [0], [1], [0, 0, 1, 1], [], []>} : vector<8x128xbf16>, vector<128x1024xbf16>, vector<8x1024xf32> -> vector<8x1024xf32>
    %49 = arith.addf %44, %48 : vector<8x1024xf32>
    %50 = vector.extract_strided_slice %40 {offsets = [16, 0], sizes = [8, 128], strides = [1, 1]} : vector<64x128xbf16> to vector<8x128xbf16>
    %c2_34 = arith.constant 2 : index
    %c0_35 = arith.constant 0 : index
    %c0_36 = arith.constant 0 : index
    %51 = vector.load %arg4[%c2_34, %c0_35, %c0_36] : memref<8x128x1024xbf16, #tpu.memory_space<vmem>>, vector<1x128x1024xbf16>
    %52 = vector.shape_cast %51 : vector<1x128x1024xbf16> to vector<128x1024xbf16>
    %cst_37 = arith.constant dense<0.000000e+00> : vector<8x1024xf32>
    %53 = tpu.matmul %50, %52, %cst_37 {dimension_numbers = #tpu.dot_dimension_numbers<[1], [0], [0], [1], [0, 0, 1, 1], [], []>} : vector<8x128xbf16>, vector<128x1024xbf16>, vector<8x1024xf32> -> vector<8x1024xf32>
    %54 = arith.addf %49, %53 : vector<8x1024xf32>
    %55 = vector.extract_strided_slice %40 {offsets = [24, 0], sizes = [8, 128], strides = [1, 1]} : vector<64x128xbf16> to vector<8x128xbf16>
    %c3_38 = arith.constant 3 : index
    %c0_39 = arith.constant 0 : index
    %c0_40 = arith.constant 0 : index
    %56 = vector.load %arg4[%c3_38, %c0_39, %c0_40] : memref<8x128x1024xbf16, #tpu.memory_space<vmem>>, vector<1x128x1024xbf16>
    %57 = vector.shape_cast %56 : vector<1x128x1024xbf16> to vector<128x1024xbf16>
    %cst_41 = arith.constant dense<0.000000e+00> : vector<8x1024xf32>
    %58 = tpu.matmul %55, %57, %cst_41 {dimension_numbers = #tpu.dot_dimension_numbers<[1], [0], [0], [1], [0, 0, 1, 1], [], []>} : vector<8x128xbf16>, vector<128x1024xbf16>, vector<8x1024xf32> -> vector<8x1024xf32>
    %59 = arith.addf %54, %58 : vector<8x1024xf32>
    %60 = vector.extract_strided_slice %40 {offsets = [32, 0], sizes = [8, 128], strides = [1, 1]} : vector<64x128xbf16> to vector<8x128xbf16>
    %c4_42 = arith.constant 4 : index
    %c0_43 = arith.constant 0 : index
    %c0_44 = arith.constant 0 : index
    %61 = vector.load %arg4[%c4_42, %c0_43, %c0_44] : memref<8x128x1024xbf16, #tpu.memory_space<vmem>>, vector<1x128x1024xbf16>
    %62 = vector.shape_cast %61 : vector<1x128x1024xbf16> to vector<128x1024xbf16>
    %cst_45 = arith.constant dense<0.000000e+00> : vector<8x1024xf32>
    %63 = tpu.matmul %60, %62, %cst_45 {dimension_numbers = #tpu.dot_dimension_numbers<[1], [0], [0], [1], [0, 0, 1, 1], [], []>} : vector<8x128xbf16>, vector<128x1024xbf16>, vector<8x1024xf32> -> vector<8x1024xf32>
    %64 = arith.addf %59, %63 : vector<8x1024xf32>
    %65 = vector.extract_strided_slice %40 {offsets = [40, 0], sizes = [8, 128], strides = [1, 1]} : vector<64x128xbf16> to vector<8x128xbf16>
    %c5 = arith.constant 5 : index
    %c0_46 = arith.constant 0 : index
    %c0_47 = arith.constant 0 : index
    %66 = vector.load %arg4[%c5, %c0_46, %c0_47] : memref<8x128x1024xbf16, #tpu.memory_space<vmem>>, vector<1x128x1024xbf16>
    %67 = vector.shape_cast %66 : vector<1x128x1024xbf16> to vector<128x1024xbf16>
    %cst_48 = arith.constant dense<0.000000e+00> : vector<8x1024xf32>
    %68 = tpu.matmul %65, %67, %cst_48 {dimension_numbers = #tpu.dot_dimension_numbers<[1], [0], [0], [1], [0, 0, 1, 1], [], []>} : vector<8x128xbf16>, vector<128x1024xbf16>, vector<8x1024xf32> -> vector<8x1024xf32>
    %69 = arith.addf %64, %68 : vector<8x1024xf32>
    %70 = vector.extract_strided_slice %40 {offsets = [48, 0], sizes = [8, 128], strides = [1, 1]} : vector<64x128xbf16> to vector<8x128xbf16>
    %c6 = arith.constant 6 : index
    %c0_49 = arith.constant 0 : index
    %c0_50 = arith.constant 0 : index
    %71 = vector.load %arg4[%c6, %c0_49, %c0_50] : memref<8x128x1024xbf16, #tpu.memory_space<vmem>>, vector<1x128x1024xbf16>
    %72 = vector.shape_cast %71 : vector<1x128x1024xbf16> to vector<128x1024xbf16>
    %cst_51 = arith.constant dense<0.000000e+00> : vector<8x1024xf32>
    %73 = tpu.matmul %70, %72, %cst_51 {dimension_numbers = #tpu.dot_dimension_numbers<[1], [0], [0], [1], [0, 0, 1, 1], [], []>} : vector<8x128xbf16>, vector<128x1024xbf16>, vector<8x1024xf32> -> vector<8x1024xf32>
    %74 = arith.addf %69, %73 : vector<8x1024xf32>
    %75 = vector.extract_strided_slice %40 {offsets = [56, 0], sizes = [8, 128], strides = [1, 1]} : vector<64x128xbf16> to vector<8x128xbf16>
    %c7 = arith.constant 7 : index
    %c0_52 = arith.constant 0 : index
    %c0_53 = arith.constant 0 : index
    %76 = vector.load %arg4[%c7, %c0_52, %c0_53] : memref<8x128x1024xbf16, #tpu.memory_space<vmem>>, vector<1x128x1024xbf16>
    %77 = vector.shape_cast %76 : vector<1x128x1024xbf16> to vector<128x1024xbf16>
    %cst_54 = arith.constant dense<0.000000e+00> : vector<8x1024xf32>
    %78 = tpu.matmul %75, %77, %cst_54 {dimension_numbers = #tpu.dot_dimension_numbers<[1], [0], [0], [1], [0, 0, 1, 1], [], []>} : vector<8x128xbf16>, vector<128x1024xbf16>, vector<8x1024xf32> -> vector<8x1024xf32>
    %79 = arith.addf %74, %78 : vector<8x1024xf32>
    %80 = vector.broadcast %2 : vector<1x1024xf32> to vector<8x1024xf32>
    %81 = arith.addf %79, %80 : vector<8x1024xf32>
    %cst_55 = arith.constant 0.000000e+00 : f32
    %82 = vector.broadcast %cst_55 : f32 to vector<8x1024xf32>
    %83 = arith.maximumf %81, %82 : vector<8x1024xf32>
    %84 = arith.truncf %83 : vector<8x1024xf32> to vector<8x1024xbf16>
    %c0_56 = arith.constant 0 : index
    %c0_57 = arith.constant 0 : index
    %85 = vector.load %arg5[%c0_56, %c0_57] : memref<1024x128xbf16, #tpu.memory_space<vmem>>, vector<1024x128xbf16>
    %cst_58 = arith.constant dense<0.000000e+00> : vector<8x128xf32>
    %86 = tpu.matmul %84, %85, %cst_58 {dimension_numbers = #tpu.dot_dimension_numbers<[1], [0], [0], [1], [0, 0, 1, 1], [], []>} : vector<8x1024xbf16>, vector<1024x128xbf16>, vector<8x128xf32> -> vector<8x128xf32>
    %87 = vector.broadcast %3 : vector<1x128xf32> to vector<8x128xf32>
    %88 = arith.addf %86, %87 : vector<8x128xf32>
    %89 = vector.extract_strided_slice %88 {offsets = [0, 0], sizes = [8, 1], strides = [1, 1]} : vector<8x128xf32> to vector<8x1xf32>
    %90 = vector.extract_strided_slice %88 {offsets = [0, 1], sizes = [8, 3], strides = [1, 1]} : vector<8x128xf32> to vector<8x3xf32>
    %cst_59 = arith.constant dense<0.000000e+00> : vector<8xf32>
    %91 = vector.multi_reduction <add>, %90, %cst_59 [1] : vector<8x3xf32> to vector<8xf32>
    %92 = vector.shape_cast %91 : vector<8xf32> to vector<8x1xf32>
    %cst_60 = arith.constant 3.000000e+00 : f32
    %93 = vector.broadcast %cst_60 : f32 to vector<8x1xf32>
    %94 = arith.divf %92, %93 : vector<8x1xf32>
    %95 = arith.subf %89, %94 : vector<8x1xf32>
    %96 = vector.broadcast %95 : vector<8x1xf32> to vector<8x128xf32>
    %97 = arith.addf %88, %96 : vector<8x128xf32>
    %c0_61 = arith.constant 0 : index
    %c0_62 = arith.constant 0 : index
    %98 = vector.load %arg7[%c0_61, %c0_62] : memref<8x128xf32, #tpu.memory_space<vmem>>, vector<8x128xf32>
    tpu.vector_store %arg7[%c0_61, %c0_62], %97 {strides = array<i32>} : memref<8x128xf32, #tpu.memory_space<vmem>>, vector<8x128xf32>,
    return
  }
  func.func @transform_0(%arg0: i32) -> (i32, i32) {
    %c0_i32 = arith.constant 0 : i32
    %c0_i32_0 = arith.constant 0 : i32
    return %arg0, %c0_i32 : i32, i32
  }
  func.func @transform_1(%arg0: i32) -> (i32, i32) {
    %c0_i32 = arith.constant 0 : i32
    %c0_i32_0 = arith.constant 0 : i32
    %c0_i32_1 = arith.constant 0 : i32
    return %c0_i32, %c0_i32_0 : i32, i32
  }
  func.func @transform_2(%arg0: i32) -> (i32, i32, i32) {
    %c0_i32 = arith.constant 0 : i32
    %c0_i32_0 = arith.constant 0 : i32
    %c0_i32_1 = arith.constant 0 : i32
    %c0_i32_2 = arith.constant 0 : i32
    return %c0_i32, %c0_i32_0, %c0_i32_1 : i32, i32, i32
  }
  func.func @transform_3(%arg0: i32) -> (i32, i32, i32) {
    %c0_i32 = arith.constant 0 : i32
    %c0_i32_0 = arith.constant 0 : i32
    %c0_i32_1 = arith.constant 0 : i32
    %c0_i32_2 = arith.constant 0 : i32
    return %c0_i32, %c0_i32_0, %c0_i32_1 : i32, i32, i32
  }
  func.func @transform_4(%arg0: i32) -> (i32, i32) {
    %c0_i32 = arith.constant 0 : i32
    %c0_i32_0 = arith.constant 0 : i32
    %c0_i32_1 = arith.constant 0 : i32
    return %c0_i32, %c0_i32_0 : i32, i32
  }
  func.func @transform_5(%arg0: i32) -> (i32, i32) {
    %c0_i32 = arith.constant 0 : i32
    %c0_i32_0 = arith.constant 0 : i32
    %c0_i32_1 = arith.constant 0 : i32
    return %c0_i32, %c0_i32_0 : i32, i32
  }
  func.func @transform_6(%arg0: i32) -> (i32, i32) {
    %c0_i32 = arith.constant 0 : i32
    %c0_i32_0 = arith.constant 0 : i32
    return %arg0, %c0_i32 : i32, i32
  }
}

</mosaic_0001>

<bundles_post_ra>
// kernel: custom-call
= control target key start
LH: loop header
LB: loop body
LE: loop exit
PB: predicated region body
PF: predicated region fallthrough
CT: control target
= control target key end

     0   :  { %s6_s0 = inlined_call_operand.vmem [shape: f32[1408], index: 0, kind: output, shape index: {}]  }

// kernel: dqn_conv1d_forward.1
= control target key start
LH: loop header
LB: loop body
LE: loop exit
PB: predicated region body
PF: predicated region fallthrough
CT: control target
= control target key end

     0   :  { %s8074_s21 = smov 0   ;;  %s10264_s0 = inlined_call_operand.vmem [shape: bf16[192,20], index: 0, kind: input, shape index: {}]   ;;  %s10265_s1 = inlined_call_operand.vmem [shape: bf16[20,128], index: 1, kind: input, shape index: {}]   ;;  %s10266_s2 = inlined_call_operand.vmem [shape: bf16[5,128,128], index: 2, kind: input, shape index: {}]   ;;  %s10267_s3 = inlined_call_operand.vmem [shape: bf16[8,128,1024], index: 3, kind: input, shape index: {}]   ;;  %s10268_s4 = inlined_call_operand.vmem [shape: bf16[1024,128], index: 4, kind: input, shape index: {}]   ;;  %s10269_s5 = inlined_call_operand.vmem [shape: f32[1,1408], index: 5, kind: input, shape index: {}]   ;;  %s10270_s6 = inlined_call_operand.vmem [shape: f32[16,128], index: 6, kind: output, shape index: {}]  }
   0x1 LB: > { %s8080_s22 = sadd.s32 4294967295, %s8035_s21   ;;  %p6430_p0 = scmp.ge.s32.totalorder %s8035_s21, 1  ;;  %s8035_s21 = sphi %s8074_s21, %s16_s21  }
   0x2   : > { %p213_p1 = scmp.lt.s32.totalorder %s8035_s21, 3 }
   0x4   : > { %p214_p2 = pnand %p6430_p0, %p213_p1 }
   0x5   : > { %v7917_v0 = vld [vmem:[%s10265_s1] sm:$0xff] (!%p214_p2)   ;;  %vm336_vm0 = vcmask (!%p214_p2), 1041408   ;;  %v7918_v1 = vld [vmem:[%s10265_s1 + $0x8] ss:$0 sps:$4 sm:$0x33] (!%p214_p2)   ;;  %s242_s27 = smul.u32 (!%p214_p2), 12, %s8080_s22 }
   0x6   : > { %217 = sbr.rel (%p214_p2) target bundleno = 1979 (0x7bb), region = 44  ;;  %7736 = vmatprep.subr.bf16.mxu0 (!%p214_p2), %v7917_v0  ;;  %v7925_v2 = vld [vmem:[%s10266_s2 + $0x40] sm:$0xff] (!%p214_p2)   ;;  %v338_v3 = vsel (!%p214_p2), %vm336_vm0, %v7918_v1, 0  ;;  %v7926_v4 = vld [vmem:[%s10266_s2 + $0x48] sm:$0xff] (!%p214_p2)   ;;  %v7927_v5 = vld [vmem:[%s10266_s2 + $0x50] sm:$0xff] (!%p214_p2)   ;;  %vm317_vm1 = vcmask (!%p214_p2), 162816  }
   0x7   : > { %7737 = vmatpush3.bf16.msra.mxu0 (!%p214_p2), %v7917_v0  ;;  %p243_p3 = scmp.lt.s32.totalorder (!%p214_p2), %s242_s27, 23  ;;  %7752 = vmatprep.subr.bf16.mxu1 (!%p214_p2), %v7925_v2  ;;  %v7928_v12 = vld [vmem:[%s10266_s2 + $0x58] sm:$0xff] (!%p214_p2)   ;;  %v7929_v13 = vld [vmem:[%s10266_s2 + $0x60] sm:$0xff] (!%p214_p2)   ;;  %v7930_v14 = vld [vmem:[%s10266_s2 + $0x68] sm:$0xff] (!%p214_p2)   ;;  %vm477_vm2 = vcmask (!%p214_p2), 1043456   ;;  %s8038_s16 = smov (!%p214_p2), 127  }
   0x8   : > { %7904 = vmatprep.subr.msk.bf16.mxu0 (!%p214_p2), %vm336_vm0, %v7918_v1  ;;  %7753 = vmatpush3.bf16.msra.mxu1 (!%p214_p2), %v7925_v2  ;;  %v7931_v15 = vld [vmem:[%s10266_s2 + $0x70] sm:$0xff] (!%p214_p2)   ;;  %v7932_v16 = vld [vmem:[%s10266_s2 + $0x78] sm:$0xff] (!%p214_p2)   ;;  %v7933_v17 = vld [vmem:[%s10266_s2] sm:$0xff] (!%p214_p2)   ;;  %vm6359_vm3 = vcmask (!%p214_p2), 23552   ;;  %p248_p4 = scmp.lt.s32.totalorder (!%p214_p2), %s8080_s22, 1 }
   0x9   : > { %7754 = vmatprep.subr.bf16.mxu1 (!%p214_p2), %v7926_v4  ;;  %v6433_v18 = vld [vmem:[%s10269_s5] ss:$0 sm:$0xff] (!%p214_p2)  ;;  %v7934_v60 = vld [vmem:[%s10266_s2 + $0x8] sm:$0xff] (!%p214_p2)  }
   0xb   : > { %7739 = vmatpush3.bf16.msra.mxu0 (!%p214_p2), %v338_v3 }
   0xc   : > { %7755 = vmatpush3.bf16.msra.mxu1 (!%p214_p2), %v7926_v4  ;;  %v7935_v4 = vld [vmem:[%s10266_s2 + $0x10] sm:$0xff] (!%p214_p2)  }
   0xd   : > { %s10272_s27 = smov (!%p243_p3, %s242_s27), 23  ;;  %7756 = vmatprep.subr.bf16.mxu1 %v7927_v5  ;;  %s10274_s22 = smov (!%p248_p4, %s8080_s22), 1 }
   0xe   : > { %s6431_s10 = sshll.u32 %s10272_s27, 2  ;;  %s6432_s17 = sshll.u32 %s10274_s22, 3 }
   0xf   : > { %s246_s13 = scalar_lea.vmem %s10264_s0, %s6431_s10  ;;  %s251_s20 = scalar_lea.vmem %s10270_s6, %s6432_s17 }
  0x10   : > { %v7919_v6 = vld [vmem:[%s246_s13] sm:$0xff]   ;;  %v7920_v7 = vld [vmem:[%s246_s13 + $0x8] sm:$0xff]   ;;  %v7921_v8 = vld [vmem:[%s246_s13 + $0x10] sm:$0xff]   ;;  %7757 = vmatpush3.bf16.msra.mxu1 %v7927_v5 }
  0x11   : > { %7740 = vmatprep.mubr.msk.bf16.mxu0 %vm317_vm1, %v7919_v6  ;;  %v7922_v9 = vld [vmem:[%s246_s13 + $0x18] sm:$0xff]   ;;  %v7923_v10 = vld [vmem:[%s246_s13 + $0x20] sm:$0xff]   ;;  %v7924_v11 = vld [vmem:[%s246_s13 + $0x28] sm:$0xff]   ;;  %7758 = vmatprep.subr.bf16.mxu1 %v7928_v12 }
  0x12   : > { %7741 = vmatmul.mubr.msk.bf16.vlgmr.msra.gmra.mrb[0].mxu0 %vm317_vm1, %v7920_v7 }
  0x13   : > { %7744 = vmatprep.mubr.msk.bf16.mxu0 %vm317_vm1, %v7921_v8  ;;  %v7936_v8 = vld [vmem:[%s10266_s2 + $0x18] sm:$0xff]  }
  0x14   : > { %7759 = vmatpush3.bf16.msra.mxu1 %v7928_v12  ;;  %v6557_v12 = vld [vmem:[%s10267_s3 + $0x220] sm:$0xff] }
  0x15   : > { %7760 = vmatprep.subr.bf16.mxu1 %v7929_v13 }
  0x18   : > { %7761 = vmatpush3.bf16.msra.mxu1 %v7929_v13  ;;  %v7937_v13 = vld [vmem:[%s10266_s2 + $0x20] sm:$0xff]  }
  0x19   : > { %7762 = vmatprep.subr.bf16.mxu1 %v7930_v14 }
  0x1a   : > { %7745 = vmatmul.mubr.msk.bf16.gmra.mrb[4].mxu0 %vm317_vm1, %v7922_v9 }
  0x1b   : > { %7748 = vmatprep.mubr.msk.bf16.mxu0 %vm317_vm1, %v7923_v10 }
  0x1c   : > { %7763 = vmatpush3.bf16.msra.mxu1 %v7930_v14 }
  0x1d   : > { %7764 = vmatprep.subr.bf16.mxu1 %v7931_v15 }
  0x20   : > { %7765 = vmatpush3.bf16.msra.mxu1 %v7931_v15 }
  0x21   : > { %7766 = vmatprep.subr.bf16.mxu1 %v7932_v16 }
  0x22   : > { %7749 = vmatmul.mubr.msk.bf16.gmra.mrb[8].mxu0 %vm317_vm1, %v7924_v11  ;;  %v6553_v11 = vld [vmem:[%s10267_s3 + $0x200] sm:$0xff] }
  0x23   : > { %v6617_v14 = vcombine.low %v6553_v11, %v6557_v12  ;;  %v6618_v15 = vcombine.high %v6553_v11, %v6557_v12 }
  0x24   : > { %7767 = vmatpush3.bf16.msra.mxu1 %v7932_v16  ;;  %v6561_v16 = vld [vmem:[%s10267_s3 + $0x240] sm:$0xff] }
  0x25   : > { %7776 = vmatprep.subr.bf16.mxu1 %v7933_v17  ;;  %1613 = vmatprep.subr.bf16.mxu0 %v6618_v15 }
  0x26   : > { %1614 = vmatpush1.bf16.msra.mxu0 %v6617_v14  ;;  %v1190_v14 = vld [vmem:[%s10267_s3 + $0xe8] sm:$0xff] }
  0xe5   : > { %v7742_v19 = vpop.f32.mrb[0].mxu0 }
  0xe6   : > { %v383_v20 = vadd.f32 %v7742_v19, %v6433_v18  ;;  %v374_v21 = vpop.f32.mrb[1].mxu0  ;;  %v6569_v19 = vld [vmem:[%s10267_s3 + $0x280] sm:$0xff] }
  0xe7   : > { %v375_v22 = vadd.f32 %v6433_v18, %v374_v21  ;;  %v7743_v23 = vpop.f32.mrb[2].mxu0 }
  0xe8   : > { %v386_v24 = vadd.f32 %v7743_v23, %v6433_v18  ;;  %v377_v25 = vpop.f32.mrb[3].mxu0  ;;  %v423_v27 = vmax.f32 %v383_v20, 0.0  ;;  %v6573_v20 = vld [vmem:[%s10267_s3 + $0x2a0] sm:$0xff] }
  0xe9   : > { %v378_v26 = vadd.f32 %v6433_v18, %v377_v25  ;;  %v421_v29 = vmax.f32 %v375_v22, 0.0  ;;  %v7938_v22 = vld [vmem:[%s10266_s2 + $0x28] sm:$0xff]   ;;  %v6634_v23 = vcombine.high %v6569_v19, %v6573_v20  ;;  %v6581_v25 = vld [vmem:[%s10267_s3 + $0x2e0] sm:$0xff] }
  0xea   : > { %v424_v28 = vmax.f32 %v386_v24, 0.0  ;;  %v6577_v24 = vld [vmem:[%s10267_s3 + $0x2c0] sm:$0xff] }
  0xeb   : > { %v422_v30 = vmax.f32 %v378_v26, 0.0  ;;  %v6633_v26 = vcombine.low %v6569_v19, %v6573_v20  ;;  %v1202_v19 = vld [vmem:[%s10267_s3 + $0x148] sm:$0xff] }
  0xec   : > { %v8130_v31 = vpack.c.bf16 %v424_v28, %v423_v27  ;;  %v7939_v27 = vld [vmem:[%s10266_s2 + $0x30] sm:$0xff]   ;;  %v6642_v28 = vcombine.high %v6577_v24, %v6581_v25  ;;  %v1206_v20 = vld [vmem:[%s10267_s3 + $0x168] sm:$0xff] }
  0xed   : > { %v433_v32 = vpack.c.bf16 %v422_v30, %v421_v29  ;;  %v7746_v33 = vpop.f32.mrb[4].mxu0  ;;  %v6585_v29 = vld [vmem:[%s10267_s3 + $0x300] sm:$0xff] }
  0xee   : > { %v399_v34 = vadd.f32 %v7746_v33, %v6433_v18  ;;  %v390_v35 = vpop.f32.mrb[5].mxu0  ;;  %v479_v36 = vrot.slane %v8130_v31, 4  ;;  %v6589_v30 = vld [vmem:[%s10267_s3 + $0x320] sm:$0xff]  ;;  %v7940_v33 = vld [vmem:[%s10266_s2 + $0x38] sm:$0xff]  }
  0xef   : > { %v391_v37 = vadd.f32 %v6433_v18, %v390_v35  ;;  %v7747_v38 = vpop.f32.mrb[6].mxu0  ;;  %v478_v39 = vrot.slane %v433_v32, 4  ;;  %v6593_v35 = vld [vmem:[%s10267_s3 + $0x340] sm:$0xff] }
  0xf0   : > { %v402_v40 = vadd.f32 %v7747_v38, %v6433_v18  ;;  %v393_v41 = vpop.f32.mrb[7].mxu0  ;;  %v427_v44 = vmax.f32 %v399_v34, 0.0  ;;  %v6650_v34 = vcombine.high %v6585_v29, %v6589_v30  ;;  %v7941_v38 = vld [vmem:[%s10266_s2 + $0x80] sm:$0xff]  }
  0xf1   : > { %v394_v42 = vadd.f32 %v6433_v18, %v393_v41  ;;  %v480_v43 = vsel %vm477_vm2, %v478_v39, %v479_v36  ;;  %v425_v46 = vmax.f32 %v391_v37, 0.0  ;;  %v6649_v37 = vcombine.low %v6585_v29, %v6589_v30 }
  0xf2   : > { %v428_v45 = vmax.f32 %v402_v40, 0.0  ;;  %7768 = vmatprep.mubr.bf16.mxu1 %v480_v43  ;;  %v7942_v40 = vld [vmem:[%s10266_s2 + $0x88] sm:$0xff]   ;;  %v7944_v43 = vld [vmem:[%s10266_s2 + $0x98] sm:$0xff]  }
  0xf3   : > { %v426_v47 = vmax.f32 %v394_v42, 0.0  ;;  %v7943_v42 = vld [vmem:[%s10266_s2 + $0x90] sm:$0xff]  }
  0xf4   : > { %v8134_v48 = vpack.c.bf16 %v428_v45, %v427_v44  ;;  %v7945_v44 = vld [vmem:[%s10266_s2 + $0xa0] sm:$0xff]   ;;  %v7946_v45 = vld [vmem:[%s10266_s2 + $0xa8] sm:$0xff]  }
  0xf5   : > { %v8136_v49 = vpack.c.bf16 %v426_v47, %v425_v46  ;;  %v7750_v50 = vpop.f32.mrb[8].mxu0  ;;  %v7947_v46 = vld [vmem:[%s10266_s2 + $0xb0] sm:$0xff]   ;;  %v7949_v47 = vld [vmem:[%s10266_s2 + $0xc0] sm:$0xff]  }
  0xf6   : > { %v415_v51 = vadd.f32 %v7750_v50, %v6433_v18  ;;  %v406_v52 = vpop.f32.mrb[9].mxu0  ;;  %v483_v53 = vrot.slane %v8134_v48, 4  ;;  %v7950_v50 = vld [vmem:[%s10266_s2 + $0xc8] sm:$0xff]  }
  0xf7   : > { %v407_v54 = vadd.f32 %v6433_v18, %v406_v52  ;;  %v7751_v55 = vpop.f32.mrb[10].mxu0  ;;  %v481_v56 = vrot.slane %v8136_v49, 4  ;;  %v7952_v52 = vld [vmem:[%s10266_s2 + $0xd8] sm:$0xff]  }
  0xf8   : > { %v431_v57 = vmax.f32 %v415_v51, 0.0  ;;  %v418_v58 = vadd.f32 %v7751_v55, %v6433_v18  ;;  %v409_v59 = vpop.f32.mrb[11].mxu0  ;;  %v7951_v51 = vld [vmem:[%s10266_s2 + $0xd0] sm:$0xff]  }
  0xf9   : > { %v429_v61 = vmax.f32 %v407_v54, 0.0  ;;  %v410_v62 = vadd.f32 %v6433_v18, %v409_v59  ;;  %v8144_v63 = vsel %vm477_vm2, %v479_v36, %v481_v56  ;;  %v8147_v0 = vsel %vm477_vm2, %v481_v56, %v483_v53  ;;  %v6597_v36 = vld [vmem:[%s10267_s3 + $0x360] sm:$0xff]  ;;  %v7954_v54 = vld [vmem:[%s10266_s2 + $0xe8] sm:$0xff]   ;;  %v7955_v55 = vld [vmem:[%s10266_s2 + $0xf0] sm:$0xff]  }
  0xfa   : > { %v432_v1 = vmax.f32 %v418_v58, 0.0  ;;  %7769 = vmatmul.mubr.bf16.vlgmr.msra.gmra.mrb[0].mxu1 %v8144_v63  ;;  %v6658_v39 = vcombine.high %v6593_v35, %v6597_v36  ;;  %v6657_v41 = vcombine.low %v6593_v35, %v6597_v36  ;;  %v7956_v56 = vld [vmem:[%s10266_s2 + $0xf8] sm:$0xff]   ;;  %v7958_v58 = vld [vmem:[%s10266_s2 + $0x108] sm:$0xff]   ;;  %v7959_v59 = vld [vmem:[%s10266_s2 + $0x110] sm:$0xff]  }
  0xfb   : > { %v430_v2 = vmax.f32 %v410_v62, 0.0  ;;  %7777 = vmatpush3.bf16.msra.mxu1 %v7933_v17  ;;  %7772 = vmatprep.mubr.bf16.mxu1 %v8147_v0  ;;  %v6565_v17 = vld [vmem:[%s10267_s3 + $0x260] sm:$0xff]  ;;  %v7962_v62 = vld [vmem:[%s10266_s2 + $0x128] sm:$0xff]  }
  0xfc   : > { %v8151_v3 = vpack.c.bf16 %v432_v1, %v431_v57  ;;  %7778 = vmatprep.subr.bf16.mxu1 %v7934_v60  ;;  %v6626_v18 = vcombine.high %v6561_v16, %v6565_v17  ;;  %v6625_v21 = vcombine.low %v6561_v16, %v6565_v17  ;;  %v7957_v57 = vld [vmem:[%s10266_s2 + $0x100] sm:$0xff]   ;;  %v1166_v1 = vld [vmem:[%s10267_s3 + $0x28] sm:$0xff] }
  0xfd   : > { %v8156_v5 = vpack.c.bf16 %v430_v2, %v429_v61  ;;  %v7961_v61 = vld [vmem:[%s10266_s2 + $0x120] sm:$0xff]  }
  0xfe   : > { %v873_v6 = vrot.slane %v8151_v3, 4  ;;  %1615 = vmatprep.subr.bf16.mxu0 %v6626_v18  ;;  %v6609_v36 = vld [vmem:[%s10267_s3 + $0x3c0] sm:$0xff] }
  0xff   : > { %7779 = vmatpush3.bf16.msra.mxu1 %v7934_v60  ;;  %v485_v7 = vrot.slane %v8156_v5, 4  ;;  %1616 = vmatpush1.bf16.msra.mxu0 %v6625_v21  ;;  %v7960_v60 = vld [vmem:[%s10266_s2 + $0x118] sm:$0xff]  }
 0x100   : > { %7780 = vmatprep.subr.bf16.mxu1 %v7935_v4  ;;  %1617 = vmatprep.subr.bf16.mxu0 %v6634_v23  ;;  %v6723_v23 = vcombine.low %v1202_v19, %v1206_v20 }
 0x101   : > { %v8164_v9 = vsel %vm477_vm2, %v483_v53, %v485_v7  ;;  %v8167_v10 = vsel %vm477_vm2, %v485_v7, %v873_v6  ;;  %v7953_v53 = vld [vmem:[%s10266_s2 + $0xe0] sm:$0xff]   ;;  %v1174_v6 = vld [vmem:[%s10267_s3 + $0x68] sm:$0xff] }
 0x102   : > { %7773 = vmatmul.mubr.bf16.gmra.mrb[4].mxu1 %v8164_v9 }
 0x103   : > { %7781 = vmatpush3.bf16.msra.mxu1 %v7935_v4  ;;  %7792 = vmatprep.mubr.bf16.mxu1 %v433_v32  ;;  %v6641_v32 = vcombine.low %v6577_v24, %v6581_v25  ;;  %v1170_v4 = vld [vmem:[%s10267_s3 + $0x48] sm:$0xff] }
 0x104   : > { %7782 = vmatprep.subr.bf16.mxu1 %v7936_v8  ;;  %1618 = vmatpush1.bf16.msra.mxu0 %v6633_v26  ;;  %v6691_v11 = vcombine.low %v1170_v4, %v1174_v6  ;;  %v1214_v24 = vld [vmem:[%s10267_s3 + $0x1a8] sm:$0xff] }
 0x105   : > { %1619 = vmatprep.subr.bf16.mxu0 %v6642_v28  ;;  %v6605_v28 = vld [vmem:[%s10267_s3 + $0x3a0] sm:$0xff] }
 0x107   : > { %7783 = vmatpush3.bf16.msra.mxu1 %v7936_v8  ;;  %v6692_v8 = vcombine.high %v1170_v4, %v1174_v6 }
 0x108   : > { %7784 = vmatprep.subr.bf16.mxu1 %v7937_v13  ;;  %1620 = vmatpush1.bf16.msra.mxu0 %v6641_v32  ;;  %v1218_v32 = vld [vmem:[%s10267_s3 + $0x1c8] sm:$0xff] }
 0x109   : > { %1621 = vmatprep.subr.bf16.mxu0 %v6650_v34 }
 0x10b   : > { %7785 = vmatpush3.bf16.msra.mxu1 %v7937_v13  ;;  %v1186_v13 = vld [vmem:[%s10267_s3 + $0xc8] sm:$0xff] }
 0x10c   : > { %7786 = vmatprep.subr.bf16.mxu1 %v7938_v22  ;;  %1622 = vmatpush1.bf16.msra.mxu0 %v6649_v37  ;;  %v6708_v16 = vcombine.high %v1186_v13, %v1190_v14  ;;  %v6707_v17 = vcombine.low %v1186_v13, %v1190_v14  ;;  %v6613_v37 = vld [vmem:[%s10267_s3 + $0x3e0] sm:$0xff] }
 0x10d   : > { %1623 = vmatprep.subr.bf16.mxu0 %v6658_v39  ;;  %v6673_v39 = vcombine.low %v6609_v36, %v6613_v37 }
 0x10f   : > { %7787 = vmatpush3.bf16.msra.mxu1 %v7938_v22  ;;  %v6724_v22 = vcombine.high %v1202_v19, %v1206_v20 }
 0x110   : > { %7788 = vmatprep.subr.bf16.mxu1 %v7939_v27  ;;  %1624 = vmatpush1.bf16.msra.mxu0 %v6657_v41  ;;  %v1168_v41 = vld [vmem:[%s10267_s3 + $0x38] sm:$0xff] }
 0x113   : > { %7789 = vmatpush3.bf16.msra.mxu1 %v7939_v27  ;;  %v6601_v27 = vld [vmem:[%s10267_s3 + $0x380] sm:$0xff] }
 0x114   : > { %7790 = vmatprep.subr.bf16.mxu1 %v7940_v33  ;;  %v6666_v29 = vcombine.high %v6601_v27, %v6605_v28  ;;  %v6665_v30 = vcombine.low %v6601_v27, %v6605_v28 }
 0x116   : > { %1625 = vmatprep.subr.bf16.mxu0 %v6666_v29 }
 0x117   : > { %7791 = vmatpush3.bf16.msra.mxu1 %v7940_v33  ;;  %v1222_v33 = vld [vmem:[%s10267_s3 + $0x1e8] sm:$0xff]  ;;  %1626 = vmatpush1.bf16.msra.mxu0 %v6665_v30 }
 0x118   : > { %7800 = vmatprep.subr.bf16.mxu1 %v7941_v38  ;;  %v6740_v34 = vcombine.high %v1218_v32, %v1222_v33  ;;  %v6739_v35 = vcombine.low %v1218_v32, %v1222_v33  ;;  %v6578_v30 = vld [vmem:[%s10267_s3 + $0x2c8] sm:$0xff] }
 0x119   : > { %v6582_v32 = vld [vmem:[%s10267_s3 + $0x2e8] sm:$0xff] }
 0x11a   : > { %7793 = vmatmul.mubr.bf16.vlgmr.msra.gmra.mrb[0].mxu1 %v8130_v31 }
 0x11b   : > { %7796 = vmatprep.mubr.bf16.mxu1 %v8136_v49  ;;  %7801 = vmatpush3.bf16.msra.mxu1 %v7941_v38  ;;  %v6674_v38 = vcombine.high %v6609_v36, %v6613_v37  ;;  %v1196_v36 = vld [vmem:[%s10267_s3 + $0x118] sm:$0xff] }
 0x11c   : > { %7802 = vmatprep.subr.bf16.mxu1 %v7942_v40  ;;  %v1200_v37 = vld [vmem:[%s10267_s3 + $0x138] sm:$0xff] }
 0x11d   : > { %1627 = vmatprep.subr.bf16.mxu0 %v6674_v38  ;;  %v6644_v38 = vcombine.high %v6578_v30, %v6582_v32 }
 0x11e   : > { %1628 = vmatpush1.bf16.msra.mxu0 %v6673_v39 }
 0x11f   : > { %7803 = vmatpush3.bf16.msra.mxu1 %v7942_v40  ;;  %v1164_v40 = vld [vmem:[%s10267_s3 + $0x18] sm:$0xff] }
 0x120   : > { %7804 = vmatprep.subr.bf16.mxu1 %v7943_v42 }
 0x122   : > { %7797 = vmatmul.mubr.bf16.gmra.mrb[4].mxu1 %v8134_v48 }
 0x123   : > { %7805 = vmatpush3.bf16.msra.mxu1 %v7943_v42  ;;  %7816 = vmatprep.mubr.bf16.mxu1 %v8130_v31  ;;  %v7948_v31 = vld [vmem:[%s10266_s2 + $0xb8] sm:$0xff]   ;;  %v6688_v42 = vcombine.high %v1164_v40, %v1168_v41 }
 0x124   : > { %7806 = vmatprep.subr.bf16.mxu1 %v7944_v43 }
 0x127   : > { %7807 = vmatpush3.bf16.msra.mxu1 %v7944_v43  ;;  %v6687_v43 = vcombine.low %v1164_v40, %v1168_v41  ;;  %v6586_v40 = vld [vmem:[%s10267_s3 + $0x308] sm:$0xff] }
 0x128   : > { %7808 = vmatprep.subr.bf16.mxu1 %v7945_v44  ;;  %v6590_v41 = vld [vmem:[%s10267_s3 + $0x328] sm:$0xff] }
 0x12b   : > { %7809 = vmatpush3.bf16.msra.mxu1 %v7945_v44  ;;  %v8037_v44 = vmov 0  }
 0x12c   : > { %7810 = vmatprep.subr.bf16.mxu1 %v7946_v45  ;;  %1645 = vmatprep.mubr.bf16.mxu0 %v8037_v44 }
 0x12d   : > { %7915 = vset.pattern.permute.xlu1 %v8037_v44  ;;  %7916 = vset.pattern.permute.xlu0 %v8037_v44 }
 0x12f   : > { %7811 = vmatpush3.bf16.msra.mxu1 %v7946_v45  ;;  %v6554_v45 = vld [vmem:[%s10267_s3 + $0x208] sm:$0xff] }
 0x130   : > { %7812 = vmatprep.subr.bf16.mxu1 %v7947_v46 }
 0x133   : > { %7813 = vmatpush3.bf16.msra.mxu1 %v7947_v46  ;;  %v6558_v46 = vld [vmem:[%s10267_s3 + $0x228] sm:$0xff] }
 0x134   : > { %7814 = vmatprep.subr.bf16.mxu1 %v7948_v31 }
 0x137   : > { %7815 = vmatpush3.bf16.msra.mxu1 %v7948_v31  ;;  %v6620_v31 = vcombine.high %v6554_v45, %v6558_v46 }
 0x138   : > { %7824 = vmatprep.subr.bf16.mxu1 %v7949_v47 }
 0x139   : > { %1654 = vmatprep.subr.bf16.mxu0 %v6620_v31  ;;  %v6652_v31 = vcombine.high %v6586_v40, %v6590_v41 }
 0x13a   : > { %7817 = vmatmul.mubr.bf16.vlgmr.msra.gmra.mrb[0].mxu1 %v8136_v49 }
 0x13b   : > { %7820 = vmatprep.mubr.bf16.mxu1 %v8134_v48  ;;  %7825 = vmatpush3.bf16.msra.mxu1 %v7949_v47  ;;  %v6619_v47 = vcombine.low %v6554_v45, %v6558_v46  ;;  %v1204_v45 = vld [vmem:[%s10267_s3 + $0x158] sm:$0xff] }
 0x13c   : > { %7826 = vmatprep.subr.bf16.mxu1 %v7950_v50  ;;  %v1208_v46 = vld [vmem:[%s10267_s3 + $0x178] sm:$0xff] }
 0x13f   : > { %7827 = vmatpush3.bf16.msra.mxu1 %v7950_v50  ;;  %v6552_v50 = vld [vmem:[%s10269_s5 + $0x1] ss:$0 sm:$0xff] }
 0x140   : > { %7828 = vmatprep.subr.bf16.mxu1 %v7951_v51 }
 0x142   : > { %7821 = vmatmul.mubr.bf16.gmra.mrb[4].mxu1 %v8156_v5 }
 0x143   : > { %7829 = vmatpush3.bf16.msra.mxu1 %v7951_v51  ;;  %7840 = vmatprep.mubr.bf16.mxu1 %v8144_v63  ;;  %v7963_v63 = vld [vmem:[%s10266_s2 + $0x130] sm:$0xff]  }
 0x144   : > { %7830 = vmatprep.subr.bf16.mxu1 %v7952_v52 }
 0x147   : > { %7831 = vmatpush3.bf16.msra.mxu1 %v7952_v52 }
 0x148   : > { %7832 = vmatprep.subr.bf16.mxu1 %v7953_v53 }
 0x14b   : > { %7833 = vmatpush3.bf16.msra.mxu1 %v7953_v53 }
 0x14c   : > { %7834 = vmatprep.subr.bf16.mxu1 %v7954_v54 }
 0x14f   : > { %7835 = vmatpush3.bf16.msra.mxu1 %v7954_v54 }
 0x150   : > { %7836 = vmatprep.subr.bf16.mxu1 %v7955_v55 }
 0x153   : > { %7837 = vmatpush3.bf16.msra.mxu1 %v7955_v55 }
 0x154   : > { %7838 = vmatprep.subr.bf16.mxu1 %v7956_v56 }
 0x157   : > { %7839 = vmatpush3.bf16.msra.mxu1 %v7956_v56 }
 0x158   : > { %7848 = vmatprep.subr.bf16.mxu1 %v7957_v57 }
 0x15a   : > { %7841 = vmatmul.mubr.bf16.vlgmr.msra.gmra.mrb[0].mxu1 %v8147_v0  ;;  %v1162_v0 = vld [vmem:[%s10267_s3 + $0x8] sm:$0xff] }
 0x15b   : > { %7844 = vmatprep.mubr.bf16.mxu1 %v8164_v9  ;;  %7849 = vmatpush3.bf16.msra.mxu1 %v7957_v57  ;;  %v6684_v2 = vcombine.high %v1162_v0, %v1166_v1  ;;  %v6683_v7 = vcombine.low %v1162_v0, %v1166_v1  ;;  %v1178_v9 = vld [vmem:[%s10267_s3 + $0x88] sm:$0xff] }
 0x15c   : > { %7850 = vmatprep.subr.bf16.mxu1 %v7958_v58  ;;  %v6562_v1 = vld [vmem:[%s10267_s3 + $0x248] sm:$0xff] }
 0x15f   : > { %7851 = vmatpush3.bf16.msra.mxu1 %v7958_v58 }
 0x160   : > { %7852 = vmatprep.subr.bf16.mxu1 %v7959_v59 }
 0x162   : > { %7845 = vmatmul.mubr.bf16.gmra.mrb[4].mxu1 %v8167_v10  ;;  %v1182_v10 = vld [vmem:[%s10267_s3 + $0xa8] sm:$0xff] }
 0x163   : > { %7853 = vmatpush3.bf16.msra.mxu1 %v7959_v59  ;;  %7864 = vmatprep.mubr.bf16.mxu1 %v8136_v49  ;;  %v7964_v49 = vld [vmem:[%s10266_s2 + $0x138] sm:$0xff]   ;;  %v6700_v12 = vcombine.high %v1178_v9, %v1182_v10  ;;  %v6699_v15 = vcombine.low %v1178_v9, %v1182_v10 }
 0x164   : > { %7854 = vmatprep.subr.bf16.mxu1 %v7960_v60  ;;  %v1180_v10 = vld [vmem:[%s10267_s3 + $0x98] sm:$0xff] }
 0x167   : > { %7855 = vmatpush3.bf16.msra.mxu1 %v7960_v60 }
 0x168   : > { %7856 = vmatprep.subr.bf16.mxu1 %v7961_v61 }
 0x16b   : > { %7857 = vmatpush3.bf16.msra.mxu1 %v7961_v61  ;;  %v1172_v61 = vld [vmem:[%s10267_s3 + $0x58] sm:$0xff] }
 0x16c   : > { %7858 = vmatprep.subr.bf16.mxu1 %v7962_v62 }
 0x16f   : > { %7859 = vmatpush3.bf16.msra.mxu1 %v7962_v62  ;;  %v1176_v62 = vld [vmem:[%s10267_s3 + $0x78] sm:$0xff] }
 0x170   : > { %7860 = vmatprep.subr.bf16.mxu1 %v7963_v63 }
 0x173   : > { %7861 = vmatpush3.bf16.msra.mxu1 %v7963_v63 }
 0x174   : > { %7862 = vmatprep.subr.bf16.mxu1 %v7964_v49 }
 0x177   : > { %7863 = vmatpush3.bf16.msra.mxu1 %v7964_v49 }
 0x178   : > { %2138 = vmatprep.subr.bf16.mxu1 %v6684_v2  ;;  %v6566_v2 = vld [vmem:[%s10267_s3 + $0x268] sm:$0xff] }
 0x17a   : > { %7865 = vmatmul.mubr.bf16.vlgmr.msra.gmra.mrb[0].mxu1 %v8134_v48  ;;  %v1194_v48 = vld [vmem:[%s10267_s3 + $0x108] sm:$0xff] }
 0x17b   : > { %7868 = vmatprep.mubr.bf16.mxu1 %v8156_v5  ;;  %2139 = vmatpush1.bf16.msra.mxu1 %v6683_v7  ;;  %v1198_v5 = vld [vmem:[%s10267_s3 + $0x128] sm:$0xff]  ;;  %v6696_v7 = vcombine.high %v1172_v61, %v1176_v62 }
 0x17c   : > { %2140 = vmatprep.subr.bf16.mxu1 %v6692_v8  ;;  %v6716_v18 = vcombine.high %v1194_v48, %v1198_v5  ;;  %v6715_v21 = vcombine.low %v1194_v48, %v1198_v5  ;;  %v6695_v5 = vcombine.low %v1172_v61, %v1176_v62  ;;  %v1220_v62 = vld [vmem:[%s10267_s3 + $0x1d8] sm:$0xff] }
 0x17f   : > { %2141 = vmatpush1.bf16.msra.mxu1 %v6691_v11  ;;  %v1184_v11 = vld [vmem:[%s10267_s3 + $0xb8] sm:$0xff] }
 0x180   : > { %2142 = vmatprep.subr.bf16.mxu1 %v6700_v12  ;;  %v6704_v20 = vcombine.high %v1180_v10, %v1184_v11  ;;  %v6703_v29 = vcombine.low %v1180_v10, %v1184_v11  ;;  %v6750_v10 = vld [vmem:[%s10267_s3 + $0x428] sm:$0xff] }
 0x182   : > { %7869 = vmatmul.mubr.bf16.gmra.mrb[4].mxu1 %v8151_v3  ;;  %v1210_v3 = vld [vmem:[%s10267_s3 + $0x188] sm:$0xff] }
 0x183   : > { %2143 = vmatpush1.bf16.msra.mxu1 %v6699_v15  ;;  %v6732_v25 = vcombine.high %v1210_v3, %v1214_v24  ;;  %v6731_v26 = vcombine.low %v1210_v3, %v1214_v24  ;;  %2170 = vmatprep.mubr.bf16.mxu1 %v8037_v44  ;;  %v6628_v15 = vcombine.high %v6562_v1, %v6566_v2  ;;  %v1188_v3 = vld [vmem:[%s10267_s3 + $0xd8] sm:$0xff] }
 0x184   : > { %2144 = vmatprep.subr.bf16.mxu1 %v6708_v16  ;;  %v1192_v24 = vld [vmem:[%s10267_s3 + $0xf8] sm:$0xff] }
 0x185   : > { %v6711_v39 = vcombine.low %v1188_v3, %v1192_v24 }
 0x187   : > { %2145 = vmatpush1.bf16.msra.mxu1 %v6707_v17  ;;  %v6570_v17 = vld [vmem:[%s10267_s3 + $0x288] sm:$0xff] }
 0x188   : > { %2146 = vmatprep.subr.bf16.mxu1 %v6716_v18  ;;  %v6574_v18 = vld [vmem:[%s10267_s3 + $0x2a8] sm:$0xff] }
 0x189   : > { %v6636_v27 = vcombine.high %v6570_v17, %v6574_v18 }
 0x18b   : > { %2147 = vmatpush1.bf16.msra.mxu1 %v6715_v21 }
 0x18c   : > { %2148 = vmatprep.subr.bf16.mxu1 %v6724_v22 }
 0x18f   : > { %2149 = vmatpush1.bf16.msra.mxu1 %v6723_v23  ;;  %v6627_v23 = vcombine.low %v6562_v1, %v6566_v2  ;;  %v6610_v2 = vld [vmem:[%s10267_s3 + $0x3c8] sm:$0xff] }
 0x190   : > { %2150 = vmatprep.subr.bf16.mxu1 %v6732_v25 }
 0x193   : > { %2151 = vmatpush1.bf16.msra.mxu1 %v6731_v26 }
 0x194   : > { %2152 = vmatprep.subr.bf16.mxu1 %v6740_v34  ;;  %v6712_v34 = vcombine.high %v1188_v3, %v1192_v24  ;;  %v6762_v3 = vld [vmem:[%s10267_s3 + $0x488] sm:$0xff] }
 0x195   : > { %v6766_v24 = vld [vmem:[%s10267_s3 + $0x4a8] sm:$0xff] }
 0x197   : > { %2153 = vmatpush1.bf16.msra.mxu1 %v6739_v35  ;;  %v6635_v35 = vcombine.low %v6570_v17, %v6574_v18  ;;  %v6758_v17 = vld [vmem:[%s10267_s3 + $0x468] sm:$0xff] }
 0x198   : > { %2220 = vmatprep.subr.bf16.mxu1 %v6688_v42  ;;  %v6720_v42 = vcombine.high %v1196_v36, %v1200_v37 }
 0x24d   : > { %v7866_v51 = vpop.f32.mrb[0].mxu1 }
 0x24e   : > { %v1143_v52 = vadd.f32 %v7866_v51, %v6552_v50  ;;  %v1096_v53 = vpop.f32.mrb[1].mxu1  ;;  %v6598_v51 = vld [vmem:[%s10267_s3 + $0x368] sm:$0xff] }
 0x24f   : > { %v1141_v54 = vadd.f32 %v6552_v50, %v1096_v53  ;;  %v7867_v55 = vpop.f32.mrb[2].mxu1  ;;  %v6651_v53 = vcombine.low %v6586_v40, %v6590_v41 }
 0x250   : > { %v1144_v56 = vadd.f32 %v7867_v55, %v6552_v50  ;;  %v1099_v57 = vpop.f32.mrb[3].mxu1  ;;  %v1151_v59 = vmax.f32 %v1143_v52, 0.0  ;;  %v6728_v52 = vcombine.high %v1204_v45, %v1208_v46  ;;  %v1216_v55 = vld [vmem:[%s10267_s3 + $0x1b8] sm:$0xff] }
 0x251   : > { %v1142_v58 = vadd.f32 %v6552_v50, %v1099_v57  ;;  %v1149_v63 = vmax.f32 %v1141_v54, 0.0  ;;  %v1212_v54 = vld [vmem:[%s10267_s3 + $0x198] sm:$0xff]  ;;  %v6727_v57 = vcombine.low %v1204_v45, %v1208_v46 }
 0x252   : > { %v1152_v60 = vmax.f32 %v1144_v56, 0.0  ;;  %v6735_v1 = vcombine.low %v1212_v54, %v1216_v55 }
 0x253   : > { %v1150_v49 = vmax.f32 %v1142_v58, 0.0  ;;  %v6602_v58 = vld [vmem:[%s10267_s3 + $0x388] sm:$0xff] }
 0x254   : > { %v8390_v0 = vpack.c.bf16 %v1152_v60, %v1151_v59  ;;  %v6606_v59 = vld [vmem:[%s10267_s3 + $0x3a8] sm:$0xff]  ;;  %v6736_v60 = vcombine.high %v1212_v54, %v1216_v55 }
 0x255   : > { %v8398_v4 = vpack.c.bf16 %v1150_v49, %v1149_v63  ;;  %v7870_v6 = vpop.f32.mrb[4].mxu1  ;;  %v1224_v63 = vld [vmem:[%s10267_s3 + $0x1f8] sm:$0xff]  ;;  %v6668_v49 = vcombine.high %v6602_v58, %v6606_v59 }
 0x256   : > { %v1147_v8 = vadd.f32 %v7870_v6, %v6552_v50  ;;  %v1112_v9 = vpop.f32.mrb[5].mxu1  ;;  %v6614_v6 = vld [vmem:[%s10267_s3 + $0x3e8] sm:$0xff] }
 0x257   : > { %v1145_v12 = vadd.f32 %v6552_v50, %v1112_v9  ;;  %v7871_v13 = vpop.f32.mrb[6].mxu1  ;;  %2171 = vmatmul.mubr.bf16.vlgmr.msra.gmra.mrb[8].mxu1 %v8398_v4  ;;  %v8408_v14 = vrot.slane %v8398_v4, 4  ;;  %v6746_v9 = vld [vmem:[%s10267_s3 + $0x408] sm:$0xff]  ;;  %v6676_v11 = vcombine.high %v6610_v2, %v6614_v6 }
 0x258   : > { %v1148_v16 = vadd.f32 %v7871_v13, %v6552_v50  ;;  %2221 = vmatpush1.bf16.msra.mxu1 %v6687_v43  ;;  %v1115_v48 = vpop.f32.mrb[7].mxu1  ;;  %2252 = vmatprep.mubr.bf16.mxu1 %v8037_v44  ;;  %v1155_v21 = vmax.f32 %v1147_v8, 0.0  ;;  %v6643_v43 = vcombine.low %v6578_v30, %v6582_v32  ;;  %v6667_v8 = vcombine.low %v6602_v58, %v6606_v59  ;;  %v6555_v13 = vld [vmem:[%s10267_s3 + $0x210] sm:$0xff] }
 0x259   : > { %v1146_v19 = vadd.f32 %v6552_v50, %v1115_v48  ;;  %1646 = vmatmul.mubr.bf16.vlgmr.msra.gmra.mrb[12].mxu0 %v8408_v14  ;;  %2222 = vmatprep.subr.bf16.mxu1 %v6696_v7  ;;  %v1153_v25 = vmax.f32 %v1145_v12, 0.0  ;;  %v6594_v50 = vld [vmem:[%s10267_s3 + $0x348] sm:$0xff]  ;;  %v6744_v7 = vcombine.high %v1220_v62, %v1224_v63  ;;  %v6743_v12 = vcombine.low %v1220_v62, %v1224_v63 }
 0x25a   : > { %v1156_v22 = vmax.f32 %v1148_v16, 0.0  ;;  %1655 = vmatpush1.bf16.msra.mxu0 %v6619_v47  ;;  %1686 = vmatprep.mubr.bf16.mxu0 %v8037_v44  ;;  %v6719_v47 = vcombine.low %v1196_v36, %v1200_v37  ;;  %v6660_v56 = vcombine.high %v6594_v50, %v6598_v51  ;;  %v6659_v61 = vcombine.low %v6594_v50, %v6598_v51 }
 0x25b   : > { %v1154_v26 = vmax.f32 %v1146_v19, 0.0  ;;  %1656 = vmatprep.subr.bf16.mxu0 %v6628_v15  ;;  %v6559_v15 = vld [vmem:[%s10267_s3 + $0x230] sm:$0xff]  ;;  %v6812_v16 = vcombine.high %v6746_v9, %v6750_v10  ;;  %v6675_v48 = vcombine.low %v6610_v2, %v6614_v6  ;;  %v6811_v19 = vcombine.low %v6746_v9, %v6750_v10 }
 0x25c   : > { %v8425_v28 = vpack.c.bf16 %v1156_v22, %v1155_v21  ;;  %2223 = vmatpush1.bf16.msra.mxu1 %v6695_v5  ;;  %v6754_v5 = vld [vmem:[%s10267_s3 + $0x448] sm:$0xff]  ;;  %v6622_v18 = vcombine.high %v6555_v13, %v6559_v15  ;;  %v6567_v21 = vld [vmem:[%s10267_s3 + $0x270] sm:$0xff]  ;;  %v6828_v30 = vcombine.high %v6762_v3, %v6766_v24  ;;  %v6827_v37 = vcombine.low %v6762_v3, %v6766_v24 }
 0x25d   : > { %v8433_v33 = vpack.c.bf16 %v1154_v26, %v1153_v25  ;;  %2224 = vmatprep.subr.bf16.mxu1 %v6704_v20  ;;  %v6563_v20 = vld [vmem:[%s10267_s3 + $0x250] sm:$0xff]  ;;  %v6820_v22 = vcombine.high %v6754_v5, %v6758_v17  ;;  %v6819_v26 = vcombine.low %v6754_v5, %v6758_v17 }
 0x25e   : > { %1657 = vmatpush1.bf16.msra.mxu0 %v6627_v23  ;;  %v6621_v23 = vcombine.low %v6555_v13, %v6559_v15  ;;  %v6630_v25 = vcombine.high %v6563_v20, %v6567_v21  ;;  %v6629_v32 = vcombine.low %v6563_v20, %v6567_v21 }
 0x25f   : > { %1658 = vmatprep.subr.bf16.mxu0 %v6636_v27  ;;  %v6571_v27 = vld [vmem:[%s10267_s3 + $0x290] sm:$0xff] }
 0x260   : > { %2225 = vmatpush1.bf16.msra.mxu1 %v6703_v29  ;;  %v6575_v29 = vld [vmem:[%s10267_s3 + $0x2b0] sm:$0xff] }
 0x261   : > { %2226 = vmatprep.subr.bf16.mxu1 %v6712_v34  ;;  %v6770_v34 = vld [vmem:[%s10267_s3 + $0x4c8] sm:$0xff]  ;;  %v6638_v36 = vcombine.high %v6571_v27, %v6575_v29  ;;  %v6637_v41 = vcombine.low %v6571_v27, %v6575_v29 }
 0x262   : > { %1659 = vmatpush1.bf16.msra.mxu0 %v6635_v35  ;;  %v6774_v35 = vld [vmem:[%s10267_s3 + $0x4e8] sm:$0xff] }
 0x263   : > { %1660 = vmatprep.subr.bf16.mxu0 %v6644_v38  ;;  %v6579_v38 = vld [vmem:[%s10267_s3 + $0x2d0] sm:$0xff]  ;;  %v6836_v40 = vcombine.high %v6770_v34, %v6774_v35  ;;  %v6835_v46 = vcombine.low %v6770_v34, %v6774_v35 }
 0x264   : > { %2227 = vmatpush1.bf16.msra.mxu1 %v6711_v39  ;;  %v6583_v39 = vld [vmem:[%s10267_s3 + $0x2f0] sm:$0xff] }
 0x265   : > { %2228 = vmatprep.subr.bf16.mxu1 %v6720_v42  ;;  %v6778_v42 = vld [vmem:[%s10267_s3 + $0x508] sm:$0xff]  ;;  %v6646_v45 = vcombine.high %v6579_v38, %v6583_v39  ;;  %v6645_v51 = vcombine.low %v6579_v38, %v6583_v39 }
 0x266   : > { %1661 = vmatpush1.bf16.msra.mxu0 %v6643_v43  ;;  %v6782_v43 = vld [vmem:[%s10267_s3 + $0x528] sm:$0xff] }
 0x267   : > { %1662 = vmatprep.subr.bf16.mxu0 %v6652_v31  ;;  %v6587_v31 = vld [vmem:[%s10267_s3 + $0x310] sm:$0xff]  ;;  %v6844_v50 = vcombine.high %v6778_v42, %v6782_v43  ;;  %v6843_v55 = vcombine.low %v6778_v42, %v6782_v43 }
 0x268   : > { %2229 = vmatpush1.bf16.msra.mxu1 %v6719_v47  ;;  %v6591_v47 = vld [vmem:[%s10267_s3 + $0x330] sm:$0xff] }
 0x269   : > { %2230 = vmatprep.subr.bf16.mxu1 %v6728_v52  ;;  %v6786_v52 = vld [vmem:[%s10267_s3 + $0x548] sm:$0xff]  ;;  %v6654_v54 = vcombine.high %v6587_v31, %v6591_v47  ;;  %v6653_v59 = vcombine.low %v6587_v31, %v6591_v47 }
 0x26a   : > { %1663 = vmatpush1.bf16.msra.mxu0 %v6651_v53  ;;  %v6790_v53 = vld [vmem:[%s10267_s3 + $0x568] sm:$0xff] }
 0x26b   : > { %1664 = vmatprep.subr.bf16.mxu0 %v6660_v56  ;;  %v6595_v56 = vld [vmem:[%s10267_s3 + $0x350] sm:$0xff]  ;;  %v6852_v58 = vcombine.high %v6786_v52, %v6790_v53  ;;  %v6851_v63 = vcombine.low %v6786_v52, %v6790_v53 }
 0x26c   : > { %2231 = vmatpush1.bf16.msra.mxu1 %v6727_v57  ;;  %v6599_v57 = vld [vmem:[%s10267_s3 + $0x370] sm:$0xff] }
 0x26d   : > { %2232 = vmatprep.subr.bf16.mxu1 %v6736_v60  ;;  %v6794_v60 = vld [vmem:[%s10267_s3 + $0x588] sm:$0xff]  ;;  %v6662_v62 = vcombine.high %v6595_v56, %v6599_v57  ;;  %v6661_v6 = vcombine.low %v6595_v56, %v6599_v57 }
 0x26e   : > { %1665 = vmatpush1.bf16.msra.mxu0 %v6659_v61  ;;  %v6798_v61 = vld [vmem:[%s10267_s3 + $0x5a8] sm:$0xff] }
 0x26f   : > { %1666 = vmatprep.subr.bf16.mxu0 %v6668_v49  ;;  %v6603_v49 = vld [vmem:[%s10267_s3 + $0x390] sm:$0xff]  ;;  %v6860_v2 = vcombine.high %v6794_v60, %v6798_v61  ;;  %v6859_v10 = vcombine.low %v6794_v60, %v6798_v61 }
 0x270   : > { %2233 = vmatpush1.bf16.msra.mxu1 %v6735_v1  ;;  %v6607_v1 = vld [vmem:[%s10267_s3 + $0x3b0] sm:$0xff] }
 0x271   : > { %2234 = vmatprep.subr.bf16.mxu1 %v6744_v7  ;;  %v6802_v7 = vld [vmem:[%s10267_s3 + $0x5c8] sm:$0xff]  ;;  %v6670_v9 = vcombine.high %v6603_v49, %v6607_v1  ;;  %v6669_v15 = vcombine.low %v6603_v49, %v6607_v1 }
 0x272   : > { %1667 = vmatpush1.bf16.msra.mxu0 %v6667_v8  ;;  %v6806_v8 = vld [vmem:[%s10267_s3 + $0x5e8] sm:$0xff] }
 0x273   : > { %1668 = vmatprep.subr.bf16.mxu0 %v6676_v11  ;;  %v6611_v11 = vld [vmem:[%s10267_s3 + $0x3d0] sm:$0xff]  ;;  %v6868_v13 = vcombine.high %v6802_v7, %v6806_v8  ;;  %v6867_v17 = vcombine.low %v6802_v7, %v6806_v8 }
 0x274   : > { %2235 = vmatpush1.bf16.msra.mxu1 %v6743_v12  ;;  %v6615_v12 = vld [vmem:[%s10267_s3 + $0x3f0] sm:$0xff] }
 0x275   : > { %2687 = vmatprep.subr.bf16.mxu1 %v6812_v16  ;;  %v6748_v16 = vld [vmem:[%s10267_s3 + $0x418] sm:$0xff]  ;;  %v6678_v5 = vcombine.high %v6611_v11, %v6615_v12  ;;  %v6677_v21 = vcombine.low %v6611_v11, %v6615_v12 }
 0x276   : > { %1669 = vmatpush1.bf16.msra.mxu0 %v6675_v48  ;;  %v6752_v48 = vld [vmem:[%s10267_s3 + $0x438] sm:$0xff] }
 0x277   : > { %2253 = vmatmul.mubr.bf16.vlgmr.msra.gmra.mrb[12].mxu1 %v8398_v4  ;;  %1695 = vmatprep.subr.bf16.mxu0 %v6622_v18  ;;  %v6556_v18 = vld [vmem:[%s10267_s3 + $0x218] sm:$0xff]  ;;  %v6816_v20 = vcombine.high %v6748_v16, %v6752_v48  ;;  %v6815_v24 = vcombine.low %v6748_v16, %v6752_v48 }
 0x278   : > { %2688 = vmatpush1.bf16.msra.mxu1 %v6811_v19  ;;  %2719 = vmatprep.mubr.bf16.mxu1 %v8037_v44  ;;  %v6560_v19 = vld [vmem:[%s10267_s3 + $0x238] sm:$0xff] }
 0x279   : > { %1687 = vmatmul.mubr.bf16.vlgmr.msra.gmra.mrb[16].mxu0 %v8408_v14  ;;  %2689 = vmatprep.subr.bf16.mxu1 %v6820_v22  ;;  %v6756_v22 = vld [vmem:[%s10267_s3 + $0x458] sm:$0xff]  ;;  %v6624_v3 = vcombine.high %v6556_v18, %v6560_v19  ;;  %v6623_v29 = vcombine.low %v6556_v18, %v6560_v19 }
 0x27a   : > { %1696 = vmatpush1.bf16.msra.mxu0 %v6621_v23  ;;  %1727 = vmatprep.mubr.bf16.mxu0 %v8037_v44  ;;  %v6760_v23 = vld [vmem:[%s10267_s3 + $0x478] sm:$0xff] }
 0x27b   : > { %1697 = vmatprep.subr.bf16.mxu0 %v6630_v25  ;;  %v6564_v25 = vld [vmem:[%s10267_s3 + $0x258] sm:$0xff]  ;;  %v6824_v27 = vcombine.high %v6756_v22, %v6760_v23  ;;  %v6823_v35 = vcombine.low %v6756_v22, %v6760_v23 }
 0x27c   : > { %2690 = vmatpush1.bf16.msra.mxu1 %v6819_v26  ;;  %v6568_v26 = vld [vmem:[%s10267_s3 + $0x278] sm:$0xff] }
 0x27d   : > { %2691 = vmatprep.subr.bf16.mxu1 %v6828_v30  ;;  %v6764_v30 = vld [vmem:[%s10267_s3 + $0x498] sm:$0xff]  ;;  %v6632_v34 = vcombine.high %v6564_v25, %v6568_v26  ;;  %v6631_v39 = vcombine.low %v6564_v25, %v6568_v26 }
 0x27e   : > { %1698 = vmatpush1.bf16.msra.mxu0 %v6629_v32  ;;  %v6768_v32 = vld [vmem:[%s10267_s3 + $0x4b8] sm:$0xff] }
 0x27f   : > { %1699 = vmatprep.subr.bf16.mxu0 %v6638_v36  ;;  %v6572_v36 = vld [vmem:[%s10267_s3 + $0x298] sm:$0xff]  ;;  %v6832_v38 = vcombine.high %v6764_v30, %v6768_v32  ;;  %v6831_v43 = vcombine.low %v6764_v30, %v6768_v32 }
 0x280   : > { %2692 = vmatpush1.bf16.msra.mxu1 %v6827_v37  ;;  %v6576_v37 = vld [vmem:[%s10267_s3 + $0x2b8] sm:$0xff] }
 0x281   : > { %2693 = vmatprep.subr.bf16.mxu1 %v6836_v40  ;;  %v6772_v40 = vld [vmem:[%s10267_s3 + $0x4d8] sm:$0xff]  ;;  %v6640_v42 = vcombine.high %v6572_v36, %v6576_v37  ;;  %v6639_v47 = vcombine.low %v6572_v36, %v6576_v37 }
 0x282   : > { %1700 = vmatpush1.bf16.msra.mxu0 %v6637_v41  ;;  %v6776_v41 = vld [vmem:[%s10267_s3 + $0x4f8] sm:$0xff] }
 0x283   : > { %1701 = vmatprep.subr.bf16.mxu0 %v6646_v45  ;;  %v6580_v45 = vld [vmem:[%s10267_s3 + $0x2d8] sm:$0xff]  ;;  %v6840_v31 = vcombine.high %v6772_v40, %v6776_v41  ;;  %v6839_v53 = vcombine.low %v6772_v40, %v6776_v41 }
 0x284   : > { %2694 = vmatpush1.bf16.msra.mxu1 %v6835_v46  ;;  %v6584_v46 = vld [vmem:[%s10267_s3 + $0x2f8] sm:$0xff] }
 0x285   : > { %2695 = vmatprep.subr.bf16.mxu1 %v6844_v50  ;;  %v6780_v50 = vld [vmem:[%s10267_s3 + $0x518] sm:$0xff]  ;;  %v6648_v52 = vcombine.high %v6580_v45, %v6584_v46  ;;  %v6647_v57 = vcombine.low %v6580_v45, %v6584_v46 }
 0x286   : > { %1702 = vmatpush1.bf16.msra.mxu0 %v6645_v51  ;;  %v6784_v51 = vld [vmem:[%s10267_s3 + $0x538] sm:$0xff] }
 0x287   : > { %1703 = vmatprep.subr.bf16.mxu0 %v6654_v54  ;;  %v6588_v54 = vld [vmem:[%s10267_s3 + $0x318] sm:$0xff]  ;;  %v6848_v56 = vcombine.high %v6780_v50, %v6784_v51  ;;  %v6847_v61 = vcombine.low %v6780_v50, %v6784_v51 }
 0x288   : > { %2696 = vmatpush1.bf16.msra.mxu1 %v6843_v55  ;;  %v6592_v55 = vld [vmem:[%s10267_s3 + $0x338] sm:$0xff] }
 0x289   : > { %2697 = vmatprep.subr.bf16.mxu1 %v6852_v58  ;;  %v6788_v58 = vld [vmem:[%s10267_s3 + $0x558] sm:$0xff]  ;;  %v6656_v60 = vcombine.high %v6588_v54, %v6592_v55  ;;  %v6655_v1 = vcombine.low %v6588_v54, %v6592_v55  ;;  %v6906_v55 = vld [vmem:[%s10267_s3 + $0x708] sm:$0xff] }
 0x28a   : > { %1704 = vmatpush1.bf16.msra.mxu0 %v6653_v59  ;;  %v6792_v59 = vld [vmem:[%s10267_s3 + $0x578] sm:$0xff] }
 0x28b   : > { %1705 = vmatprep.subr.bf16.mxu0 %v6662_v62  ;;  %v6596_v62 = vld [vmem:[%s10267_s3 + $0x358] sm:$0xff]  ;;  %v6856_v49 = vcombine.high %v6788_v58, %v6792_v59  ;;  %v6855_v8 = vcombine.low %v6788_v58, %v6792_v59  ;;  %v1193_v59 = vld [vmem:[%s10267_s3 + $0x100] sm:$0xff] }
 0x28c   : > { %2698 = vmatpush1.bf16.msra.mxu1 %v6851_v63  ;;  %v6600_v63 = vld [vmem:[%s10267_s3 + $0x378] sm:$0xff] }
 0x28d   : > { %2699 = vmatprep.subr.bf16.mxu1 %v6860_v2  ;;  %v6796_v2 = vld [vmem:[%s10267_s3 + $0x598] sm:$0xff]  ;;  %v6664_v7 = vcombine.high %v6596_v62, %v6600_v63  ;;  %v6663_v12 = vcombine.low %v6596_v62, %v6600_v63  ;;  %v6914_v63 = vld [vmem:[%s10267_s3 + $0x748] sm:$0xff] }
 0x28e   : > { %1706 = vmatpush1.bf16.msra.mxu0 %v6661_v6  ;;  %v6800_v6 = vld [vmem:[%s10267_s3 + $0x5b8] sm:$0xff] }
 0x28f   : > { %1707 = vmatprep.subr.bf16.mxu0 %v6670_v9  ;;  %v6604_v9 = vld [vmem:[%s10267_s3 + $0x398] sm:$0xff]  ;;  %v6864_v11 = vcombine.high %v6796_v2, %v6800_v6  ;;  %v6863_v48 = vcombine.low %v6796_v2, %v6800_v6  ;;  %v1201_v6 = vld [vmem:[%s10267_s3 + $0x140] sm:$0xff] }
 0x290   : > { %2700 = vmatpush1.bf16.msra.mxu1 %v6859_v10  ;;  %v6608_v10 = vld [vmem:[%s10267_s3 + $0x3b8] sm:$0xff] }
 0x291   : > { %2701 = vmatprep.subr.bf16.mxu1 %v6868_v13  ;;  %v6804_v13 = vld [vmem:[%s10267_s3 + $0x5d8] sm:$0xff]  ;;  %v6672_v16 = vcombine.high %v6604_v9, %v6608_v10  ;;  %v6671_v19 = vcombine.low %v6604_v9, %v6608_v10  ;;  %v6922_v10 = vld [vmem:[%s10267_s3 + $0x788] sm:$0xff] }
 0x292   : > { %1708 = vmatpush1.bf16.msra.mxu0 %v6669_v15  ;;  %v6808_v15 = vld [vmem:[%s10267_s3 + $0x5f8] sm:$0xff] }
 0x293   : > { %1709 = vmatprep.subr.bf16.mxu0 %v6678_v5  ;;  %v6612_v5 = vld [vmem:[%s10267_s3 + $0x3d8] sm:$0xff]  ;;  %v6872_v18 = vcombine.high %v6804_v13, %v6808_v15  ;;  %v6871_v23 = vcombine.low %v6804_v13, %v6808_v15  ;;  %v1209_v15 = vld [vmem:[%s10267_s3 + $0x180] sm:$0xff] }
 0x294   : > { %2702 = vmatpush1.bf16.msra.mxu1 %v6867_v17  ;;  %v6616_v17 = vld [vmem:[%s10267_s3 + $0x3f8] sm:$0xff] }
 0x295   : > { %2769 = vmatprep.subr.bf16.mxu1 %v6816_v20  ;;  %v6874_v20 = vld [vmem:[%s10267_s3 + $0x608] sm:$0xff]  ;;  %v6680_v22 = vcombine.high %v6612_v5, %v6616_v17  ;;  %v6679_v26 = vcombine.low %v6612_v5, %v6616_v17 }
 0x296   : > { %1710 = vmatpush1.bf16.msra.mxu0 %v6677_v21  ;;  %v6878_v21 = vld [vmem:[%s10267_s3 + $0x628] sm:$0xff] }
 0x297   : > { %2720 = vmatmul.mubr.bf16.vlgmr.msra.gmra.mrb[16].mxu1 %v8390_v0  ;;  %1736 = vmatprep.subr.bf16.mxu0 %v6624_v3  ;;  %v1161_v3 = vld [vmem:[%s10267_s3] sm:$0xff]  ;;  %v6940_v25 = vcombine.high %v6874_v20, %v6878_v21  ;;  %v6939_v32 = vcombine.low %v6874_v20, %v6878_v21  ;;  %v6930_v17 = vld [vmem:[%s10267_s3 + $0x7c8] sm:$0xff] }
 0x298   : > { %2770 = vmatpush1.bf16.msra.mxu1 %v6815_v24  ;;  %2801 = vmatprep.mubr.bf16.mxu1 %v8037_v44  ;;  %v1165_v24 = vld [vmem:[%s10267_s3 + $0x20] sm:$0xff] }
 0x299   : > { %1728 = vmatmul.mubr.bf16.vlgmr.msra.gmra.mrb[20].mxu0 %v8408_v14  ;;  %2771 = vmatprep.subr.bf16.mxu1 %v6824_v27  ;;  %v6882_v27 = vld [vmem:[%s10267_s3 + $0x648] sm:$0xff]  ;;  %v6682_v30 = vcombine.high %v1161_v3, %v1165_v24  ;;  %v6681_v37 = vcombine.low %v1161_v3, %v1165_v24  ;;  %v1217_v21 = vld [vmem:[%s10267_s3 + $0x1c0] sm:$0xff]  ;;  %v6876_v24 = vld [vmem:[%s10267_s3 + $0x618] sm:$0xff] }
 0x29a   : > { %1737 = vmatpush1.bf16.msra.mxu0 %v6623_v29  ;;  %1768 = vmatprep.mubr.bf16.mxu0 %v8037_v44  ;;  %v6886_v29 = vld [vmem:[%s10267_s3 + $0x668] sm:$0xff] }
 0x29b   : > { %1738 = vmatprep.subr.bf16.mxu0 %v6632_v34  ;;  %v1169_v34 = vld [vmem:[%s10267_s3 + $0x40] sm:$0xff]  ;;  %v6948_v36 = vcombine.high %v6882_v27, %v6886_v29  ;;  %v6947_v41 = vcombine.low %v6882_v27, %v6886_v29  ;;  %v1163_v29 = vld [vmem:[%s10267_s3 + $0x10] sm:$0xff] }
 0x29c   : > { %2772 = vmatpush1.bf16.msra.mxu1 %v6823_v35  ;;  %v1173_v35 = vld [vmem:[%s10267_s3 + $0x60] sm:$0xff] }
 0x29d   : > { %2773 = vmatprep.subr.bf16.mxu1 %v6832_v38  ;;  %v6890_v38 = vld [vmem:[%s10267_s3 + $0x688] sm:$0xff]  ;;  %v6690_v40 = vcombine.high %v1169_v34, %v1173_v35  ;;  %v6689_v46 = vcombine.low %v1169_v34, %v1173_v35  ;;  %v6884_v35 = vld [vmem:[%s10267_s3 + $0x658] sm:$0xff] }
 0x29e   : > { %1739 = vmatpush1.bf16.msra.mxu0 %v6631_v39  ;;  %v6894_v39 = vld [vmem:[%s10267_s3 + $0x6a8] sm:$0xff] }
 0x29f   : > { %1740 = vmatprep.subr.bf16.mxu0 %v6640_v42  ;;  %v1177_v42 = vld [vmem:[%s10267_s3 + $0x80] sm:$0xff]  ;;  %v6956_v45 = vcombine.high %v6890_v38, %v6894_v39  ;;  %v6955_v51 = vcombine.low %v6890_v38, %v6894_v39  ;;  %v1171_v39 = vld [vmem:[%s10267_s3 + $0x50] sm:$0xff] }
 0x2a0   : > { %2774 = vmatpush1.bf16.msra.mxu1 %v6831_v43  ;;  %v1181_v43 = vld [vmem:[%s10267_s3 + $0xa0] sm:$0xff] }
 0x2a1   : > { %2775 = vmatprep.subr.bf16.mxu1 %v6840_v31  ;;  %v6898_v31 = vld [vmem:[%s10267_s3 + $0x6c8] sm:$0xff]  ;;  %v6698_v50 = vcombine.high %v1177_v42, %v1181_v43  ;;  %v6697_v54 = vcombine.low %v1177_v42, %v1181_v43 }
 0x2a2   : > { %1741 = vmatpush1.bf16.msra.mxu0 %v6639_v47  ;;  %v6902_v47 = vld [vmem:[%s10267_s3 + $0x6e8] sm:$0xff] }
 0x2a3   : > { %1742 = vmatprep.subr.bf16.mxu0 %v6648_v52  ;;  %v1189_v52 = vld [vmem:[%s10267_s3 + $0xe0] sm:$0xff]  ;;  %v6963_v58 = vcombine.low %v6898_v31, %v6902_v47 }
 0x2a4   : > { %2776 = vmatpush1.bf16.msra.mxu1 %v6839_v53  ;;  %v6964_v53 = vcombine.high %v6898_v31, %v6902_v47 }
 0x2a5   : > { %2777 = vmatprep.subr.bf16.mxu1 %v6848_v56  ;;  %v6910_v56 = vld [vmem:[%s10267_s3 + $0x728] sm:$0xff] }
 0x2a6   : > { %1743 = vmatpush1.bf16.msra.mxu0 %v6647_v57  ;;  %v6971_v2 = vcombine.low %v6906_v55, %v6910_v56 }
 0x2a7   : > { %1744 = vmatprep.subr.bf16.mxu0 %v6656_v60  ;;  %v1197_v60 = vld [vmem:[%s10267_s3 + $0x120] sm:$0xff] }
 0x2a8   : > { %2778 = vmatpush1.bf16.msra.mxu1 %v6847_v61  ;;  %v6972_v61 = vcombine.high %v6906_v55, %v6910_v56  ;;  %v6713_v9 = vcombine.low %v1193_v59, %v1197_v60 }
 0x2a9   : > { %2779 = vmatprep.subr.bf16.mxu1 %v6856_v49  ;;  %v6918_v49 = vld [vmem:[%s10267_s3 + $0x768] sm:$0xff] }
 0x2aa   : > { %1745 = vmatpush1.bf16.msra.mxu0 %v6655_v1  ;;  %v6714_v1 = vcombine.high %v1193_v59, %v1197_v60  ;;  %v6979_v13 = vcombine.low %v6914_v63, %v6918_v49 }
 0x2ab   : > { %1746 = vmatprep.subr.bf16.mxu0 %v6664_v7  ;;  %v1205_v7 = vld [vmem:[%s10267_s3 + $0x160] sm:$0xff] }
 0x2ac   : > { %2780 = vmatpush1.bf16.msra.mxu1 %v6855_v8  ;;  %v6980_v8 = vcombine.high %v6914_v63, %v6918_v49  ;;  %v6721_v5 = vcombine.low %v1201_v6, %v1205_v7 }
 0x2ad   : > { %2781 = vmatprep.subr.bf16.mxu1 %v6864_v11  ;;  %v6926_v11 = vld [vmem:[%s10267_s3 + $0x7a8] sm:$0xff] }
 0x2ae   : > { %1747 = vmatpush1.bf16.msra.mxu0 %v6663_v12  ;;  %v6722_v12 = vcombine.high %v1201_v6, %v1205_v7  ;;  %v6987_v20 = vcombine.low %v6922_v10, %v6926_v11 }
 0x2af   : > { %1748 = vmatprep.subr.bf16.mxu0 %v6672_v16  ;;  %v1213_v16 = vld [vmem:[%s10267_s3 + $0x1a0] sm:$0xff] }
 0x2b0   : > { %2782 = vmatpush1.bf16.msra.mxu1 %v6863_v48  ;;  %v6988_v48 = vcombine.high %v6922_v10, %v6926_v11  ;;  %v6729_v3 = vcombine.low %v1209_v15, %v1213_v16 }
 0x2b1   : > { %2783 = vmatprep.subr.bf16.mxu1 %v6872_v18  ;;  %v6934_v18 = vld [vmem:[%s10267_s3 + $0x7e8] sm:$0xff] }
 0x2b2   : > { %1749 = vmatpush1.bf16.msra.mxu0 %v6671_v19  ;;  %v6730_v19 = vcombine.high %v1209_v15, %v1213_v16  ;;  %v6995_v27 = vcombine.low %v6930_v17, %v6934_v18 }
 0x2b3   : > { %1750 = vmatprep.subr.bf16.mxu0 %v6680_v22  ;;  %v1221_v22 = vld [vmem:[%s10267_s3 + $0x1e0] sm:$0xff] }
 0x2b4   : > { %2784 = vmatpush1.bf16.msra.mxu1 %v6871_v23  ;;  %v6996_v23 = vcombine.high %v6930_v17, %v6934_v18  ;;  %v6737_v34 = vcombine.low %v1217_v21, %v1221_v22 }
 0x2b5   : > { %3247 = vmatprep.subr.bf16.mxu1 %v6940_v25  ;;  %v6880_v25 = vld [vmem:[%s10267_s3 + $0x638] sm:$0xff] }
 0x2b6   : > { %1751 = vmatpush1.bf16.msra.mxu0 %v6679_v26  ;;  %v6738_v26 = vcombine.high %v1217_v21, %v1221_v22  ;;  %v6943_v38 = vcombine.low %v6876_v24, %v6880_v25 }
 0x2b7   : > { %2802 = vmatmul.mubr.bf16.vlgmr.msra.gmra.mrb[20].mxu1 %v8390_v0  ;;  %2097 = vmatprep.subr.bf16.mxu0 %v6682_v30  ;;  %v1167_v30 = vld [vmem:[%s10267_s3 + $0x30] sm:$0xff] }
 0x2b8   : > { %3248 = vmatpush1.bf16.msra.mxu1 %v6939_v32  ;;  %3279 = vmatprep.mubr.bf16.mxu1 %v8037_v44  ;;  %v6944_v32 = vcombine.high %v6876_v24, %v6880_v25  ;;  %v6685_v43 = vcombine.low %v1163_v29, %v1167_v30 }
 0x2b9   : > { %1769 = vmatmul.mubr.bf16.vlgmr.msra.gmra.mrb[24].mxu0 %v8408_v14  ;;  %3249 = vmatprep.subr.bf16.mxu1 %v6948_v36  ;;  %v1185_v14 = vld [vmem:[%s10267_s3 + $0xc0] sm:$0xff]  ;;  %v6888_v36 = vld [vmem:[%s10267_s3 + $0x678] sm:$0xff] }
 0x2ba   : > { %2098 = vmatpush1.bf16.msra.mxu0 %v6681_v37  ;;  %2129 = vmatprep.mubr.bf16.mxu0 %v8037_v44  ;;  %v6706_v57 = vcombine.high %v1185_v14, %v1189_v52  ;;  %v6705_v62 = vcombine.low %v1185_v14, %v1189_v52  ;;  %v6686_v37 = vcombine.high %v1163_v29, %v1167_v30 }
 0x2bb   : > { %2099 = vmatprep.subr.bf16.mxu0 %v6690_v40  ;;  %v1175_v40 = vld [vmem:[%s10267_s3 + $0x70] sm:$0xff]  ;;  %v6952_v42 = vcombine.high %v6884_v35, %v6888_v36  ;;  %v6951_v47 = vcombine.low %v6884_v35, %v6888_v36 }
 0x2bc   : > { %3250 = vmatpush1.bf16.msra.mxu1 %v6947_v41  ;;  %v8808_v41 = vrot.slane %v8390_v0, 4  ;;  %v6694_v31 = vcombine.high %v1171_v39, %v1175_v40  ;;  %v6693_v52 = vcombine.low %v1171_v39, %v1175_v40 }
 0x2bd   : > { %3251 = vmatprep.subr.bf16.mxu1 %v6956_v45  ;;  %v6892_v45 = vld [vmem:[%s10267_s3 + $0x698] sm:$0xff] }
 0x2be   : > { %2100 = vmatpush1.bf16.msra.mxu0 %v6689_v46  ;;  %v6896_v46 = vld [vmem:[%s10267_s3 + $0x6b8] sm:$0xff] }
 0x2bf   : > { %2101 = vmatprep.subr.bf16.mxu0 %v6698_v50  ;;  %v1179_v50 = vld [vmem:[%s10267_s3 + $0x90] sm:$0xff]  ;;  %v6960_v14 = vcombine.high %v6892_v45, %v6896_v46  ;;  %v6959_v56 = vcombine.low %v6892_v45, %v6896_v46 }
 0x2c0   : > { %3252 = vmatpush1.bf16.msra.mxu1 %v6955_v51  ;;  %v1183_v51 = vld [vmem:[%s10267_s3 + $0xb0] sm:$0xff] }
 0x2c1   : > { %3253 = vmatprep.subr.bf16.mxu1 %v6964_v53  ;;  %v6900_v53 = vld [vmem:[%s10267_s3 + $0x6d8] sm:$0xff]  ;;  %v6702_v55 = vcombine.high %v1179_v50, %v1183_v51  ;;  %v6701_v60 = vcombine.low %v1179_v50, %v1183_v51 }
 0x2c2   : > { %2102 = vmatpush1.bf16.msra.mxu0 %v6697_v54  ;;  %v6904_v54 = vld [vmem:[%s10267_s3 + $0x6f8] sm:$0xff] }
 0x2c3   : > { %2103 = vmatprep.subr.bf16.mxu0 %v6706_v57  ;;  %v1187_v57 = vld [vmem:[%s10267_s3 + $0xd0] sm:$0xff]  ;;  %v6968_v59 = vcombine.high %v6900_v53, %v6904_v54  ;;  %v6967_v49 = vcombine.low %v6900_v53, %v6904_v54 }
 0x2c4   : > { %3254 = vmatpush1.bf16.msra.mxu1 %v6963_v58  ;;  %v1191_v58 = vld [vmem:[%s10267_s3 + $0xf0] sm:$0xff] }
 0x2c5   : > { %3255 = vmatprep.subr.bf16.mxu1 %v6972_v61  ;;  %v6908_v61 = vld [vmem:[%s10267_s3 + $0x718] sm:$0xff]  ;;  %v6710_v63 = vcombine.high %v1187_v57, %v1191_v58  ;;  %v6709_v7 = vcombine.low %v1187_v57, %v1191_v58 }
 0x2c6   : > { %2104 = vmatpush1.bf16.msra.mxu0 %v6705_v62  ;;  %v6912_v62 = vld [vmem:[%s10267_s3 + $0x738] sm:$0xff] }
 0x2c7   : > { %2105 = vmatprep.subr.bf16.mxu0 %v6714_v1  ;;  %v1195_v1 = vld [vmem:[%s10267_s3 + $0x110] sm:$0xff]  ;;  %v6976_v6 = vcombine.high %v6908_v61, %v6912_v62  ;;  %v6975_v11 = vcombine.low %v6908_v61, %v6912_v62 }
 0x2c8   : > { %3256 = vmatpush1.bf16.msra.mxu1 %v6971_v2  ;;  %v1199_v2 = vld [vmem:[%s10267_s3 + $0x130] sm:$0xff] }
 0x2c9   : > { %3257 = vmatprep.subr.bf16.mxu1 %v6980_v8  ;;  %v6916_v8 = vld [vmem:[%s10267_s3 + $0x758] sm:$0xff]  ;;  %v6718_v10 = vcombine.high %v1195_v1, %v1199_v2  ;;  %v6717_v16 = vcombine.low %v1195_v1, %v1199_v2  ;;  %v7034_v2 = vld [vmem:[%s10267_s3 + $0x908] sm:$0xff] }
 0x2ca   : > { %2106 = vmatpush1.bf16.msra.mxu0 %v6713_v9  ;;  %v6920_v9 = vld [vmem:[%s10267_s3 + $0x778] sm:$0xff] }
 0x2cb   : > { %2107 = vmatprep.subr.bf16.mxu0 %v6722_v12  ;;  %v1203_v12 = vld [vmem:[%s10267_s3 + $0x150] sm:$0xff]  ;;  %v6984_v15 = vcombine.high %v6916_v8, %v6920_v9  ;;  %v6983_v18 = vcombine.low %v6916_v8, %v6920_v9  ;;  %v6777_v9 = vld [vmem:[%s10267_s3 + $0x500] sm:$0xff] }
 0x2cc   : > { %3258 = vmatpush1.bf16.msra.mxu1 %v6979_v13  ;;  %v1207_v13 = vld [vmem:[%s10267_s3 + $0x170] sm:$0xff] }
 0x2cd   : > { %3259 = vmatprep.subr.bf16.mxu1 %v6988_v48  ;;  %v6924_v48 = vld [vmem:[%s10267_s3 + $0x798] sm:$0xff]  ;;  %v6726_v17 = vcombine.high %v1203_v12, %v1207_v13  ;;  %v6725_v22 = vcombine.low %v1203_v12, %v1207_v13  ;;  %v7042_v13 = vld [vmem:[%s10267_s3 + $0x948] sm:$0xff] }
 0x2ce   : > { %2108 = vmatpush1.bf16.msra.mxu0 %v6721_v5  ;;  %v6928_v5 = vld [vmem:[%s10267_s3 + $0x7b8] sm:$0xff] }
 0x2cf   : > { %2109 = vmatprep.subr.bf16.mxu0 %v6730_v19  ;;  %v1211_v19 = vld [vmem:[%s10267_s3 + $0x190] sm:$0xff]  ;;  %v6992_v21 = vcombine.high %v6924_v48, %v6928_v5  ;;  %v6991_v25 = vcombine.low %v6924_v48, %v6928_v5  ;;  %v6785_v5 = vld [vmem:[%s10267_s3 + $0x540] sm:$0xff] }
 0x2d0   : > { %3260 = vmatpush1.bf16.msra.mxu1 %v6987_v20  ;;  %v1215_v20 = vld [vmem:[%s10267_s3 + $0x1b0] sm:$0xff] }
 0x2d1   : > { %3261 = vmatprep.subr.bf16.mxu1 %v6996_v23  ;;  %v6932_v23 = vld [vmem:[%s10267_s3 + $0x7d8] sm:$0xff]  ;;  %v6734_v24 = vcombine.high %v1211_v19, %v1215_v20  ;;  %v6733_v30 = vcombine.low %v1211_v19, %v1215_v20  ;;  %v7050_v20 = vld [vmem:[%s10267_s3 + $0x988] sm:$0xff] }
 0x2d2   : > { %2110 = vmatpush1.bf16.msra.mxu0 %v6729_v3  ;;  %v6936_v3 = vld [vmem:[%s10267_s3 + $0x7f8] sm:$0xff] }
 0x2d3   : > { %2111 = vmatprep.subr.bf16.mxu0 %v6738_v26  ;;  %v1219_v26 = vld [vmem:[%s10267_s3 + $0x1d0] sm:$0xff]  ;;  %v7000_v29 = vcombine.high %v6932_v23, %v6936_v3  ;;  %v6999_v36 = vcombine.low %v6932_v23, %v6936_v3  ;;  %v6793_v3 = vld [vmem:[%s10267_s3 + $0x580] sm:$0xff] }
 0x2d4   : > { %3262 = vmatpush1.bf16.msra.mxu1 %v6995_v27  ;;  %v1223_v27 = vld [vmem:[%s10267_s3 + $0x1f0] sm:$0xff] }
 0x2d5   : > { %3329 = vmatprep.subr.bf16.mxu1 %v6944_v32  ;;  %v7002_v32 = vld [vmem:[%s10267_s3 + $0x808] sm:$0xff]  ;;  %v6742_v35 = vcombine.high %v1219_v26, %v1223_v27  ;;  %v6741_v40 = vcombine.low %v1219_v26, %v1223_v27 }
 0x2d6   : > { %2112 = vmatpush1.bf16.msra.mxu0 %v6737_v34  ;;  %v7006_v34 = vld [vmem:[%s10267_s3 + $0x828] sm:$0xff] }
 0x2d7   : > { %3280 = vmatmul.mubr.bf16.vlgmr.msra.gmra.mrb[24].mxu1 %v8808_v41  ;;  %2179 = vmatprep.subr.bf16.mxu0 %v6686_v37  ;;  %v6745_v37 = vld [vmem:[%s10267_s3 + $0x400] sm:$0xff]  ;;  %v7068_v39 = vcombine.high %v7002_v32, %v7006_v34  ;;  %v7067_v46 = vcombine.low %v7002_v32, %v7006_v34  ;;  %v7058_v27 = vld [vmem:[%s10267_s3 + $0x9c8] sm:$0xff] }
 0x2d8   : > { %3330 = vmatpush1.bf16.msra.mxu1 %v6943_v38  ;;  %3361 = vmatprep.mubr.bf16.mxu1 %v8037_v44  ;;  %v6749_v38 = vld [vmem:[%s10267_s3 + $0x420] sm:$0xff] }
 0x2d9   : > { %2130 = vmatmul.mubr.bf16.vlgmr.msra.gmra.mrb[28].mxu0 %v8398_v4  ;;  %3331 = vmatprep.subr.bf16.mxu1 %v6952_v42  ;;  %v7010_v42 = vld [vmem:[%s10267_s3 + $0x848] sm:$0xff]  ;;  %v6810_v45 = vcombine.high %v6745_v37, %v6749_v38  ;;  %v6809_v51 = vcombine.low %v6745_v37, %v6749_v38  ;;  %v6801_v34 = vld [vmem:[%s10267_s3 + $0x5c0] sm:$0xff]  ;;  %v7004_v38 = vld [vmem:[%s10267_s3 + $0x818] sm:$0xff] }
 0x2da   : > { %2180 = vmatpush1.bf16.msra.mxu0 %v6685_v43  ;;  %2211 = vmatprep.mubr.bf16.mxu0 %v8037_v44  ;;  %v7014_v43 = vld [vmem:[%s10267_s3 + $0x868] sm:$0xff] }
 0x2db   : > { %2181 = vmatprep.subr.bf16.mxu0 %v6694_v31  ;;  %v6753_v31 = vld [vmem:[%s10267_s3 + $0x440] sm:$0xff]  ;;  %v7076_v50 = vcombine.high %v7010_v42, %v7014_v43  ;;  %v7075_v54 = vcombine.low %v7010_v42, %v7014_v43  ;;  %v6747_v43 = vld [vmem:[%s10267_s3 + $0x410] sm:$0xff] }
 0x2dc   : > { %3332 = vmatpush1.bf16.msra.mxu1 %v6951_v47  ;;  %v6757_v47 = vld [vmem:[%s10267_s3 + $0x460] sm:$0xff] }
 0x2dd   : > { %3333 = vmatprep.subr.bf16.mxu1 %v6960_v14  ;;  %v7018_v14 = vld [vmem:[%s10267_s3 + $0x888] sm:$0xff]  ;;  %v6818_v53 = vcombine.high %v6753_v31, %v6757_v47  ;;  %v6817_v58 = vcombine.low %v6753_v31, %v6757_v47  ;;  %v7012_v47 = vld [vmem:[%s10267_s3 + $0x858] sm:$0xff] }
 0x2de   : > { %2182 = vmatpush1.bf16.msra.mxu0 %v6693_v52  ;;  %v7022_v52 = vld [vmem:[%s10267_s3 + $0x8a8] sm:$0xff] }
 0x2df   : > { %2183 = vmatprep.subr.bf16.mxu0 %v6702_v55  ;;  %v6761_v55 = vld [vmem:[%s10267_s3 + $0x480] sm:$0xff]  ;;  %v7084_v57 = vcombine.high %v7018_v14, %v7022_v52  ;;  %v7083_v62 = vcombine.low %v7018_v14, %v7022_v52  ;;  %v6755_v52 = vld [vmem:[%s10267_s3 + $0x450] sm:$0xff] }
 0x2e0   : > { %3334 = vmatpush1.bf16.msra.mxu1 %v6959_v56  ;;  %v6765_v56 = vld [vmem:[%s10267_s3 + $0x4a0] sm:$0xff] }
 0x2e1   : > { %3335 = vmatprep.subr.bf16.mxu1 %v6968_v59  ;;  %v7026_v59 = vld [vmem:[%s10267_s3 + $0x8c8] sm:$0xff]  ;;  %v6826_v61 = vcombine.high %v6761_v55, %v6765_v56  ;;  %v6825_v1 = vcombine.low %v6761_v55, %v6765_v56  ;;  %v7020_v56 = vld [vmem:[%s10267_s3 + $0x898] sm:$0xff] }
 0x2e2   : > { %2184 = vmatpush1.bf16.msra.mxu0 %v6701_v60  ;;  %v7030_v60 = vld [vmem:[%s10267_s3 + $0x8e8] sm:$0xff] }
 0x2e3   : > { %2185 = vmatprep.subr.bf16.mxu0 %v6710_v63  ;;  %v6773_v63 = vld [vmem:[%s10267_s3 + $0x4e0] sm:$0xff]  ;;  %v7091_v8 = vcombine.low %v7026_v59, %v7030_v60 }
 0x2e4   : > { %3336 = vmatpush1.bf16.msra.mxu1 %v6967_v49  ;;  %v7092_v49 = vcombine.high %v7026_v59, %v7030_v60  ;;  %v6763_v60 = vld [vmem:[%s10267_s3 + $0x490] sm:$0xff] }
 0x2e5   : > { %3337 = vmatprep.subr.bf16.mxu1 %v6976_v6  ;;  %v7038_v6 = vld [vmem:[%s10267_s3 + $0x928] sm:$0xff] }
 0x2e6   : > { %2186 = vmatpush1.bf16.msra.mxu0 %v6709_v7  ;;  %v7099_v48 = vcombine.low %v7034_v2, %v7038_v6 }
 0x2e7   : > { %2187 = vmatprep.subr.bf16.mxu0 %v6718_v10  ;;  %v6781_v10 = vld [vmem:[%s10267_s3 + $0x520] sm:$0xff] }
 0x2e8   : > { %3338 = vmatpush1.bf16.msra.mxu1 %v6975_v11  ;;  %v7100_v11 = vcombine.high %v7034_v2, %v7038_v6  ;;  %v6841_v19 = vcombine.low %v6777_v9, %v6781_v10  ;;  %v6771_v6 = vld [vmem:[%s10267_s3 + $0x4d0] sm:$0xff] }
 0x2e9   : > { %3339 = vmatprep.subr.bf16.mxu1 %v6984_v15  ;;  %v7046_v15 = vld [vmem:[%s10267_s3 + $0x968] sm:$0xff] }
 0x2ea   : > { %2188 = vmatpush1.bf16.msra.mxu0 %v6717_v16  ;;  %v6842_v16 = vcombine.high %v6777_v9, %v6781_v10  ;;  %v7107_v23 = vcombine.low %v7042_v13, %v7046_v15  ;;  %v7036_v10 = vld [vmem:[%s10267_s3 + $0x918] sm:$0xff] }
 0x2eb   : > { %2189 = vmatprep.subr.bf16.mxu0 %v6726_v17  ;;  %v6789_v17 = vld [vmem:[%s10267_s3 + $0x560] sm:$0xff] }
 0x2ec   : > { %3340 = vmatpush1.bf16.msra.mxu1 %v6983_v18  ;;  %v7108_v18 = vcombine.high %v7042_v13, %v7046_v15  ;;  %v6849_v26 = vcombine.low %v6785_v5, %v6789_v17  ;;  %v6779_v15 = vld [vmem:[%s10267_s3 + $0x510] sm:$0xff] }
 0x2ed   : > { %3341 = vmatprep.subr.bf16.mxu1 %v6992_v21  ;;  %v7054_v21 = vld [vmem:[%s10267_s3 + $0x9a8] sm:$0xff] }
 0x2ee   : > { %2190 = vmatpush1.bf16.msra.mxu0 %v6725_v22  ;;  %v6850_v22 = vcombine.high %v6785_v5, %v6789_v17  ;;  %v7115_v32 = vcombine.low %v7050_v20, %v7054_v21  ;;  %v7044_v17 = vld [vmem:[%s10267_s3 + $0x958] sm:$0xff] }
 0x2ef   : > { %2191 = vmatprep.subr.bf16.mxu0 %v6734_v24  ;;  %v6797_v24 = vld [vmem:[%s10267_s3 + $0x5a0] sm:$0xff] }
 0x2f0   : > { %3342 = vmatpush1.bf16.msra.mxu1 %v6991_v25  ;;  %v7116_v25 = vcombine.high %v7050_v20, %v7054_v21  ;;  %v6857_v37 = vcombine.low %v6793_v3, %v6797_v24  ;;  %v6787_v21 = vld [vmem:[%s10267_s3 + $0x550] sm:$0xff] }
 0x2f1   : > { %3343 = vmatprep.subr.bf16.mxu1 %v7000_v29  ;;  %v7062_v29 = vld [vmem:[%s10267_s3 + $0x9e8] sm:$0xff] }
 0x2f2   : > { %2192 = vmatpush1.bf16.msra.mxu0 %v6733_v30  ;;  %v6858_v30 = vcombine.high %v6793_v3, %v6797_v24  ;;  %v7123_v42 = vcombine.low %v7058_v27, %v7062_v29  ;;  %v7052_v24 = vld [vmem:[%s10267_s3 + $0x998] sm:$0xff] }
 0x2f3   : > { %2193 = vmatprep.subr.bf16.mxu0 %v6742_v35  ;;  %v6805_v35 = vld [vmem:[%s10267_s3 + $0x5e0] sm:$0xff] }
 0x2f4   : > { %3344 = vmatpush1.bf16.msra.mxu1 %v6999_v36  ;;  %v7124_v36 = vcombine.high %v7058_v27, %v7062_v29  ;;  %v6865_v31 = vcombine.low %v6801_v34, %v6805_v35  ;;  %v6795_v29 = vld [vmem:[%s10267_s3 + $0x590] sm:$0xff] }
 0x2f5   : > { %3804 = vmatprep.subr.bf16.mxu1 %v7068_v39  ;;  %v7008_v39 = vld [vmem:[%s10267_s3 + $0x838] sm:$0xff] }
 0x2f6   : > { %2194 = vmatpush1.bf16.msra.mxu0 %v6741_v40  ;;  %v6866_v40 = vcombine.high %v6801_v34, %v6805_v35  ;;  %v7071_v14 = vcombine.low %v7004_v38, %v7008_v39 }
 0x2f7   : > { %3362 = vmatmul.mubr.bf16.vlgmr.msra.gmra.mrb[28].mxu1 %v8808_v41  ;;  %2646 = vmatprep.subr.bf16.mxu0 %v6810_v45  ;;  %v6751_v45 = vld [vmem:[%s10267_s3 + $0x430] sm:$0xff] }
 0x2f8   : > { %3805 = vmatpush1.bf16.msra.mxu1 %v7067_v46  ;;  %3836 = vmatprep.mubr.bf16.mxu1 %v8037_v44  ;;  %v7072_v46 = vcombine.high %v7004_v38, %v7008_v39  ;;  %v6813_v55 = vcombine.low %v6747_v43, %v6751_v45 }
 0x2f9   : > { %2212 = vmatmul.mubr.bf16.vlgmr.msra.gmra.mrb[32].mxu0 %v8398_v4  ;;  %3806 = vmatprep.subr.bf16.mxu1 %v7076_v50  ;;  %v6769_v4 = vld [vmem:[%s10267_s3 + $0x4c0] sm:$0xff]  ;;  %v7016_v50 = vld [vmem:[%s10267_s3 + $0x878] sm:$0xff] }
 0x2fa   : > { %2647 = vmatpush1.bf16.msra.mxu0 %v6809_v51  ;;  %2678 = vmatprep.mubr.bf16.mxu0 %v8037_v44  ;;  %v6834_v7 = vcombine.high %v6769_v4, %v6773_v63  ;;  %v6833_v12 = vcombine.low %v6769_v4, %v6773_v63  ;;  %v6814_v51 = vcombine.high %v6747_v43, %v6751_v45  ;;  %v7028_v63 = vld [vmem:[%s10267_s3 + $0x8d8] sm:$0xff]  ;;  %v6803_v45 = vld [vmem:[%s10267_s3 + $0x5d0] sm:$0xff] }
 0x2fb   : > { %2648 = vmatprep.subr.bf16.mxu0 %v6818_v53  ;;  %v6759_v53 = vld [vmem:[%s10267_s3 + $0x470] sm:$0xff]  ;;  %v7079_v59 = vcombine.low %v7012_v47, %v7016_v50 }
 0x2fc   : > { %3807 = vmatpush1.bf16.msra.mxu1 %v7075_v54  ;;  %v7080_v54 = vcombine.high %v7012_v47, %v7016_v50  ;;  %v6821_v4 = vcombine.low %v6755_v52, %v6759_v53 }
 0x2fd   : > { %3808 = vmatprep.subr.bf16.mxu1 %v7084_v57  ;;  %v7024_v57 = vld [vmem:[%s10267_s3 + $0x8b8] sm:$0xff] }
 0x2fe   : > { %2649 = vmatpush1.bf16.msra.mxu0 %v6817_v58  ;;  %v6822_v58 = vcombine.high %v6755_v52, %v6759_v53  ;;  %v7087_v2 = vcombine.low %v7020_v56, %v7024_v57  ;;  %v7130_v52 = vld [vmem:[%s10267_s3 + $0xa08] sm:$0xff] }
 0x2ff   : > { %2650 = vmatprep.subr.bf16.mxu0 %v6826_v61  ;;  %v6767_v61 = vld [vmem:[%s10267_s3 + $0x4b0] sm:$0xff]  ;;  %v7134_v53 = vld [vmem:[%s10267_s3 + $0xa28] sm:$0xff] }
 0x300   : > { %3809 = vmatpush1.bf16.msra.mxu1 %v7083_v62  ;;  %v7088_v62 = vcombine.high %v7020_v56, %v7024_v57  ;;  %v6829_v9 = vcombine.low %v6763_v60, %v6767_v61  ;;  %v6873_v57 = vld [vmem:[%s10267_s3 + $0x600] sm:$0xff] }
 0x301   : > { %3810 = vmatprep.subr.bf16.mxu1 %v7092_v49  ;;  %v7032_v49 = vld [vmem:[%s10267_s3 + $0x8f8] sm:$0xff] }
 0x302   : > { %2651 = vmatpush1.bf16.msra.mxu0 %v6825_v1  ;;  %v6830_v1 = vcombine.high %v6763_v60, %v6767_v61  ;;  %v7095_v13 = vcombine.low %v7028_v63, %v7032_v49  ;;  %v7138_v61 = vld [vmem:[%s10267_s3 + $0xa48] sm:$0xff] }
 0x303   : > { %2652 = vmatprep.subr.bf16.mxu0 %v6834_v7  ;;  %v6775_v7 = vld [vmem:[%s10267_s3 + $0x4f0] sm:$0xff] }
 0x304   : > { %3811 = vmatpush1.bf16.msra.mxu1 %v7091_v8  ;;  %v7096_v8 = vcombine.high %v7028_v63, %v7032_v49  ;;  %v6837_v5 = vcombine.low %v6771_v6, %v6775_v7  ;;  %v7195_v63 = vcombine.low %v7130_v52, %v7134_v53  ;;  %v6881_v49 = vld [vmem:[%s10267_s3 + $0x640] sm:$0xff] }
 0x305   : > { %3812 = vmatprep.subr.bf16.mxu1 %v7100_v11  ;;  %v7040_v11 = vld [vmem:[%s10267_s3 + $0x938] sm:$0xff] }
 0x306   : > { %2653 = vmatpush1.bf16.msra.mxu0 %v6833_v12  ;;  %v6838_v12 = vcombine.high %v6771_v6, %v6775_v7  ;;  %v7103_v20 = vcombine.low %v7036_v10, %v7040_v11  ;;  %v7146_v7 = vld [vmem:[%s10267_s3 + $0xa88] sm:$0xff] }
 0x307   : > { %2654 = vmatprep.subr.bf16.mxu0 %v6842_v16  ;;  %v6783_v16 = vld [vmem:[%s10267_s3 + $0x530] sm:$0xff] }
 0x308   : > { %3813 = vmatpush1.bf16.msra.mxu1 %v7099_v48  ;;  %v7104_v48 = vcombine.high %v7036_v10, %v7040_v11  ;;  %v6845_v3 = vcombine.low %v6779_v15, %v6783_v16  ;;  %v6889_v11 = vld [vmem:[%s10267_s3 + $0x680] sm:$0xff] }
 0x309   : > { %3814 = vmatprep.subr.bf16.mxu1 %v7108_v18  ;;  %v7048_v18 = vld [vmem:[%s10267_s3 + $0x978] sm:$0xff] }
 0x30a   : > { %2655 = vmatpush1.bf16.msra.mxu0 %v6841_v19  ;;  %v6846_v19 = vcombine.high %v6779_v15, %v6783_v16  ;;  %v7111_v27 = vcombine.low %v7044_v17, %v7048_v18  ;;  %v7154_v16 = vld [vmem:[%s10267_s3 + $0xac8] sm:$0xff] }
 0x30b   : > { %2656 = vmatprep.subr.bf16.mxu0 %v6850_v22  ;;  %v6791_v22 = vld [vmem:[%s10267_s3 + $0x570] sm:$0xff] }
 0x30c   : > { %3815 = vmatpush1.bf16.msra.mxu1 %v7107_v23  ;;  %v7112_v23 = vcombine.high %v7044_v17, %v7048_v18  ;;  %v6853_v35 = vcombine.low %v6787_v21, %v6791_v22  ;;  %v6901_v18 = vld [vmem:[%s10267_s3 + $0x6e0] sm:$0xff] }
 0x30d   : > { %3816 = vmatprep.subr.bf16.mxu1 %v7116_v25  ;;  %v7056_v25 = vld [vmem:[%s10267_s3 + $0x9b8] sm:$0xff] }
 0x30e   : > { %2657 = vmatpush1.bf16.msra.mxu0 %v6849_v26  ;;  %v6854_v26 = vcombine.high %v6787_v21, %v6791_v22  ;;  %v7119_v43 = vcombine.low %v7052_v24, %v7056_v25  ;;  %v7162_v21 = vld [vmem:[%s10267_s3 + $0xb08] sm:$0xff] }
 0x30f   : > { %2658 = vmatprep.subr.bf16.mxu0 %v6858_v30  ;;  %v6799_v30 = vld [vmem:[%s10267_s3 + $0x5b0] sm:$0xff]  ;;  %v7166_v22 = vld [vmem:[%s10267_s3 + $0xb28] sm:$0xff] }
 0x310   : > { %3817 = vmatpush1.bf16.msra.mxu1 %v7115_v32  ;;  %v7120_v32 = vcombine.high %v7052_v24, %v7056_v25  ;;  %v6862_v39 = vcombine.high %v6795_v29, %v6799_v30  ;;  %v6905_v24 = vld [vmem:[%s10267_s3 + $0x700] sm:$0xff] }
 0x311   : > { %3818 = vmatprep.subr.bf16.mxu1 %v7124_v36  ;;  %v7060_v36 = vld [vmem:[%s10267_s3 + $0x9d8] sm:$0xff]  ;;  %v6909_v25 = vld [vmem:[%s10267_s3 + $0x720] sm:$0xff] }
 0x312   : > { %2659 = vmatpush1.bf16.msra.mxu0 %v6857_v37  ;;  %v7064_v37 = vld [vmem:[%s10267_s3 + $0x9f8] sm:$0xff] }
 0x313   : > { %2660 = vmatprep.subr.bf16.mxu0 %v6866_v40  ;;  %v7128_v50 = vcombine.high %v7060_v36, %v7064_v37  ;;  %v7127_v56 = vcombine.low %v7060_v36, %v7064_v37  ;;  %v6913_v36 = vld [vmem:[%s10267_s3 + $0x740] sm:$0xff] }
 0x314   : > { %3819 = vmatpush1.bf16.msra.mxu1 %v7123_v42  ;;  %v6917_v37 = vld [vmem:[%s10267_s3 + $0x760] sm:$0xff] }
 0x315   : > { %3886 = vmatprep.subr.bf16.mxu1 %v7072_v46  ;;  %v6807_v46 = vld [vmem:[%s10267_s3 + $0x5f0] sm:$0xff] }
 0x316   : > { %2661 = vmatpush1.bf16.msra.mxu0 %v6865_v31  ;;  %v6869_v60 = vcombine.low %v6803_v45, %v6807_v46 }
 0x317   : > { %3837 = vmatmul.mubr.bf16.vlgmr.msra.gmra.mrb[32].mxu1 %v8433_v33  ;;  %2728 = vmatprep.subr.bf16.mxu0 %v6814_v51 }
 0x318   : > { %3887 = vmatpush1.bf16.msra.mxu1 %v7071_v14  ;;  %3918 = vmatprep.mubr.bf16.mxu1 %v8037_v44  ;;  %v6861_v14 = vcombine.low %v6795_v29, %v6799_v30  ;;  %v7170_v29 = vld [vmem:[%s10267_s3 + $0xb48] sm:$0xff] }
 0x319   : > { %2679 = vmatmul.mubr.bf16.vlgmr.msra.gmra.mrb[36].mxu0 %v8390_v0  ;;  %3888 = vmatprep.subr.bf16.mxu1 %v7080_v54  ;;  %v7174_v30 = vld [vmem:[%s10267_s3 + $0xb68] sm:$0xff] }
 0x31a   : > { %2729 = vmatpush1.bf16.msra.mxu0 %v6813_v55  ;;  %2760 = vmatprep.mubr.bf16.mxu0 %v8037_v44  ;;  %v6870_v55 = vcombine.high %v6803_v45, %v6807_v46  ;;  %v7182_v45 = vld [vmem:[%s10267_s3 + $0xba8] sm:$0xff]  ;;  %v6978_v46 = vcombine.high %v6913_v36, %v6917_v37 }
 0x31b   : > { %2730 = vmatprep.subr.bf16.mxu0 %v6822_v58  ;;  %v6877_v58 = vld [vmem:[%s10267_s3 + $0x620] sm:$0xff] }
 0x31c   : > { %3889 = vmatpush1.bf16.msra.mxu1 %v7079_v59  ;;  %v7196_v59 = vcombine.high %v7130_v52, %v7134_v53  ;;  %v6937_v6 = vcombine.low %v6873_v57, %v6877_v58  ;;  %v6977_v53 = vcombine.low %v6913_v36, %v6917_v37  ;;  %v6899_v37 = vld [vmem:[%s10267_s3 + $0x6d0] sm:$0xff] }
 0x31d   : > { %3890 = vmatprep.subr.bf16.mxu1 %v7088_v62  ;;  %v7142_v62 = vld [vmem:[%s10267_s3 + $0xa68] sm:$0xff] }
 0x31e   : > { %2731 = vmatpush1.bf16.msra.mxu0 %v6821_v4  ;;  %v6938_v4 = vcombine.high %v6873_v57, %v6877_v58  ;;  %v7203_v10 = vcombine.low %v7138_v61, %v7142_v62 }
 0x31f   : > { %2732 = vmatprep.subr.bf16.mxu0 %v6830_v1  ;;  %v6885_v1 = vld [vmem:[%s10267_s3 + $0x660] sm:$0xff] }
 0x320   : > { %3891 = vmatpush1.bf16.msra.mxu1 %v7087_v2  ;;  %v7204_v2 = vcombine.high %v7138_v61, %v7142_v62  ;;  %v6945_v15 = vcombine.low %v6881_v49, %v6885_v1  ;;  %v6929_v61 = vld [vmem:[%s10267_s3 + $0x7c0] sm:$0xff] }
 0x321   : > { %3892 = vmatprep.subr.bf16.mxu1 %v7096_v8  ;;  %v7150_v8 = vld [vmem:[%s10267_s3 + $0xaa8] sm:$0xff]  ;;  %v6933_v62 = vld [vmem:[%s10267_s3 + $0x7e0] sm:$0xff] }
 0x322   : > { %2733 = vmatpush1.bf16.msra.mxu0 %v6829_v9  ;;  %v6946_v9 = vcombine.high %v6881_v49, %v6885_v1  ;;  %v7211_v17 = vcombine.low %v7146_v7, %v7150_v8 }
 0x323   : > { %2734 = vmatprep.subr.bf16.mxu0 %v6838_v12  ;;  %v6893_v12 = vld [vmem:[%s10267_s3 + $0x6a0] sm:$0xff] }
 0x324   : > { %3893 = vmatpush1.bf16.msra.mxu1 %v7095_v13  ;;  %v7212_v13 = vcombine.high %v7146_v7, %v7150_v8  ;;  %v7132_v8 = vld [vmem:[%s10267_s3 + $0xa18] sm:$0xff] }
 0x325   : > { %3894 = vmatprep.subr.bf16.mxu1 %v7104_v48  ;;  %v7158_v48 = vld [vmem:[%s10267_s3 + $0xae8] sm:$0xff] }
 0x326   : > { %2735 = vmatpush1.bf16.msra.mxu0 %v6837_v5  ;;  %v6954_v5 = vcombine.high %v6889_v11, %v6893_v12 }
 0x327   : > { %2736 = vmatprep.subr.bf16.mxu0 %v6846_v19  ;;  %v7220_v19 = vcombine.high %v7154_v16, %v7158_v48 }
 0x328   : > { %3895 = vmatpush1.bf16.msra.mxu1 %v7103_v20  ;;  %v6953_v20 = vcombine.low %v6889_v11, %v6893_v12  ;;  %v6879_v12 = vld [vmem:[%s10267_s3 + $0x630] sm:$0xff] }
 0x329   : > { %3896 = vmatprep.subr.bf16.mxu1 %v7112_v23 }
 0x32a   : > { %2737 = vmatpush1.bf16.msra.mxu0 %v6845_v3  ;;  %v9074_v34 = vpop.f32.mrb[8].mxu1  ;;  %v7219_v3 = vcombine.low %v7154_v16, %v7158_v48  ;;  %v7140_v16 = vld [vmem:[%s10267_s3 + $0xa58] sm:$0xff] }
 0x32b   : > { %v9082_v38 = vpop.f32.mrb[9].mxu1  ;;  %2738 = vmatprep.subr.bf16.mxu0 %v6854_v26  ;;  %v7228_v26 = vcombine.high %v7162_v21, %v7166_v22  ;;  %v7144_v48 = vld [vmem:[%s10267_s3 + $0xa78] sm:$0xff] }
 0x32c   : > { %3897 = vmatpush1.bf16.msra.mxu1 %v7111_v27  ;;  %v9084_v40 = vpop.f32.mrb[12].mxu0  ;;  %v2176_v42 = vpop.f32.mrb[10].mxu1 }
 0x32d   : > { %v9092_v31 = vpop.f32.mrb[13].mxu0  ;;  %v2177_v47 = vpop.f32.mrb[11].mxu1  ;;  %3898 = vmatprep.subr.bf16.mxu1 %v7120_v32  ;;  %v6970_v32 = vcombine.high %v6905_v24, %v6909_v25  ;;  %v6969_v42 = vcombine.low %v6905_v24, %v6909_v25  ;;  %v7207_v24 = vcombine.low %v7140_v16, %v7144_v48  ;;  %v6891_v25 = vld [vmem:[%s10267_s3 + $0x690] sm:$0xff] }
 0x32e   : > { %2739 = vmatpush1.bf16.msra.mxu0 %v6853_v35  ;;  %v1651_v51 = vpop.f32.mrb[14].mxu0  ;;  %v7227_v35 = vcombine.low %v7162_v21, %v7166_v22  ;;  %v7235_v47 = vcombine.low %v7170_v29, %v7174_v30  ;;  %v7148_v22 = vld [vmem:[%s10267_s3 + $0xa98] sm:$0xff] }
 0x32f   : > { %v1652_v54 = vpop.f32.mrb[15].mxu0  ;;  %2740 = vmatprep.subr.bf16.mxu0 %v6862_v39  ;;  %v7236_v39 = vcombine.high %v7170_v29, %v7174_v30  ;;  %v6925_v51 = vld [vmem:[%s10267_s3 + $0x7a0] sm:$0xff]  ;;  %v7156_v30 = vld [vmem:[%s10267_s3 + $0xad8] sm:$0xff] }
 0x330   : > { %3899 = vmatpush1.bf16.msra.mxu1 %v7119_v43  ;;  %v7178_v43 = vld [vmem:[%s10267_s3 + $0xb88] sm:$0xff] }
 0x331   : > { %3900 = vmatprep.subr.bf16.mxu1 %v7128_v50  ;;  %v6921_v50 = vld [vmem:[%s10267_s3 + $0x780] sm:$0xff]  ;;  %v7186_v54 = vld [vmem:[%s10267_s3 + $0xbc8] sm:$0xff] }
 0x332   : > { %2741 = vmatpush1.bf16.msra.mxu0 %v6861_v14  ;;  %v7244_v14 = vcombine.high %v7178_v43, %v7182_v45  ;;  %v6986_v57 = vcombine.high %v6921_v50, %v6925_v51  ;;  %v6985_v7 = vcombine.low %v6921_v50, %v6925_v51  ;;  %v6907_v51 = vld [vmem:[%s10267_s3 + $0x710] sm:$0xff] }
 0x333   : > { %2742 = vmatprep.subr.bf16.mxu0 %v6870_v55  ;;  %v7190_v55 = vld [vmem:[%s10267_s3 + $0xbe8] sm:$0xff] }
 0x334   : > { %3901 = vmatpush1.bf16.msra.mxu1 %v7127_v56  ;;  %v7252_v1 = vcombine.high %v7186_v54, %v7190_v55  ;;  %v7251_v11 = vcombine.low %v7186_v54, %v7190_v55  ;;  %v7172_v55 = vld [vmem:[%s10267_s3 + $0xb58] sm:$0xff] }
 0x335   : > { %4364 = vmatprep.subr.bf16.mxu1 %v7196_v59 }
 0x336   : > { %2743 = vmatpush1.bf16.msra.mxu0 %v6869_v60  ;;  %v7243_v60 = vcombine.low %v7178_v43, %v7182_v45  ;;  %v7164_v45 = vld [vmem:[%s10267_s3 + $0xb18] sm:$0xff] }
 0x337   : > { %3919 = vmatmul.mubr.bf16.vlgmr.msra.gmra.mrb[36].mxu1 %v8433_v33  ;;  %3206 = vmatprep.subr.bf16.mxu0 %v6938_v4 }
 0x338   : > { %4365 = vmatpush1.bf16.msra.mxu1 %v7195_v63  ;;  %4396 = vmatprep.mubr.bf16.mxu1 %v8037_v44 }
 0x339   : > { %2761 = vmatmul.mubr.bf16.vlgmr.msra.gmra.mrb[40].mxu0 %v8390_v0  ;;  %4366 = vmatprep.subr.bf16.mxu1 %v7204_v2  ;;  %v6897_v0 = vld [vmem:[%s10267_s3 + $0x6c0] sm:$0xff] }
 0x33a   : > { %3207 = vmatpush1.bf16.msra.mxu0 %v6937_v6  ;;  %3238 = vmatprep.mubr.bf16.mxu0 %v8037_v44  ;;  %v6962_v23 = vcombine.high %v6897_v0, %v6901_v18  ;;  %v6961_v27 = vcombine.low %v6897_v0, %v6901_v18  ;;  %v6883_v0 = vld [vmem:[%s10267_s3 + $0x650] sm:$0xff] }
 0x33b   : > { %3208 = vmatprep.subr.bf16.mxu0 %v6946_v9  ;;  %v7136_v9 = vld [vmem:[%s10267_s3 + $0xa38] sm:$0xff]  ;;  %v6887_v18 = vld [vmem:[%s10267_s3 + $0x670] sm:$0xff] }
 0x33c   : > { %4367 = vmatpush1.bf16.msra.mxu1 %v7203_v10  ;;  %v6994_v10 = vcombine.high %v6929_v61, %v6933_v62  ;;  %v6949_v29 = vcombine.low %v6883_v0, %v6887_v18 }
 0x33d   : > { %4368 = vmatprep.subr.bf16.mxu1 %v7212_v13  ;;  %v7200_v13 = vcombine.high %v7132_v8, %v7136_v9 }
 0x33e   : > { %3209 = vmatpush1.bf16.msra.mxu0 %v6945_v15  ;;  %v6993_v15 = vcombine.low %v6929_v61, %v6933_v62  ;;  %v6919_v61 = vld [vmem:[%s10267_s3 + $0x770] sm:$0xff] }
 0x33f   : > { %3210 = vmatprep.subr.bf16.mxu0 %v6954_v5 }
 0x340   : > { %4369 = vmatpush1.bf16.msra.mxu1 %v7211_v17  ;;  %v7199_v17 = vcombine.low %v7132_v8, %v7136_v9  ;;  %v6923_v8 = vld [vmem:[%s10267_s3 + $0x790] sm:$0xff] }
 0x341   : > { %4370 = vmatprep.subr.bf16.mxu1 %v7220_v19  ;;  %v9229_v19 = vrot.slane %v8433_v33, 4  ;;  %v6927_v9 = vld [vmem:[%s10267_s3 + $0x7b0] sm:$0xff] }
 0x342   : > { %3211 = vmatpush1.bf16.msra.mxu0 %v6953_v20  ;;  %v7208_v20 = vcombine.high %v7140_v16, %v7144_v48  ;;  %v6990_v16 = vcombine.high %v6923_v8, %v6927_v9 }
 0x343   : > { %3212 = vmatprep.subr.bf16.mxu0 %v6962_v23  ;;  %v7152_v23 = vld [vmem:[%s10267_s3 + $0xab8] sm:$0xff] }
 0x344   : > { %4371 = vmatpush1.bf16.msra.mxu1 %v7219_v3  ;;  %v6950_v3 = vcombine.high %v6883_v0, %v6887_v18  ;;  %v7215_v36 = vcombine.low %v7148_v22, %v7152_v23  ;;  %v6931_v18 = vld [vmem:[%s10267_s3 + $0x7d0] sm:$0xff] }
 0x345   : > { %4372 = vmatprep.subr.bf16.mxu1 %v7228_v26  ;;  %v6895_v26 = vld [vmem:[%s10267_s3 + $0x6b0] sm:$0xff] }
 0x346   : > { %3213 = vmatpush1.bf16.msra.mxu0 %v6961_v27  ;;  %v7216_v27 = vcombine.high %v7148_v22, %v7152_v23  ;;  %v6957_v43 = vcombine.low %v6891_v25, %v6895_v26  ;;  %v6989_v23 = vcombine.low %v6923_v8, %v6927_v9 }
 0x347   : > { %3214 = vmatprep.subr.bf16.mxu0 %v6970_v32  ;;  %v7160_v32 = vld [vmem:[%s10267_s3 + $0xaf8] sm:$0xff] }
 0x348   : > { %4373 = vmatpush1.bf16.msra.mxu1 %v7227_v35  ;;  %v6958_v35 = vcombine.high %v6891_v25, %v6895_v26  ;;  %v7223_v50 = vcombine.low %v7156_v30, %v7160_v32 }
 0x349   : > { %4374 = vmatprep.subr.bf16.mxu1 %v7236_v39  ;;  %v6903_v39 = vld [vmem:[%s10267_s3 + $0x6f0] sm:$0xff] }
 0x34a   : > { %v9182_v52 = vpop.f32.mrb[12].mxu1  ;;  %3215 = vmatpush1.bf16.msra.mxu0 %v6969_v42  ;;  %v7224_v42 = vcombine.high %v7156_v30, %v7160_v32  ;;  %v6965_v54 = vcombine.low %v6899_v37, %v6903_v39  ;;  %v7005_v30 = vld [vmem:[%s10267_s3 + $0x820] sm:$0xff] }
 0x34b   : > { %v9190_v56 = vpop.f32.mrb[13].mxu1  ;;  %3216 = vmatprep.subr.bf16.mxu0 %v6978_v46  ;;  %v7168_v46 = vld [vmem:[%s10267_s3 + $0xb38] sm:$0xff] }
 0x34c   : > { %v1688_v58 = vpop.f32.mrb[16].mxu0  ;;  %v2258_v59 = vpop.f32.mrb[14].mxu1  ;;  %4375 = vmatpush1.bf16.msra.mxu1 %v7235_v47  ;;  %v6966_v47 = vcombine.high %v6899_v37, %v6903_v39  ;;  %v7270_v37 = vld [vmem:[%s10267_s3 + $0xc68] sm:$0xff] }
 0x34d   : > { %v9199_v4 = vadd.f32 %v9074_v34, %v1688_v58  ;;  %v1690_v63 = vpop.f32.mrb[17].mxu0  ;;  %v2259_v49 = vpop.f32.mrb[15].mxu1  ;;  %4376 = vmatprep.subr.bf16.mxu1 %v7244_v14  ;;  %v6911_v14 = vld [vmem:[%s10267_s3 + $0x730] sm:$0xff]  ;;  %v7231_v59 = vcombine.low %v7164_v45, %v7168_v46 }
 0x34e   : > { %v9202_v2 = vadd.f32 %v9082_v38, %v1690_v63  ;;  %v1692_v6 = vpop.f32.mrb[18].mxu0  ;;  %3217 = vmatpush1.bf16.msra.mxu0 %v6977_v53  ;;  %v6875_v38 = vld [vmem:[%s10267_s3 + $0x610] sm:$0xff]  ;;  %v7232_v53 = vcombine.high %v7164_v45, %v7168_v46  ;;  %v6974_v58 = vcombine.high %v6907_v51, %v6911_v14  ;;  %v6973_v63 = vcombine.low %v6907_v51, %v6911_v14  ;;  %v7180_v49 = vld [vmem:[%s10267_s3 + $0xb98] sm:$0xff]  ;;  %v7013_v45 = vld [vmem:[%s10267_s3 + $0x860] sm:$0xff] }
 0x34f   : > { %v1693_v34 = vpop.f32.mrb[19].mxu0  ;;  %3218 = vmatprep.subr.bf16.mxu0 %v6986_v57  ;;  %v6942_v5 = vcombine.high %v6875_v38, %v6879_v12  ;;  %v6941_v21 = vcombine.low %v6875_v38, %v6879_v12  ;;  %v7176_v57 = vld [vmem:[%s10267_s3 + $0xb78] sm:$0xff]  ;;  %v7278_v51 = vld [vmem:[%s10267_s3 + $0xca8] sm:$0xff] }
 0x350   : > { %4377 = vmatpush1.bf16.msra.mxu1 %v7243_v60  ;;  %v6915_v60 = vld [vmem:[%s10267_s3 + $0x750] sm:$0xff]  ;;  %v7240_v62 = vcombine.high %v7172_v55, %v7176_v57  ;;  %v7188_v38 = vld [vmem:[%s10267_s3 + $0xbd8] sm:$0xff] }
 0x351   : > { %4378 = vmatprep.subr.bf16.mxu1 %v7252_v1  ;;  %v7184_v1 = vld [vmem:[%s10267_s3 + $0xbb8] sm:$0xff]  ;;  %v6982_v6 = vcombine.high %v6915_v60, %v6919_v61 }
 0x352   : > { %3219 = vmatpush1.bf16.msra.mxu0 %v6985_v7  ;;  %v7239_v7 = vcombine.low %v7172_v55, %v7176_v57  ;;  %v7248_v34 = vcombine.high %v7180_v49, %v7184_v1  ;;  %v7192_v12 = vld [vmem:[%s10267_s3 + $0xbf8] sm:$0xff]  ;;  %v7247_v0 = vcombine.low %v7180_v49, %v7184_v1  ;;  %v7021_v55 = vld [vmem:[%s10267_s3 + $0x8a0] sm:$0xff] }
 0x353   : > { %3220 = vmatprep.subr.bf16.mxu0 %v6994_v10  ;;  %v7256_v22 = vcombine.high %v7188_v38, %v7192_v12 }
 0x354   : > { %4379 = vmatpush1.bf16.msra.mxu1 %v7251_v11  ;;  %v6981_v11 = vcombine.low %v6915_v60, %v6919_v61  ;;  %v7286_v60 = vld [vmem:[%s10267_s3 + $0xce8] sm:$0xff] }
 0x355   : > { %4446 = vmatprep.subr.bf16.mxu1 %v7200_v13 }
 0x356   : > { %3221 = vmatpush1.bf16.msra.mxu0 %v6993_v15 }
 0x357   : > { %4397 = vmatmul.mubr.bf16.vlgmr.msra.gmra.mrb[40].mxu1 %v9229_v19  ;;  %3288 = vmatprep.subr.bf16.mxu0 %v6942_v5 }
 0x358   : > { %4447 = vmatpush1.bf16.msra.mxu1 %v7199_v17  ;;  %4478 = vmatprep.mubr.bf16.mxu1 %v8037_v44 }
 0x359   : > { %3239 = vmatmul.mubr.bf16.vlgmr.msra.gmra.mrb[44].mxu0 %v8808_v41  ;;  %4448 = vmatprep.subr.bf16.mxu1 %v7208_v20 }
 0x35a   : > { %3289 = vmatpush1.bf16.msra.mxu0 %v6941_v21  ;;  %3320 = vmatprep.mubr.bf16.mxu0 %v8037_v44 }
 0x35b   : > { %3290 = vmatprep.subr.bf16.mxu0 %v6950_v3  ;;  %v7258_v3 = vld [vmem:[%s10267_s3 + $0xc08] sm:$0xff] }
 0x35c   : > { %4449 = vmatpush1.bf16.msra.mxu1 %v7207_v24  ;;  %v7262_v24 = vld [vmem:[%s10267_s3 + $0xc28] sm:$0xff] }
 0x35d   : > { %4450 = vmatprep.subr.bf16.mxu1 %v7216_v27  ;;  %v7255_v27 = vcombine.low %v7188_v38, %v7192_v12  ;;  %v7324_v32 = vcombine.high %v7258_v3, %v7262_v24  ;;  %v7298_v12 = vld [vmem:[%s10267_s3 + $0xd48] sm:$0xff] }
 0x35e   : > { %3291 = vmatpush1.bf16.msra.mxu0 %v6949_v29  ;;  %v7001_v29 = vld [vmem:[%s10267_s3 + $0x800] sm:$0xff] }
 0x35f   : > { %3292 = vmatprep.subr.bf16.mxu0 %v6958_v35  ;;  %v7066_v39 = vcombine.high %v7001_v29, %v7005_v30 }
 0x360   : > { %4451 = vmatpush1.bf16.msra.mxu1 %v7215_v36  ;;  %v7266_v36 = vld [vmem:[%s10267_s3 + $0xc48] sm:$0xff] }
 0x361   : > { %4452 = vmatprep.subr.bf16.mxu1 %v7224_v42  ;;  %v7323_v42 = vcombine.low %v7258_v3, %v7262_v24  ;;  %v7332_v46 = vcombine.high %v7266_v36, %v7270_v37  ;;  %v7049_v24 = vld [vmem:[%s10267_s3 + $0x980] sm:$0xff] }
 0x362   : > { %3293 = vmatpush1.bf16.msra.mxu0 %v6957_v43  ;;  %v7009_v43 = vld [vmem:[%s10267_s3 + $0x840] sm:$0xff] }
 0x363   : > { %3294 = vmatprep.subr.bf16.mxu0 %v6966_v47  ;;  %v7065_v47 = vcombine.low %v7001_v29, %v7005_v30  ;;  %v7074_v14 = vcombine.high %v7009_v43, %v7013_v45  ;;  %v7314_v30 = vld [vmem:[%s10267_s3 + $0xdc8] sm:$0xff] }
 0x364   : > { %4453 = vmatpush1.bf16.msra.mxu1 %v7223_v50  ;;  %v7274_v50 = vld [vmem:[%s10267_s3 + $0xc88] sm:$0xff] }
 0x365   : > { %4454 = vmatprep.subr.bf16.mxu1 %v7232_v53  ;;  %v7331_v53 = vcombine.low %v7266_v36, %v7270_v37  ;;  %v7340_v57 = vcombine.high %v7274_v50, %v7278_v51 }
 0x366   : > { %3295 = vmatpush1.bf16.msra.mxu0 %v6965_v54  ;;  %v7017_v54 = vld [vmem:[%s10267_s3 + $0x880] sm:$0xff] }
 0x367   : > { %3296 = vmatprep.subr.bf16.mxu0 %v6974_v58  ;;  %v7073_v58 = vcombine.low %v7009_v43, %v7013_v45  ;;  %v7082_v61 = vcombine.high %v7017_v54, %v7021_v55  ;;  %v7081_v1 = vcombine.low %v7017_v54, %v7021_v55  ;;  %v7057_v43 = vld [vmem:[%s10267_s3 + $0x9c0] sm:$0xff]  ;;  %v7260_v55 = vld [vmem:[%s10267_s3 + $0xc18] sm:$0xff] }
 0x368   : > { %4455 = vmatpush1.bf16.msra.mxu1 %v7231_v59  ;;  %v7282_v59 = vld [vmem:[%s10267_s3 + $0xcc8] sm:$0xff]  ;;  %v7061_v45 = vld [vmem:[%s10267_s3 + $0x9e0] sm:$0xff] }
 0x369   : > { %4456 = vmatprep.subr.bf16.mxu1 %v7240_v62  ;;  %v7339_v62 = vcombine.low %v7274_v50, %v7278_v51  ;;  %v7348_v49 = vcombine.high %v7282_v59, %v7286_v60  ;;  %v7347_v9 = vcombine.low %v7282_v59, %v7286_v60 }
 0x36a   : > { %v2721_v10 = vpop.f32.mrb[16].mxu1  ;;  %3297 = vmatpush1.bf16.msra.mxu0 %v6973_v63  ;;  %v7029_v63 = vld [vmem:[%s10267_s3 + $0x8e0] sm:$0xff] }
 0x36b   : > { %v9302_v13 = vadd.f32 %v2721_v10, %v9199_v4  ;;  %v2723_v15 = vpop.f32.mrb[17].mxu1  ;;  %3298 = vmatprep.subr.bf16.mxu0 %v6982_v6  ;;  %v6935_v4 = vld [vmem:[%s10267_s3 + $0x7f0] sm:$0xff]  ;;  %v7290_v6 = vld [vmem:[%s10267_s3 + $0xd08] sm:$0xff]  ;;  %v7037_v10 = vld [vmem:[%s10267_s3 + $0x920] sm:$0xff] }
 0x36c   : > { %v9305_v48 = vadd.f32 %v2723_v15, %v9202_v2  ;;  %v9307_v5 = vpop.f32.mrb[20].mxu0  ;;  %v2725_v17 = vpop.f32.mrb[18].mxu1  ;;  %4457 = vmatpush1.bf16.msra.mxu1 %v7239_v7  ;;  %v6998_v26 = vcombine.high %v6931_v18, %v6935_v4  ;;  %v6997_v35 = vcombine.low %v6931_v18, %v6935_v4  ;;  %v7294_v7 = vld [vmem:[%s10267_s3 + $0xd28] sm:$0xff]  ;;  %v7045_v18 = vld [vmem:[%s10267_s3 + $0x960] sm:$0xff] }
 0x36d   : > { %v9315_v20 = vpop.f32.mrb[21].mxu0  ;;  %v2726_v21 = vpop.f32.mrb[19].mxu1  ;;  %4458 = vmatprep.subr.bf16.mxu1 %v7248_v34  ;;  %v7033_v34 = vld [vmem:[%s10267_s3 + $0x900] sm:$0xff]  ;;  %v7302_v15 = vld [vmem:[%s10267_s3 + $0xd68] sm:$0xff]  ;;  %v7355_v17 = vcombine.low %v7290_v6, %v7294_v7 }
 0x36e   : > { %v1733_v2 = vpop.f32.mrb[22].mxu0  ;;  %3299 = vmatpush1.bf16.msra.mxu0 %v6981_v11  ;;  %v7356_v11 = vcombine.high %v7290_v6, %v7294_v7  ;;  %v7364_v4 = vcombine.high %v7298_v12, %v7302_v15  ;;  %v7097_v21 = vcombine.low %v7033_v34, %v7037_v10  ;;  %v7363_v3 = vcombine.low %v7298_v12, %v7302_v15 }
 0x36f   : > { %v1734_v25 = vpop.f32.mrb[23].mxu0  ;;  %3300 = vmatprep.subr.bf16.mxu0 %v6990_v16  ;;  %v7098_v16 = vcombine.high %v7033_v34, %v7037_v10  ;;  %v7310_v2 = vld [vmem:[%s10267_s3 + $0xda8] sm:$0xff] }
 0x370   : > { %4459 = vmatpush1.bf16.msra.mxu1 %v7247_v0  ;;  %v7041_v0 = vld [vmem:[%s10267_s3 + $0x940] sm:$0xff] }
 0x371   : > { %4460 = vmatprep.subr.bf16.mxu1 %v7256_v22  ;;  %v7306_v22 = vld [vmem:[%s10267_s3 + $0xd88] sm:$0xff]  ;;  %v7053_v25 = vld [vmem:[%s10267_s3 + $0x9a0] sm:$0xff]  ;;  %v7105_v29 = vcombine.low %v7041_v0, %v7045_v18 }
 0x372   : > { %3301 = vmatpush1.bf16.msra.mxu0 %v6989_v23  ;;  %v7106_v23 = vcombine.high %v7041_v0, %v7045_v18  ;;  %v7114_v36 = vcombine.high %v7049_v24, %v7053_v25  ;;  %v7113_v54 = vcombine.low %v7049_v24, %v7053_v25 }
 0x373   : > { %3302 = vmatprep.subr.bf16.mxu0 %v6998_v26  ;;  %v7372_v26 = vcombine.high %v7306_v22, %v7310_v2 }
 0x374   : > { %4461 = vmatpush1.bf16.msra.mxu1 %v7255_v27 }
 0x375   : > { %4921 = vmatprep.subr.bf16.mxu1 %v7324_v32  ;;  %v7318_v32 = vld [vmem:[%s10267_s3 + $0xde8] sm:$0xff] }
 0x376   : > { %3303 = vmatpush1.bf16.msra.mxu0 %v6997_v35  ;;  %v7380_v51 = vcombine.high %v7314_v30, %v7318_v32  ;;  %v7379_v60 = vcombine.low %v7314_v30, %v7318_v32  ;;  %v7035_v32 = vld [vmem:[%s10267_s3 + $0x910] sm:$0xff] }
 0x377   : > { %4479 = vmatmul.mubr.bf16.vlgmr.msra.gmra.mrb[44].mxu1 %v9229_v19  ;;  %3763 = vmatprep.subr.bf16.mxu0 %v7066_v39 }
 0x378   : > { %4922 = vmatpush1.bf16.msra.mxu1 %v7323_v42  ;;  %4953 = vmatprep.mubr.bf16.mxu1 %v8037_v44  ;;  %v7371_v42 = vcombine.low %v7306_v22, %v7310_v2 }
 0x379   : > { %3321 = vmatmul.mubr.bf16.vlgmr.msra.gmra.mrb[48].mxu0 %v8808_v41  ;;  %4923 = vmatprep.subr.bf16.mxu1 %v7332_v46  ;;  %v7025_v41 = vld [vmem:[%s10267_s3 + $0x8c0] sm:$0xff] }
 0x37a   : > { %3764 = vmatpush1.bf16.msra.mxu0 %v7065_v47  ;;  %3795 = vmatprep.mubr.bf16.mxu0 %v8037_v44  ;;  %v7090_v8 = vcombine.high %v7025_v41, %v7029_v63  ;;  %v7089_v38 = vcombine.low %v7025_v41, %v7029_v63  ;;  %v7121_v63 = vcombine.low %v7057_v43, %v7061_v45 }
 0x37b   : > { %3765 = vmatprep.subr.bf16.mxu0 %v7074_v14 }
 0x37c   : > { %4924 = vmatpush1.bf16.msra.mxu1 %v7331_v53 }
 0x37d   : > { %4925 = vmatprep.subr.bf16.mxu1 %v7340_v57  ;;  %v7264_v57 = vld [vmem:[%s10267_s3 + $0xc38] sm:$0xff] }
 0x37e   : > { %3766 = vmatpush1.bf16.msra.mxu0 %v7073_v58  ;;  %v7328_v41 = vcombine.high %v7260_v55, %v7264_v57  ;;  %v7327_v7 = vcombine.low %v7260_v55, %v7264_v57  ;;  %v7051_v57 = vld [vmem:[%s10267_s3 + $0x990] sm:$0xff] }
 0x37f   : > { %3767 = vmatprep.subr.bf16.mxu0 %v7082_v61  ;;  %v7007_v61 = vld [vmem:[%s10267_s3 + $0x830] sm:$0xff] }
 0x380   : > { %4926 = vmatpush1.bf16.msra.mxu1 %v7339_v62 }
 0x381   : > { %4927 = vmatprep.subr.bf16.mxu1 %v7348_v49  ;;  %v7268_v49 = vld [vmem:[%s10267_s3 + $0xc58] sm:$0xff] }
 0x382   : > { %3768 = vmatpush1.bf16.msra.mxu0 %v7081_v1  ;;  %v7272_v1 = vld [vmem:[%s10267_s3 + $0xc78] sm:$0xff] }
 0x383   : > { %3769 = vmatprep.subr.bf16.mxu0 %v7090_v8  ;;  %v7011_v8 = vld [vmem:[%s10267_s3 + $0x850] sm:$0xff]  ;;  %v7336_v34 = vcombine.high %v7268_v49, %v7272_v1  ;;  %v7335_v15 = vcombine.low %v7268_v49, %v7272_v1 }
 0x384   : > { %4928 = vmatpush1.bf16.msra.mxu1 %v7347_v9  ;;  %v7015_v9 = vld [vmem:[%s10267_s3 + $0x870] sm:$0xff] }
 0x385   : > { %4929 = vmatprep.subr.bf16.mxu1 %v7356_v11  ;;  %v7276_v11 = vld [vmem:[%s10267_s3 + $0xc98] sm:$0xff]  ;;  %v7078_v12 = vcombine.high %v7011_v8, %v7015_v9  ;;  %v7077_v18 = vcombine.low %v7011_v8, %v7015_v9 }
 0x386   : > { %3770 = vmatpush1.bf16.msra.mxu0 %v7089_v38  ;;  %v7280_v38 = vld [vmem:[%s10267_s3 + $0xcb8] sm:$0xff] }
 0x387   : > { %3771 = vmatprep.subr.bf16.mxu0 %v7098_v16  ;;  %v7019_v16 = vld [vmem:[%s10267_s3 + $0x890] sm:$0xff]  ;;  %v7344_v0 = vcombine.high %v7276_v11, %v7280_v38  ;;  %v7343_v2 = vcombine.low %v7276_v11, %v7280_v38 }
 0x388   : > { %4930 = vmatpush1.bf16.msra.mxu1 %v7355_v17  ;;  %v7023_v17 = vld [vmem:[%s10267_s3 + $0x8b0] sm:$0xff] }
 0x389   : > { %4931 = vmatprep.subr.bf16.mxu1 %v7364_v4  ;;  %v7284_v4 = vld [vmem:[%s10267_s3 + $0xcd8] sm:$0xff]  ;;  %v7086_v22 = vcombine.high %v7019_v16, %v7023_v17  ;;  %v7085_v25 = vcombine.low %v7019_v16, %v7023_v17  ;;  %v7386_v17 = vld [vmem:[%s10267_s3 + $0xe08] sm:$0xff] }
 0x38a   : > { %v2803_v27 = vpop.f32.mrb[20].mxu1  ;;  %3772 = vmatpush1.bf16.msra.mxu0 %v7097_v21  ;;  %v7288_v21 = vld [vmem:[%s10267_s3 + $0xcf8] sm:$0xff] }
 0x38b   : > { %v2805_v35 = vpop.f32.mrb[21].mxu1  ;;  %3773 = vmatprep.subr.bf16.mxu0 %v7106_v23  ;;  %v7027_v23 = vld [vmem:[%s10267_s3 + $0x8d0] sm:$0xff]  ;;  %v7352_v24 = vcombine.high %v7284_v4, %v7288_v21  ;;  %v7351_v30 = vcombine.low %v7284_v4, %v7288_v21  ;;  %v7133_v21 = vld [vmem:[%s10267_s3 + $0xa20] sm:$0xff] }
 0x38c   : > { %v1770_v37 = vpop.f32.mrb[24].mxu0  ;;  %v2807_v39 = vpop.f32.mrb[22].mxu1  ;;  %4932 = vmatpush1.bf16.msra.mxu1 %v7363_v3  ;;  %v7031_v3 = vld [vmem:[%s10267_s3 + $0x8f0] sm:$0xff] }
 0x38d   : > { %v2255_v46 = vadd.f32 %v9182_v52, %v1770_v37  ;;  %v1772_v47 = vpop.f32.mrb[25].mxu0  ;;  %v2808_v50 = vpop.f32.mrb[23].mxu1  ;;  %4933 = vmatprep.subr.bf16.mxu1 %v7372_v26  ;;  %v7122_v52 = vcombine.high %v7057_v43, %v7061_v45  ;;  %v7292_v26 = vld [vmem:[%s10267_s3 + $0xd18] sm:$0xff]  ;;  %v7093_v37 = vcombine.low %v7027_v23, %v7031_v3 }
 0x38e   : > { %v2257_v14 = vadd.f32 %v9190_v56, %v1772_v47  ;;  %v1774_v53 = vpop.f32.mrb[26].mxu0  ;;  %3774 = vmatpush1.bf16.msra.mxu0 %v7105_v29  ;;  %v7003_v56 = vld [vmem:[%s10267_s3 + $0x810] sm:$0xff]  ;;  %v7094_v29 = vcombine.high %v7027_v23, %v7031_v3  ;;  %v7300_v39 = vld [vmem:[%s10267_s3 + $0xd58] sm:$0xff]  ;;  %v7394_v23 = vld [vmem:[%s10267_s3 + $0xe48] sm:$0xff] }
 0x38f   : > { %v1775_v58 = vpop.f32.mrb[27].mxu0  ;;  %3775 = vmatprep.subr.bf16.mxu0 %v7114_v36  ;;  %v9425_v59 = vadd.f32 %v2803_v27, %v2255_v46  ;;  %v7070_v6 = vcombine.high %v7003_v56, %v7007_v61  ;;  %v7069_v10 = vcombine.low %v7003_v56, %v7007_v61  ;;  %v7296_v27 = vld [vmem:[%s10267_s3 + $0xd38] sm:$0xff]  ;;  %v7043_v46 = vld [vmem:[%s10267_s3 + $0x950] sm:$0xff]  ;;  %v7398_v3 = vld [vmem:[%s10267_s3 + $0xe68] sm:$0xff] }
 0x390   : > { %4934 = vmatpush1.bf16.msra.mxu1 %v7371_v42  ;;  %v9433_v62 = vadd.f32 %v2805_v35, %v2257_v14  ;;  %v7039_v35 = vld [vmem:[%s10267_s3 + $0x930] sm:$0xff]  ;;  %v7360_v36 = vcombine.high %v7292_v26, %v7296_v27  ;;  %v7304_v42 = vld [vmem:[%s10267_s3 + $0xd78] sm:$0xff]  ;;  %v7359_v45 = vcombine.low %v7292_v26, %v7296_v27  ;;  %v7137_v26 = vld [vmem:[%s10267_s3 + $0xa40] sm:$0xff] }
 0x391   : > { %4935 = vmatprep.subr.bf16.mxu1 %v7380_v51  ;;  %v7102_v43 = vcombine.high %v7035_v32, %v7039_v35  ;;  %v7047_v47 = vld [vmem:[%s10267_s3 + $0x970] sm:$0xff]  ;;  %v7368_v50 = vcombine.high %v7300_v39, %v7304_v42  ;;  %v7101_v51 = vcombine.low %v7035_v32, %v7039_v35  ;;  %v7308_v14 = vld [vmem:[%s10267_s3 + $0xd98] sm:$0xff]  ;;  %v7367_v55 = vcombine.low %v7300_v39, %v7304_v42  ;;  %v7141_v27 = vld [vmem:[%s10267_s3 + $0xa60] sm:$0xff] }
 0x392   : > { %3776 = vmatpush1.bf16.msra.mxu0 %v7113_v54  ;;  %v7312_v53 = vld [vmem:[%s10267_s3 + $0xdb8] sm:$0xff]  ;;  %v7110_v54 = vcombine.high %v7043_v46, %v7047_v47  ;;  %v7055_v58 = vld [vmem:[%s10267_s3 + $0x9b0] sm:$0xff]  ;;  %v7109_v56 = vcombine.low %v7043_v46, %v7047_v47  ;;  %v7402_v32 = vld [vmem:[%s10267_s3 + $0xe88] sm:$0xff] }
 0x393   : > { %3777 = vmatprep.subr.bf16.mxu0 %v7122_v52  ;;  %v7376_v52 = vcombine.high %v7308_v14, %v7312_v53  ;;  %v7316_v61 = vld [vmem:[%s10267_s3 + $0xdd8] sm:$0xff]  ;;  %v7118_v1 = vcombine.high %v7051_v57, %v7055_v58  ;;  %v7375_v9 = vcombine.low %v7308_v14, %v7312_v53  ;;  %v7117_v16 = vcombine.low %v7051_v57, %v7055_v58  ;;  %v7406_v35 = vld [vmem:[%s10267_s3 + $0xea8] sm:$0xff]  ;;  %v7145_v39 = vld [vmem:[%s10267_s3 + $0xa80] sm:$0xff] }
 0x394   : > { %4936 = vmatpush1.bf16.msra.mxu1 %v7379_v60  ;;  %v7149_v42 = vld [vmem:[%s10267_s3 + $0xaa0] sm:$0xff]  ;;  %v7410_v46 = vld [vmem:[%s10267_s3 + $0xec8] sm:$0xff] }
 0x395   : > { %5003 = vmatprep.subr.bf16.mxu1 %v7328_v41  ;;  %v7320_v41 = vld [vmem:[%s10267_s3 + $0xdf8] sm:$0xff]  ;;  %v7414_v47 = vld [vmem:[%s10267_s3 + $0xee8] sm:$0xff]  ;;  %v7157_v14 = vld [vmem:[%s10267_s3 + $0xae0] sm:$0xff] }
 0x396   : > { %3778 = vmatpush1.bf16.msra.mxu0 %v7121_v63  ;;  %v7383_v4 = vcombine.low %v7316_v61, %v7320_v41  ;;  %v7476_v53 = vcombine.high %v7410_v46, %v7414_v47  ;;  %v7422_v57 = vld [vmem:[%s10267_s3 + $0xf28] sm:$0xff] }
 0x397   : > { %4954 = vmatmul.mubr.bf16.vlgmr.msra.gmra.mrb[48].mxu1 %v8425_v28  ;;  %3845 = vmatprep.subr.bf16.mxu0 %v7070_v6 }
 0x398   : > { %5004 = vmatpush1.bf16.msra.mxu1 %v7327_v7  ;;  %5035 = vmatprep.mubr.bf16.mxu1 %v8037_v44 }
 0x399   : > { %3796 = vmatmul.mubr.bf16.vlgmr.msra.gmra.mrb[52].mxu0 %v8433_v33  ;;  %5005 = vmatprep.subr.bf16.mxu1 %v7336_v34  ;;  %v7059_v34 = vld [vmem:[%s10267_s3 + $0x9d0] sm:$0xff] }
 0x39a   : > { %3846 = vmatpush1.bf16.msra.mxu0 %v7069_v10  ;;  %3877 = vmatprep.mubr.bf16.mxu0 %v8037_v44  ;;  %v7063_v10 = vld [vmem:[%s10267_s3 + $0x9f0] sm:$0xff] }
 0x39b   : > { %3847 = vmatprep.subr.bf16.mxu0 %v7078_v12 }
 0x39c   : > { %5006 = vmatpush1.bf16.msra.mxu1 %v7335_v15 }
 0x39d   : > { %5007 = vmatprep.subr.bf16.mxu1 %v7344_v0  ;;  %v7390_v0 = vld [vmem:[%s10267_s3 + $0xe28] sm:$0xff] }
 0x39e   : > { %3848 = vmatpush1.bf16.msra.mxu0 %v7077_v18  ;;  %v7126_v18 = vcombine.high %v7059_v34, %v7063_v10 }
 0x39f   : > { %3849 = vmatprep.subr.bf16.mxu0 %v7086_v22  ;;  %v7452_v22 = vcombine.high %v7386_v17, %v7390_v0 }
 0x3a0   : > { %5008 = vmatpush1.bf16.msra.mxu1 %v7343_v2  ;;  %v7125_v2 = vcombine.low %v7059_v34, %v7063_v10  ;;  %v7173_v34 = vld [vmem:[%s10267_s3 + $0xb60] sm:$0xff] }
 0x3a1   : > { %5009 = vmatprep.subr.bf16.mxu1 %v7352_v24 }
 0x3a2   : > { %3850 = vmatpush1.bf16.msra.mxu0 %v7085_v25  ;;  %v7451_v25 = vcombine.low %v7386_v17, %v7390_v0  ;;  %v7177_v17 = vld [vmem:[%s10267_s3 + $0xb80] sm:$0xff] }
 0x3a3   : > { %3851 = vmatprep.subr.bf16.mxu0 %v7094_v29  ;;  %v7460_v29 = vcombine.high %v7394_v23, %v7398_v3  ;;  %v7181_v0 = vld [vmem:[%s10267_s3 + $0xba0] sm:$0xff] }
 0x3a4   : > { %5010 = vmatpush1.bf16.msra.mxu1 %v7351_v30 }
 0x3a5   : > { %5011 = vmatprep.subr.bf16.mxu1 %v7360_v36  ;;  %v7202_v36 = vcombine.high %v7137_v26, %v7141_v27 }
 0x3a6   : > { %3852 = vmatpush1.bf16.msra.mxu0 %v7093_v37  ;;  %v7459_v37 = vcombine.low %v7394_v23, %v7398_v3  ;;  %v7242_v23 = vcombine.high %v7177_v17, %v7181_v0 }
 0x3a7   : > { %3853 = vmatprep.subr.bf16.mxu0 %v7102_v43  ;;  %v7468_v43 = vcombine.high %v7402_v32, %v7406_v35 }
 0x3a8   : > { %5012 = vmatpush1.bf16.msra.mxu1 %v7359_v45  ;;  %v7201_v45 = vcombine.low %v7137_v26, %v7141_v27  ;;  %v7185_v27 = vld [vmem:[%s10267_s3 + $0xbc0] sm:$0xff] }
 0x3a9   : > { %5013 = vmatprep.subr.bf16.mxu1 %v7368_v50  ;;  %v7210_v50 = vcombine.high %v7145_v39, %v7149_v42 }
 0x3aa   : > { %v3281_v60 = vpop.f32.mrb[24].mxu1  ;;  %3854 = vmatpush1.bf16.msra.mxu0 %v7101_v51  ;;  %v7467_v51 = vcombine.low %v7402_v32, %v7406_v35 }
 0x3ab   : > { %v9518_v63 = vadd.f32 %v3281_v60, %v9302_v13  ;;  %v3283_v49 = vpop.f32.mrb[25].mxu1  ;;  %3855 = vmatprep.subr.bf16.mxu0 %v7110_v54  ;;  %v7209_v54 = vcombine.low %v7145_v39, %v7149_v42  ;;  %v7161_v60 = vld [vmem:[%s10267_s3 + $0xb00] sm:$0xff]  ;;  %v7388_v39 = vld [vmem:[%s10267_s3 + $0xe18] sm:$0xff] }
 0x3ac   : > { %v9521_v6 = vadd.f32 %v3283_v49, %v9305_v48  ;;  %v2131_v7 = vpop.f32.mrb[28].mxu0  ;;  %v3285_v8 = vpop.f32.mrb[26].mxu1  ;;  %5014 = vmatpush1.bf16.msra.mxu1 %v7367_v55  ;;  %v7384_v48 = vcombine.high %v7316_v61, %v7320_v41  ;;  %v7418_v55 = vld [vmem:[%s10267_s3 + $0xf08] sm:$0xff]  ;;  %v7392_v42 = vld [vmem:[%s10267_s3 + $0xe38] sm:$0xff] }
 0x3ad   : > { %v9530_v13 = vadd.f32 %v2131_v7, %v9084_v40  ;;  %v2133_v11 = vpop.f32.mrb[29].mxu0  ;;  %v3286_v38 = vpop.f32.mrb[27].mxu1  ;;  %5015 = vmatprep.subr.bf16.mxu1 %v7376_v52  ;;  %v7475_v52 = vcombine.low %v7410_v46, %v7414_v47  ;;  %v7484_v61 = vcombine.high %v7418_v55, %v7422_v57  ;;  %v7426_v49 = vld [vmem:[%s10267_s3 + $0xf48] sm:$0xff]  ;;  %v7483_v8 = vcombine.low %v7418_v55, %v7422_v57  ;;  %v7135_v46 = vld [vmem:[%s10267_s3 + $0xa30] sm:$0xff] }
 0x3ae   : > { %v9533_v12 = vadd.f32 %v2133_v11, %v9092_v31  ;;  %v2135_v15 = vpop.f32.mrb[30].mxu0  ;;  %3856 = vmatpush1.bf16.msra.mxu0 %v7109_v56  ;;  %v7129_v31 = vld [vmem:[%s10267_s3 + $0xa00] sm:$0xff]  ;;  %v7434_v38 = vld [vmem:[%s10267_s3 + $0xf88] sm:$0xff]  ;;  %v7456_v47 = vcombine.high %v7388_v39, %v7392_v42  ;;  %v7143_v55 = vld [vmem:[%s10267_s3 + $0xa70] sm:$0xff]  ;;  %v9672_v57 = vrot.slane %v8425_v28, 4 }
 0x3af   : > { %v2136_v40 = vpop.f32.mrb[31].mxu0  ;;  %3857 = vmatprep.subr.bf16.mxu0 %v7118_v1  ;;  %v7194_v24 = vcombine.high %v7129_v31, %v7133_v21  ;;  %v7193_v30 = vcombine.low %v7129_v31, %v7133_v21  ;;  %v7165_v56 = vld [vmem:[%s10267_s3 + $0xb20] sm:$0xff]  ;;  %v7430_v1 = vld [vmem:[%s10267_s3 + $0xf68] sm:$0xff] }
 0x3b0   : > { %5016 = vmatpush1.bf16.msra.mxu1 %v7375_v9  ;;  %v7226_v7 = vcombine.high %v7161_v60, %v7165_v56  ;;  %v7169_v9 = vld [vmem:[%s10267_s3 + $0xb40] sm:$0xff]  ;;  %v7492_v10 = vcombine.high %v7426_v49, %v7430_v1  ;;  %v7225_v11 = vcombine.low %v7161_v60, %v7165_v56  ;;  %v7442_v31 = vld [vmem:[%s10267_s3 + $0xfc8] sm:$0xff]  ;;  %v7404_v60 = vld [vmem:[%s10267_s3 + $0xe98] sm:$0xff] }
 0x3b1   : > { %5017 = vmatprep.subr.bf16.mxu1 %v7384_v48  ;;  %v7438_v48 = vld [vmem:[%s10267_s3 + $0xfa8] sm:$0xff]  ;;  %v7234_v15 = vcombine.high %v7169_v9, %v7173_v34  ;;  %v7408_v56 = vld [vmem:[%s10267_s3 + $0xeb8] sm:$0xff] }
 0x3b2   : > { %3858 = vmatpush1.bf16.msra.mxu0 %v7117_v16  ;;  %v7491_v16 = vcombine.low %v7426_v49, %v7430_v1  ;;  %v7500_v40 = vcombine.high %v7434_v38, %v7438_v48  ;;  %v7446_v21 = vld [vmem:[%s10267_s3 + $0xfe8] sm:$0xff]  ;;  %v7499_v26 = vcombine.low %v7434_v38, %v7438_v48  ;;  %v7147_v49 = vld [vmem:[%s10267_s3 + $0xa90] sm:$0xff] }
 0x3b3   : > { %3859 = vmatprep.subr.bf16.mxu0 %v7126_v18  ;;  %v7151_v1 = vld [vmem:[%s10267_s3 + $0xab0] sm:$0xff] }
 0x3b4   : > { %5018 = vmatpush1.bf16.msra.mxu1 %v7383_v4  ;;  %v7233_v4 = vcombine.low %v7169_v9, %v7173_v34  ;;  %v7412_v9 = vld [vmem:[%s10267_s3 + $0xed8] sm:$0xff]  ;;  %v7155_v38 = vld [vmem:[%s10267_s3 + $0xad0] sm:$0xff] }
 0x3b5   : > { %5481 = vmatprep.subr.bf16.mxu1 %v7452_v22  ;;  %v7416_v34 = vld [vmem:[%s10267_s3 + $0xef8] sm:$0xff]  ;;  %v7159_v48 = vld [vmem:[%s10267_s3 + $0xaf0] sm:$0xff] }
 0x3b6   : > { %3860 = vmatpush1.bf16.msra.mxu0 %v7125_v2 }
 0x3b7   : > { %5036 = vmatmul.mubr.bf16.vlgmr.msra.gmra.mrb[52].mxu1 %v8425_v28  ;;  %4323 = vmatprep.subr.bf16.mxu0 %v7194_v24 }
 0x3b8   : > { %5482 = vmatpush1.bf16.msra.mxu1 %v7451_v25  ;;  %5513 = vmatprep.mubr.bf16.mxu1 %v8037_v44 }
 0x3b9   : > { %3878 = vmatmul.mubr.bf16.vlgmr.msra.gmra.mrb[56].mxu0 %v8433_v33  ;;  %5483 = vmatprep.subr.bf16.mxu1 %v7460_v29  ;;  %v7153_v33 = vld [vmem:[%s10267_s3 + $0xac0] sm:$0xff] }
 0x3ba   : > { %4324 = vmatpush1.bf16.msra.mxu0 %v7193_v30  ;;  %4355 = vmatprep.mubr.bf16.mxu0 %v8037_v44  ;;  %v7218_v58 = vcombine.high %v7153_v33, %v7157_v14  ;;  %v7217_v41 = vcombine.low %v7153_v33, %v7157_v14  ;;  %v7189_v29 = vld [vmem:[%s10267_s3 + $0xbe0] sm:$0xff]  ;;  %v7400_v33 = vld [vmem:[%s10267_s3 + $0xe78] sm:$0xff] }
 0x3bb   : > { %4325 = vmatprep.subr.bf16.mxu0 %v7202_v36 }
 0x3bc   : > { %5484 = vmatpush1.bf16.msra.mxu1 %v7459_v37  ;;  %v7241_v37 = vcombine.low %v7177_v17, %v7181_v0  ;;  %v7420_v17 = vld [vmem:[%s10267_s3 + $0xf18] sm:$0xff] }
 0x3bd   : > { %5485 = vmatprep.subr.bf16.mxu1 %v7468_v43  ;;  %v7250_v43 = vcombine.high %v7185_v27, %v7189_v29  ;;  %v7424_v0 = vld [vmem:[%s10267_s3 + $0xf38] sm:$0xff] }
 0x3be   : > { %4326 = vmatpush1.bf16.msra.mxu0 %v7201_v45  ;;  %v7507_v45 = vcombine.low %v7442_v31, %v7446_v21 }
 0x3bf   : > { %4327 = vmatprep.subr.bf16.mxu0 %v7210_v50  ;;  %v7249_v50 = vcombine.low %v7185_v27, %v7189_v29  ;;  %v7171_v27 = vld [vmem:[%s10267_s3 + $0xb50] sm:$0xff] }
 0x3c0   : > { %5486 = vmatpush1.bf16.msra.mxu1 %v7467_v51  ;;  %v7396_v51 = vld [vmem:[%s10267_s3 + $0xe58] sm:$0xff]  ;;  %v7175_v29 = vld [vmem:[%s10267_s3 + $0xb70] sm:$0xff] }
 0x3c1   : > { %5487 = vmatprep.subr.bf16.mxu1 %v7476_v53  ;;  %v7455_v53 = vcombine.low %v7388_v39, %v7392_v42  ;;  %v7179_v42 = vld [vmem:[%s10267_s3 + $0xb90] sm:$0xff] }
 0x3c2   : > { %4328 = vmatpush1.bf16.msra.mxu0 %v7209_v54  ;;  %v7139_v54 = vld [vmem:[%s10267_s3 + $0xa50] sm:$0xff] }
 0x3c3   : > { %4329 = vmatprep.subr.bf16.mxu0 %v7218_v58  ;;  %v7464_v58 = vcombine.high %v7396_v51, %v7400_v33 }
 0x3c4   : > { %5488 = vmatpush1.bf16.msra.mxu1 %v7475_v52 }
 0x3c5   : > { %5489 = vmatprep.subr.bf16.mxu1 %v7484_v61  ;;  %v7206_v61 = vcombine.high %v7139_v54, %v7143_v55 }
 0x3c6   : > { %4330 = vmatpush1.bf16.msra.mxu0 %v7217_v41  ;;  %v7463_v41 = vcombine.low %v7396_v51, %v7400_v33 }
 0x3c7   : > { %4331 = vmatprep.subr.bf16.mxu0 %v7226_v7  ;;  %v7472_v7 = vcombine.high %v7404_v60, %v7408_v56 }
 0x3c8   : > { %5490 = vmatpush1.bf16.msra.mxu1 %v7483_v8  ;;  %v7205_v8 = vcombine.low %v7139_v54, %v7143_v55 }
 0x3c9   : > { %5491 = vmatprep.subr.bf16.mxu1 %v7492_v10  ;;  %v7214_v10 = vcombine.high %v7147_v49, %v7151_v1 }
 0x3ca   : > { %v3363_v18 = vpop.f32.mrb[28].mxu1  ;;  %4332 = vmatpush1.bf16.msra.mxu0 %v7225_v11  ;;  %v7471_v11 = vcombine.low %v7404_v60, %v7408_v56 }
 0x3cb   : > { %v9630_v22 = vadd.f32 %v3363_v18, %v9425_v59  ;;  %v3365_v2 = vpop.f32.mrb[29].mxu1  ;;  %4333 = vmatprep.subr.bf16.mxu0 %v7234_v15  ;;  %v7480_v15 = vcombine.high %v7412_v9, %v7416_v34  ;;  %v7479_v18 = vcombine.low %v7412_v9, %v7416_v34  ;;  %v7261_v9 = vld [vmem:[%s10267_s3 + $0xc20] sm:$0xff] }
 0x3cc   : > { %v9633_v3 = vadd.f32 %v3365_v2, %v9433_v62  ;;  %v2213_v24 = vpop.f32.mrb[32].mxu0  ;;  %v3367_v25 = vpop.f32.mrb[30].mxu1  ;;  %5492 = vmatpush1.bf16.msra.mxu1 %v7491_v16  ;;  %v7508_v62 = vcombine.high %v7442_v31, %v7446_v21  ;;  %v7213_v16 = vcombine.low %v7147_v49, %v7151_v1  ;;  %v7167_v31 = vld [vmem:[%s10267_s3 + $0xb30] sm:$0xff]  ;;  %v7488_v21 = vcombine.high %v7420_v17, %v7424_v0 }
 0x3cd   : > { %v9642_v59 = vadd.f32 %v2213_v24, %v9307_v5  ;;  %v2215_v30 = vpop.f32.mrb[33].mxu0  ;;  %v3368_v32 = vpop.f32.mrb[31].mxu1  ;;  %5493 = vmatprep.subr.bf16.mxu1 %v7500_v40  ;;  %v7222_v40 = vcombine.high %v7155_v38, %v7159_v48  ;;  %v7221_v2 = vcombine.low %v7155_v38, %v7159_v48  ;;  %v7432_v24 = vld [vmem:[%s10267_s3 + $0xf78] sm:$0xff] }
 0x3ce   : > { %v9645_v35 = vadd.f32 %v2215_v30, %v9315_v20  ;;  %v2217_v36 = vpop.f32.mrb[34].mxu0  ;;  %4334 = vmatpush1.bf16.msra.mxu0 %v7233_v4  ;;  %v7131_v20 = vld [vmem:[%s10267_s3 + $0xa10] sm:$0xff] }
 0x3cf   : > { %v2218_v5 = vpop.f32.mrb[35].mxu0  ;;  %4335 = vmatprep.subr.bf16.mxu0 %v7242_v23  ;;  %v7198_v14 = vcombine.high %v7131_v20, %v7135_v46  ;;  %v7197_v52 = vcombine.low %v7131_v20, %v7135_v46  ;;  %v7163_v4 = vld [vmem:[%s10267_s3 + $0xb10] sm:$0xff]  ;;  %v7428_v23 = vld [vmem:[%s10267_s3 + $0xf58] sm:$0xff]  ;;  %v7237_v20 = vcombine.low %v7171_v27, %v7175_v29 }
 0x3d0   : > { %5494 = vmatpush1.bf16.msra.mxu1 %v7499_v26  ;;  %v7230_v25 = vcombine.high %v7163_v4, %v7167_v31  ;;  %v7487_v26 = vcombine.low %v7420_v17, %v7424_v0  ;;  %v7496_v30 = vcombine.high %v7428_v23, %v7432_v24  ;;  %v7229_v32 = vcombine.low %v7163_v4, %v7167_v31  ;;  %v7440_v36 = vld [vmem:[%s10267_s3 + $0xfb8] sm:$0xff]  ;;  %v7183_v5 = vld [vmem:[%s10267_s3 + $0xbb0] sm:$0xff] }
 0x3d1   : > { %5495 = vmatprep.subr.bf16.mxu1 %v7508_v62  ;;  %v7436_v62 = vld [vmem:[%s10267_s3 + $0xf98] sm:$0xff]  ;;  %v7495_v39 = vcombine.low %v7428_v23, %v7432_v24  ;;  %v7246_v33 = vcombine.high %v7179_v42, %v7183_v5  ;;  %v7245_v49 = vcombine.low %v7179_v42, %v7183_v5  ;;  %v7297_v24 = vld [vmem:[%s10267_s3 + $0xd40] sm:$0xff] }
 0x3d2   : > { %4336 = vmatpush1.bf16.msra.mxu0 %v7241_v37  ;;  %v7238_v37 = vcombine.high %v7171_v27, %v7175_v29  ;;  %v7444_v46 = vld [vmem:[%s10267_s3 + $0xfd8] sm:$0xff]  ;;  %v7503_v55 = vcombine.low %v7436_v62, %v7440_v36  ;;  %v7305_v29 = vld [vmem:[%s10267_s3 + $0xd80] sm:$0xff] }
 0x3d3   : > { %4337 = vmatprep.subr.bf16.mxu0 %v7250_v43  ;;  %v7504_v43 = vcombine.high %v7436_v62, %v7440_v36 }
 0x3d4   : > { %5496 = vmatpush1.bf16.msra.mxu1 %v7507_v45 }
 0x3d5   : > { %5563 = vmatprep.subr.bf16.mxu1 %v7456_v47  ;;  %v7448_v47 = vld [vmem:[%s10267_s3 + $0xff8] sm:$0xff] }
 0x3d6   : > { %4338 = vmatpush1.bf16.msra.mxu0 %v7249_v50 }
 0x3d7   : > { %5514 = vmatmul.mubr.bf16.vlgmr.msra.gmra.mrb[56].mxu1 %v9672_v57  ;;  %4405 = vmatprep.subr.bf16.mxu0 %v7198_v14 }
 0x3d8   : > { %5564 = vmatpush1.bf16.msra.mxu1 %v7455_v53  ;;  %5595 = vmatprep.mubr.bf16.mxu1 %v8037_v44 }
 0x3d9   : > { %4356 = vmatmul.mubr.bf16.vlgmr.msra.gmra.mrb[60].mxu0 %v9229_v19  ;;  %5565 = vmatprep.subr.bf16.mxu1 %v7464_v58  ;;  %v7187_v58 = vld [vmem:[%s10267_s3 + $0xbd0] sm:$0xff] }
 0x3da   : > { %4406 = vmatpush1.bf16.msra.mxu0 %v7197_v52  ;;  %4437 = vmatprep.mubr.bf16.mxu0 %v8037_v44  ;;  %v7191_v52 = vld [vmem:[%s10267_s3 + $0xbf0] sm:$0xff] }
 0x3db   : > { %4407 = vmatprep.subr.bf16.mxu0 %v7206_v61 }
 0x3dc   : > { %5566 = vmatpush1.bf16.msra.mxu1 %v7463_v41 }
 0x3dd   : > { %5567 = vmatprep.subr.bf16.mxu1 %v7472_v7  ;;  %v7254_v7 = vcombine.high %v7187_v58, %v7191_v52 }
 0x3de   : > { %4408 = vmatpush1.bf16.msra.mxu0 %v7205_v8  ;;  %v7511_v8 = vcombine.low %v7444_v46, %v7448_v47 }
 0x3df   : > { %4409 = vmatprep.subr.bf16.mxu0 %v7214_v10  ;;  %v7265_v10 = vld [vmem:[%s10267_s3 + $0xc40] sm:$0xff] }
 0x3e0   : > { %5568 = vmatpush1.bf16.msra.mxu1 %v7471_v11  ;;  %v7269_v11 = vld [vmem:[%s10267_s3 + $0xc60] sm:$0xff] }
 0x3e1   : > { %5569 = vmatprep.subr.bf16.mxu1 %v7480_v15  ;;  %v7330_v48 = vcombine.high %v7265_v10, %v7269_v11  ;;  %v7273_v15 = vld [vmem:[%s10267_s3 + $0xc80] sm:$0xff]  ;;  %v7329_v17 = vcombine.low %v7265_v10, %v7269_v11 }
 0x3e2   : > { %4410 = vmatpush1.bf16.msra.mxu0 %v7213_v16  ;;  %v7277_v16 = vld [vmem:[%s10267_s3 + $0xca0] sm:$0xff] }
 0x3e3   : > { %4411 = vmatprep.subr.bf16.mxu0 %v7222_v40  ;;  %v7338_v0 = vcombine.high %v7273_v15, %v7277_v16  ;;  %v7281_v40 = vld [vmem:[%s10267_s3 + $0xcc0] sm:$0xff]  ;;  %v7337_v4 = vcombine.low %v7273_v15, %v7277_v16  ;;  %v7287_v15 = vld [vmem:[%s10267_s3 + $0xcf0] sm:$0xff] }
 0x3e4   : > { %5570 = vmatpush1.bf16.msra.mxu1 %v7479_v18  ;;  %v7285_v18 = vld [vmem:[%s10267_s3 + $0xce0] sm:$0xff] }
 0x3e5   : > { %5571 = vmatprep.subr.bf16.mxu1 %v7488_v21  ;;  %v7346_v31 = vcombine.high %v7281_v40, %v7285_v18  ;;  %v7293_v21 = vld [vmem:[%s10267_s3 + $0xd20] sm:$0xff] }
 0x3e6   : > { %4412 = vmatpush1.bf16.msra.mxu0 %v7221_v2  ;;  %v7345_v2 = vcombine.low %v7281_v40, %v7285_v18  ;;  %v7973_v16 = vld [vmem:[%s10268_s4 + $0xe0] sm:$0xff]   ;;  %v7291_v18 = vld [vmem:[%s10267_s3 + $0xd10] sm:$0xff] }
 0x3e7   : > { %4413 = vmatprep.subr.bf16.mxu0 %v7230_v25  ;;  %v7301_v25 = vld [vmem:[%s10267_s3 + $0xd60] sm:$0xff] }
 0x3e8   : > { %5572 = vmatpush1.bf16.msra.mxu1 %v7487_v26  ;;  %v7362_v27 = vcombine.high %v7297_v24, %v7301_v25  ;;  %v7361_v62 = vcombine.low %v7297_v24, %v7301_v25  ;;  %v7974_v40 = vld [vmem:[%s10268_s4 + $0xa0] sm:$0xff]  }
 0x3e9   : > { %5573 = vmatprep.subr.bf16.mxu1 %v7496_v30  ;;  %v7309_v30 = vld [vmem:[%s10267_s3 + $0xda0] sm:$0xff] }
 0x3ea   : > { %v3838_v45 = vpop.f32.mrb[32].mxu1  ;;  %4414 = vmatpush1.bf16.msra.mxu0 %v7229_v32 }
 0x3eb   : > { %v9745_v50 = vadd.f32 %v3838_v45, %v9518_v63  ;;  %v3840_v51 = vpop.f32.mrb[33].mxu1  ;;  %4415 = vmatprep.subr.bf16.mxu0 %v7238_v37  ;;  %v7313_v45 = vld [vmem:[%s10267_s3 + $0xdc0] sm:$0xff] }
 0x3ec   : > { %v9748_v14 = vadd.f32 %v3840_v51, %v9521_v6  ;;  %v2680_v53 = vpop.f32.mrb[36].mxu0  ;;  %v3842_v54 = vpop.f32.mrb[34].mxu1  ;;  %5574 = vmatpush1.bf16.msra.mxu1 %v7495_v39  ;;  %v7512_v6 = vcombine.high %v7444_v46, %v7448_v47  ;;  %v7370_v39 = vcombine.high %v7305_v29, %v7309_v30 }
 0x3ed   : > { %v9757_v63 = vadd.f32 %v2680_v53, %v9530_v13  ;;  %v2682_v60 = vpop.f32.mrb[37].mxu0  ;;  %v3843_v56 = vpop.f32.mrb[35].mxu1  ;;  %5575 = vmatprep.subr.bf16.mxu1 %v7504_v43  ;;  %v7257_v13 = vld [vmem:[%s10267_s3 + $0xc00] sm:$0xff] }
 0x3ee   : > { %v9760_v61 = vadd.f32 %v2682_v60, %v9533_v12  ;;  %v2684_v41 = vpop.f32.mrb[38].mxu0  ;;  %4416 = vmatpush1.bf16.msra.mxu0 %v7237_v20  ;;  %v7253_v12 = vcombine.low %v7187_v58, %v7191_v52  ;;  %v7322_v34 = vcombine.high %v7257_v13, %v7261_v9  ;;  %v7321_v38 = vcombine.low %v7257_v13, %v7261_v9  ;;  %v7317_v20 = vld [vmem:[%s10267_s3 + $0xde0] sm:$0xff]  ;;  %v7967_v58 = vld [vmem:[%s10268_s4 + $0xc8] sm:$0xff]   ;;  %v7263_v52 = vld [vmem:[%s10267_s3 + $0xc30] sm:$0xff] }
 0x3ef   : > { %v2685_v1 = vpop.f32.mrb[39].mxu0  ;;  %4417 = vmatprep.subr.bf16.mxu0 %v7246_v33  ;;  %v7369_v33 = vcombine.low %v7305_v29, %v7309_v30  ;;  %v7378_v54 = vcombine.high %v7313_v45, %v7317_v20  ;;  %v7377_v60 = vcombine.low %v7313_v45, %v7317_v20  ;;  %v7968_v56 = vld [vmem:[%s10268_s4 + $0x88] sm:$0xff]   ;;  %v7969_v41 = vld [vmem:[%s10268_s4 + $0xd0] sm:$0xff]  }
 0x3f0   : > { %5576 = vmatpush1.bf16.msra.mxu1 %v7503_v55  ;;  %v7965_v55 = vld [vmem:[%s10268_s4 + $0xc0] sm:$0xff]   ;;  %v7271_v1 = vld [vmem:[%s10267_s3 + $0xc70] sm:$0xff]  ;;  %v7976_v29 = vld [vmem:[%s10268_s4 + $0xa8] sm:$0xff]  }
 0x3f1   : > { %5577 = vmatprep.subr.bf16.mxu1 %v7512_v6  ;;  %v7970_v13 = vld [vmem:[%s10268_s4 + $0x90] sm:$0xff]  }
 0x3f2   : > { %4418 = vmatpush1.bf16.msra.mxu0 %v7245_v49  ;;  %v7267_v49 = vld [vmem:[%s10267_s3 + $0xc50] sm:$0xff] }
 0x3f3   : > { %4419 = vmatprep.subr.bf16.mxu0 %v7254_v7  ;;  %v7275_v9 = vld [vmem:[%s10267_s3 + $0xc90] sm:$0xff]  ;;  %v7333_v10 = vcombine.low %v7267_v49, %v7271_v1 }
 0x3f4   : > { %5578 = vmatpush1.bf16.msra.mxu1 %v7511_v8  ;;  %v7334_v8 = vcombine.high %v7267_v49, %v7271_v1  ;;  %v7397_v49 = vld [vmem:[%s10267_s3 + $0xe60] sm:$0xff] }
 0x3f5   : > { %7670 = vmatprep.subr.bf16.mxu1 %v7965_v55 }
 0x3f6   : > { %4420 = vmatpush1.bf16.msra.mxu0 %v7253_v12  ;;  %v7279_v12 = vld [vmem:[%s10267_s3 + $0xcb0] sm:$0xff] }
 0x3f7   : > { %5596 = vmatmul.mubr.bf16.vlgmr.msra.gmra.mrb[60].mxu1 %v9672_v57  ;;  %4880 = vmatprep.subr.bf16.mxu0 %v7322_v34  ;;  %v7971_v34 = vld [vmem:[%s10268_s4 + $0xd8] sm:$0xff]   ;;  %v7342_v11 = vcombine.high %v7275_v9, %v7279_v12 }
 0x3f9   : > { %4438 = vmatmul.mubr.bf16.vlgmr.msra.gmra.mrb[64].mxu0 %v9229_v19  ;;  %v7289_v19 = vld [vmem:[%s10267_s3 + $0xd00] sm:$0xff] }
 0x3fa   : > { %4881 = vmatpush1.bf16.msra.mxu0 %v7321_v38  ;;  %4912 = vmatprep.mubr.bf16.mxu0 %v8037_v44  ;;  %v7354_v23 = vcombine.high %v7289_v19, %v7293_v21  ;;  %v7353_v26 = vcombine.low %v7289_v19, %v7293_v21  ;;  %v7972_v38 = vld [vmem:[%s10268_s4 + $0x98] sm:$0xff]  }
 0x3fb   : > { %4882 = vmatprep.subr.bf16.mxu0 %v7330_v48  ;;  %v7283_v48 = vld [vmem:[%s10267_s3 + $0xcd0] sm:$0xff] }
 0x3fc   : > { %v7349_v19 = vcombine.low %v7283_v48, %v7287_v15 }
 0x3fe   : > { %4883 = vmatpush1.bf16.msra.mxu0 %v7329_v17  ;;  %v7341_v17 = vcombine.low %v7275_v9, %v7279_v12 }
 0x3ff   : > { %4884 = vmatprep.subr.bf16.mxu0 %v7338_v0  ;;  %v7350_v0 = vcombine.high %v7283_v48, %v7287_v15  ;;  %v7421_v48 = vld [vmem:[%s10267_s3 + $0xf20] sm:$0xff] }
 0x402   : > { %4885 = vmatpush1.bf16.msra.mxu0 %v7337_v4  ;;  %v7295_v4 = vld [vmem:[%s10267_s3 + $0xd30] sm:$0xff] }
 0x403   : > { %4886 = vmatprep.subr.bf16.mxu0 %v7346_v31  ;;  %v7975_v31 = vld [vmem:[%s10268_s4 + $0xe8] sm:$0xff]   ;;  %v7358_v21 = vcombine.high %v7291_v18, %v7295_v4  ;;  %v7357_v24 = vcombine.low %v7291_v18, %v7295_v4  ;;  %v7433_v4 = vld [vmem:[%s10267_s3 + $0xf80] sm:$0xff] }
 0x406   : > { %4887 = vmatpush1.bf16.msra.mxu0 %v7345_v2  ;;  %v7299_v2 = vld [vmem:[%s10267_s3 + $0xd50] sm:$0xff] }
 0x407   : > { %4888 = vmatprep.subr.bf16.mxu0 %v7354_v23  ;;  %v7303_v23 = vld [vmem:[%s10267_s3 + $0xd70] sm:$0xff] }
 0x408   : > { %v7366_v25 = vcombine.high %v7299_v2, %v7303_v23 }
 0x40a   : > { %v3920_v32 = vpop.f32.mrb[36].mxu1  ;;  %4889 = vmatpush1.bf16.msra.mxu0 %v7353_v26  ;;  %v7307_v26 = vld [vmem:[%s10267_s3 + $0xd90] sm:$0xff] }
 0x40b   : > { %v9808_v36 = vadd.f32 %v3920_v32, %v9630_v22  ;;  %v3922_v37 = vpop.f32.mrb[37].mxu1  ;;  %4890 = vmatprep.subr.bf16.mxu0 %v7362_v27  ;;  %v7311_v27 = vld [vmem:[%s10267_s3 + $0xdb0] sm:$0xff]  ;;  %v7365_v32 = vcombine.low %v7299_v2, %v7303_v23 }
 0x40c   : > { %v9811_v42 = vadd.f32 %v3922_v37, %v9633_v3  ;;  %v2762_v5 = vpop.f32.mrb[40].mxu0  ;;  %v3924_v43 = vpop.f32.mrb[38].mxu1  ;;  %v7373_v55 = vcombine.low %v7307_v26, %v7311_v27 }
 0x40d   : > { %v9820_v46 = vadd.f32 %v2762_v5, %v9642_v59  ;;  %v2764_v22 = vpop.f32.mrb[41].mxu0  ;;  %v3925_v47 = vpop.f32.mrb[39].mxu1  ;;  %v7966_v59 = vld [vmem:[%s10268_s4 + $0x80] sm:$0xff]   ;;  %v7977_v5 = vld [vmem:[%s10268_s4 + $0xf0] sm:$0xff]  }
 0x40e   : > { %v9823_v51 = vadd.f32 %v2764_v22, %v9645_v35  ;;  %v2766_v3 = vpop.f32.mrb[42].mxu0  ;;  %4891 = vmatpush1.bf16.msra.mxu0 %v7361_v62  ;;  %v7259_v35 = vld [vmem:[%s10267_s3 + $0xc10] sm:$0xff]  ;;  %7671 = vmatpush3.bf16.msra.mxu1 %v7966_v59 }
 0x40f   : > { %v2767_v53 = vpop.f32.mrb[43].mxu0  ;;  %4892 = vmatprep.subr.bf16.mxu0 %v7370_v39  ;;  %v7326_v6 = vcombine.high %v7259_v35, %v7263_v52  ;;  %7672 = vmatprep.subr.bf16.mxu1 %v7967_v58  ;;  %v7325_v7 = vcombine.low %v7259_v35, %v7263_v52  ;;  %v7374_v39 = vcombine.high %v7307_v26, %v7311_v27  ;;  %v7315_v22 = vld [vmem:[%s10267_s3 + $0xdd0] sm:$0xff]  ;;  %v7979_v35 = vld [vmem:[%s10268_s4 + $0xf8] sm:$0xff]  }
 0x410   : > { %v7978_v47 = vld [vmem:[%s10268_s4 + $0xb0] sm:$0xff]   ;;  %v7980_v52 = vld [vmem:[%s10268_s4 + $0xb8] sm:$0xff]  }
 0x412   : > { %4893 = vmatpush1.bf16.msra.mxu0 %v7369_v33  ;;  %7673 = vmatpush3.bf16.msra.mxu1 %v7968_v56 }
 0x413   : > { %4894 = vmatprep.subr.bf16.mxu0 %v7378_v54  ;;  %7674 = vmatprep.subr.bf16.mxu1 %v7969_v41  ;;  %v7393_v41 = vld [vmem:[%s10267_s3 + $0xe40] sm:$0xff] }
 0x414   : > { %v7457_v9 = vcombine.low %v7393_v41, %v7397_v49 }
 0x416   : > { %4895 = vmatpush1.bf16.msra.mxu0 %v7377_v60  ;;  %7675 = vmatpush3.bf16.msra.mxu1 %v7970_v13  ;;  %v7405_v13 = vld [vmem:[%s10267_s3 + $0xea0] sm:$0xff] }
 0x417   : > { %4962 = vmatprep.subr.bf16.mxu0 %v7326_v6  ;;  %7676 = vmatprep.subr.bf16.mxu1 %v7971_v34  ;;  %v7981_v6 = vld [vmem:[%s10268_s4 + $0x1c0] sm:$0xff]  }
 0x418   : > { %v7409_v34 = vld [vmem:[%s10267_s3 + $0xec0] sm:$0xff] }
 0x419   : > { %4913 = vmatmul.mubr.bf16.vlgmr.msra.gmra.mrb[68].mxu0 %v8425_v28 }
 0x41a   : > { %4963 = vmatpush1.bf16.msra.mxu0 %v7325_v7  ;;  %4994 = vmatprep.mubr.bf16.mxu0 %v8037_v44  ;;  %v7458_v7 = vcombine.high %v7393_v41, %v7397_v49  ;;  %v7427_v49 = vld [vmem:[%s10267_s3 + $0xf50] sm:$0xff] }
 0x41b   : > { %4964 = vmatprep.subr.bf16.mxu0 %v7334_v8  ;;  %7677 = vmatpush3.bf16.msra.mxu1 %v7972_v38  ;;  %v7401_v8 = vld [vmem:[%s10267_s3 + $0xe80] sm:$0xff] }
 0x41c   : > { %7678 = vmatprep.subr.bf16.mxu1 %v7973_v16  ;;  %v7466_v12 = vcombine.high %v7401_v8, %v7405_v13 }
 0x41e   : > { %4965 = vmatpush1.bf16.msra.mxu0 %v7333_v10  ;;  %v7413_v10 = vld [vmem:[%s10267_s3 + $0xee0] sm:$0xff] }
 0x41f   : > { %4966 = vmatprep.subr.bf16.mxu0 %v7342_v11  ;;  %7679 = vmatpush3.bf16.msra.mxu1 %v7974_v40  ;;  %v7465_v11 = vcombine.low %v7401_v8, %v7405_v13  ;;  %v7474_v38 = vcombine.high %v7409_v34, %v7413_v10  ;;  %v7473_v15 = vcombine.low %v7409_v34, %v7413_v10  ;;  %v7435_v13 = vld [vmem:[%s10267_s3 + $0xf90] sm:$0xff] }
 0x420   : > { %7680 = vmatprep.subr.bf16.mxu1 %v7975_v31  ;;  %v7437_v31 = vld [vmem:[%s10267_s3 + $0xfa0] sm:$0xff] }
 0x422   : > { %4967 = vmatpush1.bf16.msra.mxu0 %v7341_v17  ;;  %v7425_v17 = vld [vmem:[%s10267_s3 + $0xf40] sm:$0xff] }
 0x423   : > { %4968 = vmatprep.subr.bf16.mxu0 %v7350_v0  ;;  %7681 = vmatpush3.bf16.msra.mxu1 %v7976_v29  ;;  %v7429_v0 = vld [vmem:[%s10267_s3 + $0xf60] sm:$0xff] }
 0x424   : > { %7682 = vmatprep.subr.bf16.mxu1 %v7977_v5  ;;  %v7490_v18 = vcombine.high %v7425_v17, %v7429_v0  ;;  %v7441_v29 = vld [vmem:[%s10267_s3 + $0xfc0] sm:$0xff]  ;;  %v7497_v5 = vcombine.low %v7433_v4, %v7437_v31 }
 0x426   : > { %4969 = vmatpush1.bf16.msra.mxu0 %v7349_v19 }
 0x427   : > { %4970 = vmatprep.subr.bf16.mxu0 %v7358_v21  ;;  %7683 = vmatpush3.bf16.msra.mxu1 %v7978_v47  ;;  %v7489_v21 = vcombine.low %v7425_v17, %v7429_v0  ;;  %v7447_v17 = vld [vmem:[%s10267_s3 + $0xff0] sm:$0xff] }
 0x428   : > { %7684 = vmatprep.subr.bf16.mxu1 %v7979_v35 }
 0x42a   : > { %v4398_v30 = vpop.f32.mrb[40].mxu1  ;;  %4971 = vmatpush1.bf16.msra.mxu0 %v7357_v24  ;;  %v7498_v24 = vcombine.high %v7433_v4, %v7437_v31 }
 0x42b   : > { %v9906_v62 = vadd.f32 %v4398_v30, %v9745_v50  ;;  %v4400_v37 = vpop.f32.mrb[41].mxu1  ;;  %4972 = vmatprep.subr.bf16.mxu0 %v7366_v25  ;;  %v7319_v50 = vld [vmem:[%s10267_s3 + $0xdf0] sm:$0xff]  ;;  %7685 = vmatpush3.bf16.msra.mxu1 %v7980_v52  ;;  %v7445_v30 = vld [vmem:[%s10267_s3 + $0xfe0] sm:$0xff] }
 0x42c   : > { %v9912_v43 = vadd.f32 %v4400_v37, %v9748_v14  ;;  %v3240_v45 = vpop.f32.mrb[44].mxu0  ;;  %v4402_v20 = vpop.f32.mrb[42].mxu1  ;;  %v7382_v58 = vcombine.high %v7315_v22, %v7319_v50  ;;  %v7381_v60 = vcombine.low %v7315_v22, %v7319_v50  ;;  %7714 = vmatprep.subr.bf16.mxu1 %v7981_v6  ;;  %v7387_v22 = vld [vmem:[%s10267_s3 + $0xe10] sm:$0xff]  ;;  %v7505_v50 = vcombine.low %v7441_v29, %v7445_v30 }
 0x42d   : > { %v9924_v3 = vadd.f32 %v3240_v45, %v9757_v63  ;;  %v3242_v33 = vpop.f32.mrb[45].mxu0  ;;  %v4403_v14 = vpop.f32.mrb[43].mxu1  ;;  %v7385_v63 = vld [vmem:[%s10267_s3 + $0xe00] sm:$0xff]  ;;  %v7506_v20 = vcombine.high %v7441_v29, %v7445_v30 }
 0x42e   : > { %v9927_v53 = vadd.f32 %v3242_v33, %v9760_v61  ;;  %v3244_v54 = vpop.f32.mrb[46].mxu0  ;;  %4973 = vmatpush1.bf16.msra.mxu0 %v7365_v32  ;;  %v7389_v61 = vld [vmem:[%s10267_s3 + $0xe20] sm:$0xff]  ;;  %v7399_v33 = vld [vmem:[%s10267_s3 + $0xe70] sm:$0xff] }
 0x42f   : > { %v3245_v59 = vpop.f32.mrb[47].mxu0  ;;  %4974 = vmatprep.subr.bf16.mxu0 %v7374_v39  ;;  %v7450_v56 = vcombine.high %v7385_v63, %v7389_v61  ;;  %v7449_v1 = vcombine.low %v7385_v63, %v7389_v61  ;;  %v7411_v63 = vld [vmem:[%s10267_s3 + $0xed0] sm:$0xff] }
 0x430   : > { %v7407_v59 = vld [vmem:[%s10267_s3 + $0xeb0] sm:$0xff] }
 0x431   : > { %v7415_v61 = vld [vmem:[%s10267_s3 + $0xef0] sm:$0xff] }
 0x432   : > { %4975 = vmatpush1.bf16.msra.mxu0 %v7373_v55  ;;  %v7403_v55 = vld [vmem:[%s10267_s3 + $0xe90] sm:$0xff]  ;;  %v7477_v6 = vcombine.low %v7411_v63, %v7415_v61 }
 0x433   : > { %4976 = vmatprep.subr.bf16.mxu0 %v7382_v58  ;;  %v7470_v35 = vcombine.high %v7403_v55, %v7407_v59  ;;  %v7469_v52 = vcombine.low %v7403_v55, %v7407_v59 }
 0x436   : > { %4977 = vmatpush1.bf16.msra.mxu0 %v7381_v60  ;;  %v7478_v60 = vcombine.high %v7411_v63, %v7415_v61  ;;  %v8008_v63 = vld [vmem:[%s10268_s4 + $0x28] sm:$0xff]  }
 0x437   : > { %5440 = vmatprep.subr.bf16.mxu0 %v7450_v56  ;;  %v7419_v56 = vld [vmem:[%s10267_s3 + $0xf10] sm:$0xff] }
 0x439   : > { %4995 = vmatmul.mubr.bf16.vlgmr.msra.gmra.mrb[72].mxu0 %v8425_v28  ;;  %v7417_v28 = vld [vmem:[%s10267_s3 + $0xf00] sm:$0xff] }
 0x43a   : > { %5441 = vmatpush1.bf16.msra.mxu0 %v7449_v1  ;;  %5472 = vmatprep.mubr.bf16.mxu0 %v8037_v44  ;;  %v7482_v16 = vcombine.high %v7417_v28, %v7421_v48  ;;  %v7481_v40 = vcombine.low %v7417_v28, %v7421_v48  ;;  %v7431_v1 = vld [vmem:[%s10267_s3 + $0xf70] sm:$0xff] }
 0x43b   : > { %5442 = vmatprep.subr.bf16.mxu0 %v7458_v7  ;;  %v7494_v8 = vcombine.high %v7427_v49, %v7431_v1  ;;  %v7493_v34 = vcombine.low %v7427_v49, %v7431_v1 }
 0x43e   : > { %5443 = vmatpush1.bf16.msra.mxu0 %v7457_v9  ;;  %v7439_v9 = vld [vmem:[%s10267_s3 + $0xfb0] sm:$0xff] }
 0x43f   : > { %5444 = vmatprep.subr.bf16.mxu0 %v7466_v12  ;;  %v7501_v4 = vcombine.low %v7435_v13, %v7439_v9 }
 0x442   : > { %5445 = vmatpush1.bf16.msra.mxu0 %v7465_v11 }
 0x443   : > { %5446 = vmatprep.subr.bf16.mxu0 %v7474_v38  ;;  %v7502_v38 = vcombine.high %v7435_v13, %v7439_v9 }
 0x446   : > { %5447 = vmatpush1.bf16.msra.mxu0 %v7473_v15 }
 0x447   : > { %5448 = vmatprep.subr.bf16.mxu0 %v7482_v16  ;;  %v7443_v16 = vld [vmem:[%s10267_s3 + $0xfd0] sm:$0xff] }
 0x44a   : > { %v4480_v19 = vpop.f32.mrb[44].mxu1  ;;  %5449 = vmatpush1.bf16.msra.mxu0 %v7481_v40 }
 0x44b   : > { %v9983_v2 = vadd.f32 %v4480_v19, %v9808_v36  ;;  %v4482_v23 = vpop.f32.mrb[45].mxu1  ;;  %5450 = vmatprep.subr.bf16.mxu0 %v7490_v18  ;;  %v7510_v19 = vcombine.high %v7443_v16, %v7447_v17 }
 0x44c   : > { %v9986_v25 = vadd.f32 %v4482_v23, %v9811_v42  ;;  %v3322_v26 = vpop.f32.mrb[48].mxu0  ;;  %v4484_v27 = vpop.f32.mrb[46].mxu1 }
 0x44d   : > { %v9995_v32 = vadd.f32 %v3322_v26, %v9820_v46  ;;  %v3324_v36 = vpop.f32.mrb[49].mxu0  ;;  %v4485_v37 = vpop.f32.mrb[47].mxu1  ;;  %v7391_v46 = vld [vmem:[%s10267_s3 + $0xe30] sm:$0xff] }
 0x44e   : > { %v9998_v39 = vadd.f32 %v3324_v36, %v9823_v51  ;;  %v3326_v42 = vpop.f32.mrb[50].mxu0  ;;  %5451 = vmatpush1.bf16.msra.mxu0 %v7489_v21  ;;  %v7454_v47 = vcombine.high %v7387_v22, %v7391_v46  ;;  %v7395_v51 = vld [vmem:[%s10267_s3 + $0xe50] sm:$0xff]  ;;  %v7453_v14 = vcombine.low %v7387_v22, %v7391_v46  ;;  %v7509_v21 = vcombine.low %v7443_v16, %v7447_v17  ;;  %v8004_v22 = vld [vmem:[%s10268_s4 + $0x18] sm:$0xff]   ;;  %v8005_v46 = vld [vmem:[%s10268_s4 + $0x60] sm:$0xff]  }
 0x44f   : > { %v3327_v45 = vpop.f32.mrb[51].mxu0  ;;  %5452 = vmatprep.subr.bf16.mxu0 %v7498_v24  ;;  %v7462_v54 = vcombine.high %v7395_v51, %v7399_v33  ;;  %v7461_v58 = vcombine.low %v7395_v51, %v7399_v33  ;;  %v8007_v51 = vld [vmem:[%s10268_s4 + $0x68] sm:$0xff]  }
 0x450   : > { %v8002_v45 = vld [vmem:[%s10268_s4 + $0x10] sm:$0xff]   ;;  %v7983_v17 = vld [vmem:[%s10268_s4 + $0x1c8] sm:$0xff]  }
 0x452   : > { %5453 = vmatpush1.bf16.msra.mxu0 %v7497_v5  ;;  %v8001_v5 = vld [vmem:[%s10268_s4 + $0x50] sm:$0xff]  }
 0x453   : > { %5454 = vmatprep.subr.bf16.mxu0 %v7506_v20  ;;  %v8003_v20 = vld [vmem:[%s10268_s4 + $0x58] sm:$0xff]  }
 0x456   : > { %5455 = vmatpush1.bf16.msra.mxu0 %v7505_v50  ;;  %v5613_v50 = vlaneseq }
 0x457   : > { %5522 = vmatprep.subr.bf16.mxu0 %v7454_v47  ;;  %v8006_v47 = vld [vmem:[%s10268_s4 + $0x20] sm:$0xff]  }
 0x458   : > { %v10108_v33 = vshrl.u32 %v5613_v50, 7 }
 0x459   : > { %5473 = vmatmul.mubr.bf16.vlgmr.msra.gmra.mrb[76].mxu0 %v9672_v57 }
 0x45a   : > { %5523 = vmatpush1.bf16.msra.mxu0 %v7453_v14  ;;  %5554 = vmatprep.mubr.bf16.mxu0 %v8037_v44  ;;  %v7423_v44 = vld [vmem:[%s10267_s3 + $0xf30] sm:$0xff]  ;;  %v5623_v14 = vsub.s32 2, %v10108_v33  ;;  %v5627_v55 = vsub.s32 3, %v10108_v33 }
 0x45b   : > { %5524 = vmatprep.subr.bf16.mxu0 %v7462_v54  ;;  %v7486_v41 = vcombine.high %v7419_v56, %v7423_v44  ;;  %v7485_v7 = vcombine.low %v7419_v56, %v7423_v44  ;;  %v10114_v54 = vld [vmem:[%s10269_s5 + $0x2] sm:$0xff] }
 0x45c   : > { %v5624_v59 = vrot.slane %v10114_v54, %v5623_v14 }
 0x45e   : > { %5525 = vmatpush1.bf16.msra.mxu0 %v7461_v58 }
 0x45f   : > { %5526 = vmatprep.subr.bf16.mxu0 %v7470_v35  ;;  %v5628_v35 = vrot.slane %v10114_v54, %v5627_v55 }
 0x462   : > { %5527 = vmatpush1.bf16.msra.mxu0 %v7469_v52 }
 0x463   : > { %5528 = vmatprep.subr.bf16.mxu0 %v7478_v60 }
 0x466   : > { %5529 = vmatpush1.bf16.msra.mxu0 %v7477_v6 }
 0x467   : > { %5530 = vmatprep.subr.bf16.mxu0 %v7486_v41 }
 0x46a   : > { %v4955_v12 = vpop.f32.mrb[48].mxu1  ;;  %5531 = vmatpush1.bf16.msra.mxu0 %v7485_v7  ;;  %v8009_v7 = vld [vmem:[%s10268_s4 + $0x70] sm:$0xff]  }
 0x46b   : > { %v10045_v10 = vadd.f32 %v4955_v12, %v9906_v62  ;;  %v4957_v11 = vpop.f32.mrb[49].mxu1  ;;  %5532 = vmatprep.subr.bf16.mxu0 %v7494_v8  ;;  %v8010_v12 = vld [vmem:[%s10268_s4 + $0x30] sm:$0xff]  }
 0x46c   : > { %v10048_v28 = vadd.f32 %v4957_v11, %v9912_v43  ;;  %v3797_v48 = vpop.f32.mrb[52].mxu0  ;;  %v4959_v15 = vpop.f32.mrb[50].mxu1 }
 0x46d   : > { %v10057_v0 = vadd.f32 %v3797_v48, %v9924_v3  ;;  %v3799_v62 = vpop.f32.mrb[53].mxu0  ;;  %v4960_v40 = vpop.f32.mrb[51].mxu1  ;;  %v7982_v48 = vld [vmem:[%s10268_s4 + $0x180] sm:$0xff]   ;;  %v8012_v15 = vld [vmem:[%s10268_s4 + $0x38] sm:$0xff]  }
 0x46e   : > { %v10060_v18 = vadd.f32 %v3799_v62, %v9927_v53  ;;  %v3801_v43 = vpop.f32.mrb[54].mxu0  ;;  %5533 = vmatpush1.bf16.msra.mxu0 %v7493_v34  ;;  %v7984_v62 = vld [vmem:[%s10268_s4 + $0x188] sm:$0xff]   ;;  %v7985_v40 = vld [vmem:[%s10268_s4 + $0x1d0] sm:$0xff]  }
 0x46f   : > { %v3802_v31 = vpop.f32.mrb[55].mxu0  ;;  %5534 = vmatprep.subr.bf16.mxu0 %v7502_v38  ;;  %v8011_v38 = vld [vmem:[%s10268_s4 + $0x78] sm:$0xff]  }
 0x470   : > { %v7987_v43 = vld [vmem:[%s10268_s4 + $0x1d8] sm:$0xff]   ;;  %v7989_v31 = vld [vmem:[%s10268_s4 + $0x1e0] sm:$0xff]  }
 0x472   : > { %5535 = vmatpush1.bf16.msra.mxu0 %v7501_v4  ;;  %v7988_v4 = vld [vmem:[%s10268_s4 + $0x198] sm:$0xff]  }
 0x473   : > { %5536 = vmatprep.subr.bf16.mxu0 %v7510_v19  ;;  %v7990_v19 = vld [vmem:[%s10268_s4 + $0x1a0] sm:$0xff]  }
 0x476   : > { %5537 = vmatpush1.bf16.msra.mxu0 %v7509_v21  ;;  %v7991_v21 = vld [vmem:[%s10268_s4 + $0x1e8] sm:$0xff]  }
 0x479   : > { %5555 = vmatmul.mubr.bf16.vlgmr.msra.gmra.mrb[80].mxu0 %v9672_v57 }
 0x48a   : > { %v5037_v23 = vpop.f32.mrb[52].mxu1 }
 0x48b   : > { %v10064_v3 = vadd.f32 %v5037_v23, %v9983_v2  ;;  %v5039_v24 = vpop.f32.mrb[53].mxu1  ;;  %v7997_v2 = vld [vmem:[%s10268_s4 + $0x40] sm:$0xff]   ;;  %v5639_v23 = vsub.s32 6, %v10108_v33 }
 0x48c   : > { %v10067_v53 = vadd.f32 %v5039_v24, %v9986_v25  ;;  %v3879_v26 = vpop.f32.mrb[56].mxu0  ;;  %v5041_v27 = vpop.f32.mrb[54].mxu1  ;;  %v7998_v25 = vld [vmem:[%s10268_s4] sm:$0xff]   ;;  %7648 = vmatprep.subr.bf16.mxu0 %v7997_v2  ;;  %v7992_v24 = vld [vmem:[%s10268_s4 + $0x1a8] sm:$0xff]  }
 0x48d   : > { %v10070_v29 = vadd.f32 %v3879_v26, %v9995_v32  ;;  %v3881_v30 = vpop.f32.mrb[57].mxu0  ;;  %v5042_v36 = vpop.f32.mrb[55].mxu1  ;;  %v7999_v32 = vld [vmem:[%s10268_s4 + $0x48] sm:$0xff]   ;;  %7649 = vmatpush3.bf16.msra.mxu0 %v7998_v25  ;;  %v5643_v26 = vsub.s32 7, %v10108_v33  ;;  %v7993_v27 = vld [vmem:[%s10268_s4 + $0x1f0] sm:$0xff]  }
 0x48e   : > { %v10073_v37 = vadd.f32 %v3881_v30, %v9998_v39  ;;  %v3883_v42 = vpop.f32.mrb[58].mxu0  ;;  %v8000_v39 = vld [vmem:[%s10268_s4 + $0x8] sm:$0xff]   ;;  %7650 = vmatprep.subr.bf16.mxu0 %v7999_v32  ;;  %v5640_v30 = vrot.slane %v10114_v54, %v5639_v23  ;;  %v7995_v32 = vld [vmem:[%s10268_s4 + $0x1f8] sm:$0xff]   ;;  %v8021_v23 = vld [vmem:[%s10268_s4 + $0x160] sm:$0xff]  }
 0x48f   : > { %v3884_v57 = vpop.f32.mrb[59].mxu0  ;;  %v5644_v42 = vrot.slane %v10114_v54, %v5643_v26  ;;  %v8023_v26 = vld [vmem:[%s10268_s4 + $0x168] sm:$0xff]  }
 0x490   : > { %v7994_v57 = vld [vmem:[%s10268_s4 + $0x1b0] sm:$0xff]  }
 0x491   : > { %7651 = vmatpush3.bf16.msra.mxu0 %v8000_v39 }
 0x492   : > { %7652 = vmatprep.subr.bf16.mxu0 %v8001_v5 }
 0x495   : > { %7653 = vmatpush3.bf16.msra.mxu0 %v8002_v45 }
 0x496   : > { %7654 = vmatprep.subr.bf16.mxu0 %v8003_v20 }
 0x499   : > { %7655 = vmatpush3.bf16.msra.mxu0 %v8004_v22 }
 0x49a   : > { %7656 = vmatprep.subr.bf16.mxu0 %v8005_v46 }
 0x49d   : > { %7657 = vmatpush3.bf16.msra.mxu0 %v8006_v47 }
 0x49e   : > { %7658 = vmatprep.subr.bf16.mxu0 %v8007_v51 }
 0x4a1   : > { %7659 = vmatpush3.bf16.msra.mxu0 %v8008_v63 }
 0x4a2   : > { %7660 = vmatprep.subr.bf16.mxu0 %v8009_v7 }
 0x4a5   : > { %7661 = vmatpush3.bf16.msra.mxu0 %v8010_v12 }
 0x4a6   : > { %7662 = vmatprep.subr.bf16.mxu0 %v8011_v38 }
 0x4a9   : > { %7663 = vmatpush3.bf16.msra.mxu0 %v8012_v15 }
 0x4aa   : > { %v5515_v58 = vpop.f32.mrb[56].mxu1 }
 0x4ab   : > { %v5606_v61 = vadd.f32 %v5515_v58, %v10045_v10  ;;  %v5517_v52 = vpop.f32.mrb[57].mxu1 }
 0x4ac   : > { %v5607_v60 = vadd.f32 %v5517_v52, %v10048_v28  ;;  %v4357_v56 = vpop.f32.mrb[60].mxu0  ;;  %v5519_v44 = vpop.f32.mrb[58].mxu1 }
 0x4ad   : > { %v5655_v6 = vadd.f32 %v5624_v59, %v5606_v61  ;;  %v10125_v41 = vadd.f32 %v4357_v56, %v10057_v0  ;;  %v4359_v49 = vpop.f32.mrb[61].mxu0  ;;  %v5520_v1 = vpop.f32.mrb[59].mxu1  ;;  %v8013_v0 = vld [vmem:[%s10268_s4 + $0x140] sm:$0xff]  }
 0x4ae   : > { %v5656_v8 = vadd.f32 %v5628_v35, %v5607_v60  ;;  %v10131_v13 = vadd.f32 %v4359_v49, %v10060_v18  ;;  %v4361_v9 = vpop.f32.mrb[62].mxu0  ;;  %7692 = vmatprep.subr.bf16.mxu0 %v8013_v0  ;;  %v7986_v18 = vld [vmem:[%s10268_s4 + $0x190] sm:$0xff]  }
 0x4af   : > { %v5663_v34 = vmax.f32 %v5655_v6, 0.0  ;;  %v4362_v10 = vpop.f32.mrb[63].mxu0  ;;  %v5619_v9 = vsub.s32 1, %v10108_v33 }
 0x4b0   : > { %v5664_v11 = vmax.f32 %v5656_v8, 0.0  ;;  %v5615_v8 = vsub.s32 0, %v10108_v33 }
 0x4b1   : > { %v5671_v16 = vpack.c.bf16 %v5663_v34, %v5663_v34 }
 0x4b2   : > { %v5672_v28 = vpack.c.bf16 %v5664_v11, %v5664_v11  ;;  %v5616_v12 = vrot.slane %v10114_v54, %v5615_v8 }
 0x4b4   : > { %6267 = vmatprep.mubr.bf16.mxu1 %v5672_v28 }
 0x4b5   : > { %6268 = vmatmul.mubr.bf16.vlgmr.msra.gmra.mrb[64].mxu1 %v5671_v16 }
 0x4b6   : > { %7715 = vmatpush3.bf16.msra.mxu1 %v7982_v48 }
 0x4b7   : > { %7716 = vmatprep.subr.bf16.mxu1 %v7983_v17 }
 0x4ba   : > { %7717 = vmatpush3.bf16.msra.mxu1 %v7984_v62  ;;  %v8014_v62 = vld [vmem:[%s10268_s4 + $0x100] sm:$0xff]  }
 0x4bb   : > { %7718 = vmatprep.subr.bf16.mxu1 %v7985_v40 }
 0x4be   : > { %7719 = vmatpush3.bf16.msra.mxu1 %v7986_v18  ;;  %v8015_v18 = vld [vmem:[%s10268_s4 + $0x148] sm:$0xff]  }
 0x4bf   : > { %7720 = vmatprep.subr.bf16.mxu1 %v7987_v43  ;;  %v8016_v43 = vld [vmem:[%s10268_s4 + $0x108] sm:$0xff]  }
 0x4c2   : > { %7721 = vmatpush3.bf16.msra.mxu1 %v7988_v4  ;;  %v8017_v4 = vld [vmem:[%s10268_s4 + $0x150] sm:$0xff]  }
 0x4c3   : > { %7722 = vmatprep.subr.bf16.mxu1 %v7989_v31  ;;  %v8018_v31 = vld [vmem:[%s10268_s4 + $0x110] sm:$0xff]  }
 0x4c6   : > { %7723 = vmatpush3.bf16.msra.mxu1 %v7990_v19  ;;  %v8019_v19 = vld [vmem:[%s10268_s4 + $0x158] sm:$0xff]  }
 0x4c7   : > { %7724 = vmatprep.subr.bf16.mxu1 %v7991_v21  ;;  %v8020_v21 = vld [vmem:[%s10268_s4 + $0x118] sm:$0xff]  }
 0x4ca   : > { %v5597_v36 = vpop.f32.mrb[60].mxu1  ;;  %7725 = vmatpush3.bf16.msra.mxu1 %v7992_v24  ;;  %v8022_v24 = vld [vmem:[%s10268_s4 + $0x120] sm:$0xff]  }
 0x4cb   : > { %v5610_v2 = vadd.f32 %v5597_v36, %v10064_v3  ;;  %v5599_v25 = vpop.f32.mrb[61].mxu1  ;;  %7726 = vmatprep.subr.bf16.mxu1 %v7993_v27  ;;  %v7996_v3 = vld [vmem:[%s10268_s4 + $0x1b8] sm:$0xff]   ;;  %v5631_v27 = vsub.s32 4, %v10108_v33  ;;  %v5635_v36 = vsub.s32 5, %v10108_v33 }
 0x4cc   : > { %v5611_v39 = vadd.f32 %v5599_v25, %v10067_v53  ;;  %v4439_v5 = vpop.f32.mrb[64].mxu0  ;;  %v5601_v45 = vpop.f32.mrb[62].mxu1  ;;  %v8027_v33 = vld [vmem:[%s10268_s4 + $0x178] sm:$0xff]  }
 0x4cd   : > { %v5659_v20 = vadd.f32 %v5640_v30, %v5610_v2  ;;  %v4491_v22 = vadd.f32 %v4439_v5, %v10070_v29  ;;  %v4441_v46 = vpop.f32.mrb[65].mxu0  ;;  %v5602_v50 = vpop.f32.mrb[63].mxu1  ;;  %v8024_v30 = vld [vmem:[%s10268_s4 + $0x128] sm:$0xff]   ;;  %v5636_v25 = vrot.slane %v10114_v54, %v5635_v36 }
 0x4ce   : > { %v5660_v47 = vadd.f32 %v5644_v42, %v5611_v39  ;;  %v4492_v51 = vadd.f32 %v4441_v46, %v10073_v37  ;;  %v4443_v14 = vpop.f32.mrb[66].mxu0  ;;  %7727 = vmatpush3.bf16.msra.mxu1 %v7994_v57  ;;  %v8025_v42 = vld [vmem:[%s10268_s4 + $0x170] sm:$0xff]   ;;  %v5632_v57 = vrot.slane %v10114_v54, %v5631_v27 }
 0x4cf   : > { %v5667_v55 = vmax.f32 %v5659_v20, 0.0  ;;  %v4444_v59 = vpop.f32.mrb[67].mxu0  ;;  %7728 = vmatprep.subr.bf16.mxu1 %v7995_v32  ;;  %v8026_v32 = vld [vmem:[%s10268_s4 + $0x130] sm:$0xff]  }
 0x4d0   : > { %v5668_v53 = vmax.f32 %v5660_v47, 0.0 }
 0x4d1   : > { %v5675_v35 = vpack.c.bf16 %v5667_v55, %v5667_v55 }
 0x4d2   : > { %v5676_v58 = vpack.c.bf16 %v5668_v53, %v5668_v53  ;;  %7729 = vmatpush3.bf16.msra.mxu1 %v7996_v3 }
 0x4d4   : > { %6347 = vmatprep.mubr.bf16.mxu1 %v5676_v58 }
 0x4d5   : > { %6348 = vmatmul.mubr.bf16.vlgmr.msra.gmra.mrb[68].mxu1 %v5675_v35 }
 0x4ec   : > { %v4914_v29 = vpop.f32.mrb[68].mxu0 }
 0x4ed   : > { %v5044_v63 = vadd.f32 %v4914_v29, %v10125_v41  ;;  %v4916_v61 = vpop.f32.mrb[69].mxu0  ;;  %v5620_v41 = vrot.slane %v10114_v54, %v5619_v9  ;;  %v8028_v54 = vld [vmem:[%s10268_s4 + $0x138] sm:$0xff]  }
 0x4ee   : > { %v5045_v37 = vadd.f32 %v4916_v61, %v10131_v13  ;;  %v4918_v52 = vpop.f32.mrb[70].mxu0 }
 0x4ef   : > { %v4919_v60 = vpop.f32.mrb[71].mxu0 }
 0x50c   : > { %v4996_v56 = vpop.f32.mrb[72].mxu0 }
 0x50d   : > { %v5048_v44 = vadd.f32 %v4996_v56, %v4491_v22  ;;  %v4998_v6 = vpop.f32.mrb[73].mxu0  ;;  %v7513_v56 = vld [vmem:[%s10269_s5 + $0xa] ss:$0 sm:$0xff] }
 0x50e   : > { %v5049_v49 = vadd.f32 %v4998_v6, %v4492_v51  ;;  %v5000_v1 = vpop.f32.mrb[74].mxu0 }
 0x50f   : > { %v5001_v7 = vpop.f32.mrb[75].mxu0 }
 0x52c   : > { %v5474_v34 = vpop.f32.mrb[76].mxu0 }
 0x52d   : > { %v5604_v10 = vadd.f32 %v5474_v34, %v5044_v63  ;;  %v5476_v11 = vpop.f32.mrb[77].mxu0 }
 0x52e   : > { %v5605_v13 = vadd.f32 %v5476_v11, %v5045_v37  ;;  %v5478_v38 = vpop.f32.mrb[78].mxu0 }
 0x52f   : > { %v5653_v28 = vadd.f32 %v5616_v12, %v5604_v10  ;;  %v5479_v48 = vpop.f32.mrb[79].mxu0 }
 0x530   : > { %v5654_v15 = vadd.f32 %v5620_v41, %v5605_v13 }
 0x531   : > { %v5661_v16 = vmax.f32 %v5653_v28, 0.0 }
 0x532   : > { %v5662_v17 = vmax.f32 %v5654_v15, 0.0 }
 0x533   : > { %v5669_v40 = vpack.c.bf16 %v5661_v16, %v5661_v16 }
 0x534   : > { %v5670_v0 = vpack.c.bf16 %v5662_v17, %v5662_v17 }
 0x536   : > { %6227 = vmatprep.mubr.bf16.mxu0 %v5670_v0 }
 0x537   : > { %6228 = vmatmul.mubr.bf16.vlgmr.msra.gmra.mrb[84].mxu0 %v5669_v40 }
 0x538   : > { %7693 = vmatpush3.bf16.msra.mxu0 %v8014_v62 }
 0x539   : > { %7694 = vmatprep.subr.bf16.mxu0 %v8015_v18 }
 0x53c   : > { %7695 = vmatpush3.bf16.msra.mxu0 %v8016_v43 }
 0x53d   : > { %7696 = vmatprep.subr.bf16.mxu0 %v8017_v4 }
 0x540   : > { %7697 = vmatpush3.bf16.msra.mxu0 %v8018_v31 }
 0x541   : > { %7698 = vmatprep.subr.bf16.mxu0 %v8019_v19 }
 0x544   : > { %7699 = vmatpush3.bf16.msra.mxu0 %v8020_v21 }
 0x545   : > { %7700 = vmatprep.subr.bf16.mxu0 %v8021_v23 }
 0x548   : > { %7701 = vmatpush3.bf16.msra.mxu0 %v8022_v24 }
 0x549   : > { %7702 = vmatprep.subr.bf16.mxu0 %v8023_v26 }
 0x54c   : > { %v5556_v2 = vpop.f32.mrb[80].mxu0  ;;  %7703 = vmatpush3.bf16.msra.mxu0 %v8024_v30 }
 0x54d   : > { %v5608_v39 = vadd.f32 %v5556_v2, %v5048_v44  ;;  %v5558_v5 = vpop.f32.mrb[81].mxu0  ;;  %7704 = vmatprep.subr.bf16.mxu0 %v8025_v42 }
 0x54e   : > { %v5609_v45 = vadd.f32 %v5558_v5, %v5049_v49  ;;  %v5560_v20 = vpop.f32.mrb[82].mxu0 }
 0x54f   : > { %v5657_v22 = vadd.f32 %v5632_v57, %v5608_v39  ;;  %v5561_v46 = vpop.f32.mrb[83].mxu0 }
 0x550   : > { %v5658_v50 = vadd.f32 %v5636_v25, %v5609_v45  ;;  %7705 = vmatpush3.bf16.msra.mxu0 %v8026_v32 }
 0x551   : > { %v5665_v47 = vmax.f32 %v5657_v22, 0.0  ;;  %7706 = vmatprep.subr.bf16.mxu0 %v8027_v33 }
 0x552   : > { %v5666_v51 = vmax.f32 %v5658_v50, 0.0 }
 0x553   : > { %v5673_v3 = vpack.c.bf16 %v5665_v47, %v5665_v47 }
 0x554   : > { %v5674_v14 = vpack.c.bf16 %v5666_v51, %v5666_v51  ;;  %7707 = vmatpush3.bf16.msra.mxu0 %v8028_v54 }
 0x556   : > { %6307 = vmatprep.mubr.bf16.mxu0 %v5674_v14 }
 0x557   : > { %6308 = vmatmul.mubr.bf16.vlgmr.msra.gmra.mrb[88].mxu0 %v5673_v3 }
 0x588   : > { %v7686_v55 = vpop.f32.mrb[64].mxu1 }
 0x589   : > { %v7687_v59 = vpop.f32.mrb[65].mxu1 }
 0x58a   : > { %v7688_v53 = vadd.f32 %v7687_v59, %v7686_v55  ;;  %v7689_v58 = vpop.f32.mrb[66].mxu1 }
 0x58b   : > { %v7690_v35 = vpop.f32.mrb[67].mxu1 }
 0x5a8   : > { %v7730_v29 = vpop.f32.mrb[68].mxu1 }
 0x5a9   : > { %v7731_v63 = vpop.f32.mrb[69].mxu1 }
 0x5aa   : > { %v7732_v61 = vadd.f32 %v7731_v63, %v7730_v29  ;;  %v7733_v37 = vpop.f32.mrb[70].mxu1 }
 0x5ab   : > { %v7734_v52 = vpop.f32.mrb[71].mxu1 }
 0x60a   : > { %v7664_v60 = vpop.f32.mrb[84].mxu0 }
 0x60b   : > { %v7665_v44 = vpop.f32.mrb[85].mxu0 }
 0x60c   : > { %v7666_v6 = vadd.f32 %v7665_v44, %v7664_v60  ;;  %v7667_v49 = vpop.f32.mrb[86].mxu0 }
 0x60d   : > { %v7668_v1 = vpop.f32.mrb[87].mxu0 }
 0x60e   : > { %v6230_v7 = vadd.f32 %v7666_v6, %v7513_v56 }
 0x610   : > { %v6270_v8 = vadd.f32 %v7688_v53, %v6230_v7 }
 0x62a   : > { %v7708_v9 = vpop.f32.mrb[88].mxu0 }
 0x62b   : > { %v7709_v12 = vpop.f32.mrb[89].mxu0 }
 0x62c   : > { %v7710_v34 = vadd.f32 %v7709_v12, %v7708_v9  ;;  %v7711_v41 = vpop.f32.mrb[90].mxu0 }
 0x62d   : > { %v7712_v10 = vpop.f32.mrb[91].mxu0 }
 0x62e   : > { %v6310_v11 = vadd.f32 %v7710_v34, %v6270_v8 }
 0x630   : > { %v6350_v13 = vadd.f32 %v7732_v61, %v6310_v11 }
 0x632   : > { %6356 = vrot.lane.b32.xlu0 %v6350_v13, %s8038_s16 }
 0x6a4   : > { %v6357_v38 = vpop.permute.xlu0 %6356 }
 0x6a5   : > { %v6360_v28 = vsel %vm6359_vm3, %v6357_v38, 0.0 }
 0x6a6   : > { %6361 = vadd.xlane.f32.xlu0 %v6360_v28 }
 0x733   : > { %v6362_v48 = vpop.xlane.xlu0 %6361 }
 0x734   : > { %v6364_v15 = vmul.f32 0.33333334, %v6362_v48 }
 0x736   : > { %v6365_v16 = vsub.f32 %v6350_v13, %v6364_v15 }
 0x738   : > { %6368 = vperm.xlu1 %7915, %v6365_v16  }
 0x7b7   : > { %v6369_v17 = vpop.permute.xlu1 %6368 }
 0x7b8   : > { %v6371_v0 = vadd.f32 %v6369_v17, %v6350_v13 }
 0x7ba   : > { %6372 = vst [vmem:[%s251_s20] sm:$0xff] %v6371_v0 }
 0x7bb PF: > { %s16_s21 = sadd.s32 1, %s8035_s21  }
 0x7bc   : > { %p13_p5 = scmp.ge.s32.totalorder %s16_s21, 4  }
 0x7be   :  { %15 = sbr.rel (!%p13_p5) target bundleno = 1 (0x1), region = 85 }

</bundles_post_ra>
